<compile_context>
chip_gen: v7x
topology: tpu7x:2x2x1
jax: 0.10.0
libtpu: 0.0.40
codegen_flags: <defaults>
</compile_context>

<pallas_src>
import functools

import jax
import jax.numpy as jnp
from jax.experimental import pallas as pl
from jax.experimental.pallas import tpu as pltpu

LN_EPS = 1e-5


# ----------------------------------------------------------------------------
# Hardware introspection & tuning knobs (all OUTSIDE jit -> become static args)
# ----------------------------------------------------------------------------
@functools.lru_cache(maxsize=None)
def _tpu_generation():
    try:
        kind = jax.devices()[0].device_kind.lower()
    except Exception:
        return "unknown"
    if "v5" in kind:
        return "v5"
    if "v6" in kind:
        return "v6e"
    if "7" in kind:
        return "v7x"
    return "unknown"


@functools.lru_cache(maxsize=None)
def _vmem_capacity_bytes():
    try:
        return int(pltpu.get_tpu_info().vmem_capacity_bytes)
    except Exception:
        gen = _tpu_generation()
        if gen in ("v5", "v6e"):
            return 128 * 1024 * 1024
        return 64 * 1024 * 1024      # v7x per-TC / conservative default


@functools.lru_cache(maxsize=None)
def _supports_single_buffered_const():
    """True iff pipeline_mode=pl.Buffered(1) on a grid-invariant BlockSpec
    compiles AND produces correct results on this jax build (probed once with
    a tiny kernel; used to single-buffer resident weights and save VMEM)."""
    try:
        const_spec = pl.BlockSpec((8, 128), lambda i: (0, 0),
                                  pipeline_mode=pl.Buffered(1))
    except Exception:
        return False

    def _probe_kernel(a_ref, c_ref, o_ref):
        o_ref[...] = a_ref[...] + c_ref[...]

    try:
        f = pl.pallas_call(
            _probe_kernel,
            out_shape=jax.ShapeDtypeStruct((16, 128), jnp.float32),
            grid=(2,),
            in_specs=[pl.BlockSpec((8, 128), lambda i: (i, 0)), const_spec],
            out_specs=pl.BlockSpec((8, 128), lambda i: (i, 0)),
        )
        a = jnp.arange(16 * 128, dtype=jnp.float32).reshape(16, 128)
        c = jnp.ones((8, 128), jnp.float32)
        out = jax.block_until_ready(jax.jit(f)(a, c))
        return bool(jnp.allclose(out, a + 1.0))
    except Exception:
        return False


def _round_up(x, m):
    return ((x + m - 1) // m) * m


def _pick_tm(M, gen):
    if gen == "v5":
        tm = 128                       # 4x128x128 MXU: 128 rows saturate it
    else:
        tm = 256                       # v6e/v7x: 2x256x256 MXU
        if gen == "v7x" and pl.cdiv(M, tm) < 2:
            tm = 128                   # keep >=2 parallel steps for the 2 TCs
    return max(8, min(tm, _round_up(M, 8)))


def _pick_tk(gen):
    # v7x has half the VMEM of v5e/v6e -> smaller K tiles in the fallback.
    return 256 if gen in ("v7x", "unknown") else 512


def _vmem_limit(estimate_bytes, capacity_bytes):
    """Scoped-VMEM limit sized from the actual estimate (+ headroom for
    compiler-internal scratch / spilled f32 temporaries), floored at the
    32 MiB default and capped at ~85% of physical capacity."""
    return int(min(0.85 * capacity_bytes,
                   max(1.25 * estimate_bytes, 32 * 1024 * 1024)))


def _const_spec(shape, index_map, single_buffer):
    """BlockSpec for a grid-invariant block; single-buffered when supported."""
    if single_buffer:
        return pl.BlockSpec(shape, index_map, pipeline_mode=pl.Buffered(1))
    return pl.BlockSpec(shape, index_map)


# ----------------------------------------------------------------------------
# Shared in-kernel math
# ----------------------------------------------------------------------------
def _bias_ln_relu(y, b_ref, g_ref, be_ref):
    """y: (tm, N) f32 pre-activation. Bias + LayerNorm + ReLU, all in f32.
    Two-pass variance kept on purpose (more stable than E[y^2]-E[y]^2)."""
    y = y + b_ref[...]                                   # f32 bias
    mean = jnp.mean(y, axis=-1, keepdims=True)           # row reduce -> XLU
    c = y - mean
    var = jnp.mean(c * c, axis=-1, keepdims=True)
    y = c * jax.lax.rsqrt(var + LN_EPS)                  # rsqrt -> EUP
    y = y * g_ref[...] + be_ref[...]
    return jnp.maximum(y, 0.0)


def _linear_ln_relu(h_lowp, w_ref, b_ref, g_ref, be_ref):
    """h_lowp: (tm, K) bf16 activations -> f32 (tm, N)."""
    y = jnp.dot(h_lowp, w_ref[...], preferred_element_type=jnp.float32)
    return _bias_ln_relu(y, b_ref, g_ref, be_ref)


# ----------------------------------------------------------------------------
# Kernel 1: all three layers fused (weights VMEM-resident)
# ----------------------------------------------------------------------------
def _fused_mlp3_kernel(x_ref,
                       w1_ref, b1_ref, g1_ref, be1_ref,
                       w2_ref, b2_ref, g2_ref, be2_ref,
                       w3_ref, b3_ref, g3_ref, be3_ref,
                       o_ref):
    cdt = w1_ref.dtype  # storage/compute dtype fed to the MXU (bf16)
    h = _linear_ln_relu(x_ref[...], w1_ref, b1_ref, g1_ref, be1_ref)
    h = _linear_ln_relu(h.astype(cdt), w2_ref, b2_ref, g2_ref, be2_ref)
    h = _linear_ln_relu(h.astype(cdt), w3_ref, b3_ref, g3_ref, be3_ref)
    o_ref[...] = h.astype(o_ref.dtype)


def _mlp3_fused(x, params, *, tm, single_buffer, vmem_estimate, vmem_cap):
    M, K = x.shape
    N = params[0][0].shape[1]
    (w1, b1, g1, be1), (w2, b2, g2, be2), (w3, b3, g3, be3) = params
    vec = lambda v: jnp.asarray(v, jnp.float32).reshape(1, N)

    def const(shape):
        return _const_spec(shape, lambda i: (0, 0), single_buffer)

    # Pad-free ragged batch: grid = cdiv(M, tm). LayerNorm is row-wise, so
    # garbage rows in edge blocks never mix into valid rows and their
    # out-of-bounds writes are discarded.
    return pl.pallas_call(
        _fused_mlp3_kernel,
        out_shape=jax.ShapeDtypeStruct((M, N), jnp.float32),
        grid_spec=pltpu.PrefetchScalarGridSpec(
            num_scalar_prefetch=0,
            grid=(pl.cdiv(M, tm),),
            in_specs=[
                pl.BlockSpec((tm, K), lambda i: (i, 0)),
                const((K, N)), const((1, N)), const((1, N)), const((1, N)),
                const((N, N)), const((1, N)), const((1, N)), const((1, N)),
                const((N, N)), const((1, N)), const((1, N)), const((1, N)),
            ],
            out_specs=pl.BlockSpec((tm, N), lambda i: (i, 0)),
        ),
        compiler_params=pltpu.CompilerParams(
            dimension_semantics=("parallel",),
            vmem_limit_bytes=_vmem_limit(vmem_estimate, vmem_cap),
        ),
    )(x,
      w1, vec(b1), vec(g1), vec(be1),
      w2, vec(b2), vec(g2), vec(be2),
      w3, vec(b3), vec(g3), vec(be3))


# ----------------------------------------------------------------------------
# Kernel 2: single layer, K-tiled reduction (fallback for large hidden sizes)
# ----------------------------------------------------------------------------
def _layer_ktiled_last_kernel(x_ref, w_ref, b_ref, g_ref, be_ref, o_ref):
    """f32 output: accumulate matmul partials directly into o_ref (no scratch);
    bias + LayerNorm + ReLU epilogue only on the final K step."""
    k = pl.program_id(1)

    @pl.when(k == 0)
    def _():
        o_ref[...] = jnp.zeros_like(o_ref)

    o_ref[...] += jnp.dot(x_ref[...], w_ref[...],
                          preferred_element_type=jnp.float32)

    @pl.when(k == pl.num_programs(1) - 1)
    def _():
        o_ref[...] = _bias_ln_relu(o_ref[...], b_ref, g_ref, be_ref)


def _layer_ktiled_mid_kernel(x_ref, w_ref, b_ref, g_ref, be_ref, o_ref,
                             acc_ref):
    """bf16 output: f32 accumulator scratch, epilogue + downcast on last step
    (halves activation write-back + the next layer's read)."""
    k = pl.program_id(1)

    @pl.when(k == 0)
    def _():
        acc_ref[...] = jnp.zeros_like(acc_ref)

    acc_ref[...] += jnp.dot(x_ref[...], w_ref[...],
                            preferred_element_type=jnp.float32)

    @pl.when(k == pl.num_programs(1) - 1)
    def _():
        o_ref[...] = _bias_ln_relu(acc_ref[...], b_ref, g_ref,
                                   be_ref).astype(o_ref.dtype)


def _linear_ln_relu_ktiled(x, w, b, gamma, beta, *, tm, tk, out_dtype,
                           single_buffer, vmem_cap):
    M, K = x.shape
    Kw, N = w.shape
    assert K == Kw
    tk = min(tk, K)
    Kp = pl.cdiv(K, tk) * tk
    if Kp != K:
        # Zero-pad the reduction axis so every K tile is fully valid (padded
        # rows/cols contribute exact zeros). Usually a no-op for MLP widths.
        x = jnp.pad(x, ((0, 0), (0, Kp - K)))
        w = jnp.pad(w, ((0, Kp - K), (0, 0)))
    vecs = [jnp.asarray(v, jnp.float32).reshape(1, N) for v in (b, gamma, beta)]

    use_acc_scratch = jnp.dtype(out_dtype) != jnp.dtype(jnp.float32)
    kernel = _layer_ktiled_mid_kernel if use_acc_scratch else _layer_ktiled_last_kernel
    out_itemsize = jnp.dtype(out_dtype).itemsize
    sbuf = 1 if single_buffer else 2
    est = (2 * tm * tk * jnp.dtype(x.dtype).itemsize     # x tiles (dbl-buffered)
           + 2 * tk * N * jnp.dtype(w.dtype).itemsize    # w tiles (dbl-buffered)
           + 2 * tm * N * out_itemsize                   # out tiles
           + (tm * N * 4 if use_acc_scratch else 0)      # f32 accumulator
           + sbuf * 3 * 8 * N * 4                        # bias/gamma/beta
           + 4 * tm * N * 4)                             # f32 LN temp headroom

    def vspec():
        return _const_spec((1, N), lambda i, k: (0, 0), single_buffer)

    return pl.pallas_call(
        kernel,
        out_shape=jax.ShapeDtypeStruct((M, N), out_dtype),
        grid_spec=pltpu.PrefetchScalarGridSpec(
            num_scalar_prefetch=0,
            grid=(pl.cdiv(M, tm), Kp // tk),
            in_specs=[
                pl.BlockSpec((tm, tk), lambda i, k: (i, k)),
                pl.BlockSpec((tk, N), lambda i, k: (k, 0)),
                vspec(), vspec(), vspec(),
            ],
            out_specs=pl.BlockSpec((tm, N), lambda i, k: (i, 0)),
            scratch_shapes=([pltpu.VMEM((tm, N), jnp.float32)]
                            if use_acc_scratch else []),
        ),
        compiler_params=pltpu.CompilerParams(
            dimension_semantics=("parallel", "arbitrary"),
            vmem_limit_bytes=_vmem_limit(est, vmem_cap),
        ),
    )(x, w, *vecs)


# ----------------------------------------------------------------------------
# Forward pass
# ----------------------------------------------------------------------------
def _mlp_forward_impl(x, params, tm, tk, prefer_fused, single_buffer, vmem_cap):
    cdt = params[0][0].dtype                 # weight storage dtype (bf16)
    h = x.astype(cdt)                        # single cast; halves x DMA traffic
    M, K = h.shape
    N = params[0][0].shape[1]
    itemsize = jnp.dtype(cdt).itemsize
    weight_bytes = sum(int(w.size) * jnp.dtype(w.dtype).itemsize
                       for (w, _, _, _) in params)
    wbuf = 1 if single_buffer else 2
    fused_vmem = (2 * tm * K * itemsize      # double-buffered x tile (bf16)
                  + 2 * tm * N * 4           # double-buffered f32 out tile
                  + wbuf * weight_bytes      # resident weights
                  + wbuf * 9 * 8 * N * 4     # bias/gamma/beta (sublane-padded)
                  + 6 * tm * N * 4)          # live f32 LN temporaries / spill
    if prefer_fused and fused_vmem <= int(0.75 * vmem_cap):
        return _mlp3_fused(h, params, tm=tm, single_buffer=single_buffer,
                           vmem_estimate=fused_vmem, vmem_cap=vmem_cap)

    # Large hidden sizes: one kernel per layer, K-tiled reduction.
    # Intermediate activations stay bf16 in HBM; last layer emits f32.
    n_layers = len(params)
    for li, (w, b, g, be) in enumerate(params):
        out_dtype = jnp.float32 if li == n_layers - 1 else cdt
        h = _linear_ln_relu_ktiled(h, w, b, g, be, tm=tm, tk=tk,
                                   out_dtype=out_dtype,
                                   single_buffer=single_buffer,
                                   vmem_cap=vmem_cap)
    return h


_mlp_forward_jit = jax.jit(_mlp_forward_impl, static_argnums=(2, 3, 4, 5, 6))


def mlp_forward(x, params, *, tm=None, tk=None, prefer_fused=True):
    gen = _tpu_generation()
    cap = _vmem_capacity_bytes()
    if tm is None:
        tm = _pick_tm(x.shape[0], gen)
    if tk is None:
        tk = _pick_tk(gen)
    single_buffer = _supports_single_buffered_const()
    return _mlp_forward_jit(x, params, int(tm), int(tk), bool(prefer_fused),
                            bool(single_buffer), int(cap))


# ----------------------------------------------------------------------------
# Params + reference
# ----------------------------------------------------------------------------
def init_mlp_params(key, in_size, out_size, *, weight_dtype=jnp.bfloat16):
    """PyTorch-default-style init; weights stored bf16, bias/LN params f32."""
    params = []
    sizes = [(in_size, out_size), (out_size, out_size), (out_size, out_size)]
    for fan_in, fan_out in sizes:
        key, kw, kb = jax.random.split(key, 3)
        bound = 1.0 / (fan_in ** 0.5)
        w = jax.random.uniform(kw, (fan_in, fan_out), jnp.float32, -bound, bound)
        b = jax.random.uniform(kb, (fan_out,), jnp.float32, -bound, bound)
        params.append((w.astype(weight_dtype), b,
                       jnp.ones((fan_out,), jnp.float32),
                       jnp.zeros((fan_out,), jnp.float32)))
    return params


def mlp_forward_ref(x, params):
    """Pure-JAX reference mirroring the kernel's dtype handling:
    bf16 weights/activations into the matmul, f32 bias/LayerNorm/ReLU."""
    cdt = params[0][0].dtype
    h = x.astype(cdt)
    for li, (w, b, g, be) in enumerate(params):
        y = jnp.dot(h.astype(jnp.float32), w.astype(jnp.float32),
                    precision=jax.lax.Precision.HIGHEST) + b
        mean = jnp.mean(y, axis=-1, keepdims=True)
        var = jnp.mean((y - mean) ** 2, axis=-1, keepdims=True)
        y = (y - mean) / jnp.sqrt(var + LN_EPS)
        y = y * g + be
        h = jnp.maximum(y, 0.0)
        if li < len(params) - 1:
            h = h.astype(cdt)
    return h


# ----------------------------------------------------------------------------
if __name__ == "__main__":
    # Small shapes; ragged batch (200) exercises the pad-free edge-block path.
    batch, in_size, out_size = 200, 256, 256

    key = jax.random.PRNGKey(0)
    key, kx = jax.random.split(key)
    x = jax.random.normal(kx, (batch, in_size), jnp.float32)
    params = init_mlp_params(key, in_size, out_size)

    ref = mlp_forward_ref(x, params)

    # Main path: all three layers fused in one pallas_call.
    out = jax.block_until_ready(mlp_forward(x, params))
    assert out.shape == (batch, out_size)
    assert jnp.allclose(out, ref, atol=1e-2, rtol=1e-2), "fused path mismatch"

    # Also exercise the large-hidden fallback (per-layer, K-tiled reduction,
    # bf16 intermediates, accumulate-into-output on the final f32 layer).
    out2 = jax.block_until_ready(
        mlp_forward(x, params, tk=128, prefer_fused=False))
    assert jnp.allclose(out2, ref, atol=1e-2, rtol=1e-2), "k-tiled path mismatch"

    print("KERNEL_OK")
</pallas_src>

<mosaic_0001>
module attributes {stable_mosaic.version = 11 : i64} {
  func.func @_probe_kernel(%arg0: i32, %arg1: memref<8x128xf32, #tpu.memory_space<vmem>>, %arg2: memref<8x128xf32, #tpu.memory_space<vmem>>, %arg3: memref<8x128xf32, #tpu.memory_space<vmem>>) attributes {dimension_semantics = [#tpu.dimension_semantics<arbitrary>], iteration_bounds = array<i64: 2>, scalar_prefetch = 0 : i64, scratch_operands = 0 : i64, tpu.core_type = #tpu.core_type<tc>, window_params = [{transform_indices = @transform_0, window_bounds = array<i64: 8, 128>}, {pipeline_mode = #tpu.pipeline_mode<synchronous>, transform_indices = @transform_1, window_bounds = array<i64: 8, 128>}, {transform_indices = @transform_2, window_bounds = array<i64: 8, 128>}]} {
    %c0 = arith.constant 0 : index
    %c0_0 = arith.constant 0 : index
    %0 = vector.load %arg1[%c0, %c0_0] : memref<8x128xf32, #tpu.memory_space<vmem>>, vector<8x128xf32>
    %c0_1 = arith.constant 0 : index
    %c0_2 = arith.constant 0 : index
    %1 = vector.load %arg2[%c0_1, %c0_2] : memref<8x128xf32, #tpu.memory_space<vmem>>, vector<8x128xf32>
    %2 = arith.addf %0, %1 : vector<8x128xf32>
    %c0_3 = arith.constant 0 : index
    %c0_4 = arith.constant 0 : index
    %3 = vector.load %arg3[%c0_3, %c0_4] : memref<8x128xf32, #tpu.memory_space<vmem>>, vector<8x128xf32>
    tpu.vector_store %arg3[%c0_3, %c0_4], %2 {strides = array<i32>} : memref<8x128xf32, #tpu.memory_space<vmem>>, vector<8x128xf32>,
    return
  }
  func.func @transform_0(%arg0: i32) -> (i32, i32) {
    %c0_i32 = arith.constant 0 : i32
    %c0_i32_0 = arith.constant 0 : i32
    return %arg0, %c0_i32 : i32, i32
  }
  func.func @transform_1(%arg0: i32) -> (i32, i32) {
    %c0_i32 = arith.constant 0 : i32
    %c0_i32_0 = arith.constant 0 : i32
    %c0_i32_1 = arith.constant 0 : i32
    return %c0_i32, %c0_i32_0 : i32, i32
  }
  func.func @transform_2(%arg0: i32) -> (i32, i32) {
    %c0_i32 = arith.constant 0 : i32
    %c0_i32_0 = arith.constant 0 : i32
    return %arg0, %c0_i32 : i32, i32
  }
}

module attributes {stable_mosaic.version = 11 : i64} {
  func.func @_fused_mlp3_kernel(%arg0: i32, %arg1: memref<200x256xbf16, #tpu.memory_space<vmem>>, %arg2: memref<256x256xbf16, #tpu.memory_space<vmem>>, %arg3: memref<1x256xf32, #tpu.memory_space<vmem>>, %arg4: memref<1x256xf32, #tpu.memory_space<vmem>>, %arg5: memref<1x256xf32, #tpu.memory_space<vmem>>, %arg6: memref<256x256xbf16, #tpu.memory_space<vmem>>, %arg7: memref<1x256xf32, #tpu.memory_space<vmem>>, %arg8: memref<1x256xf32, #tpu.memory_space<vmem>>, %arg9: memref<1x256xf32, #tpu.memory_space<vmem>>, %arg10: memref<256x256xbf16, #tpu.memory_space<vmem>>, %arg11: memref<1x256xf32, #tpu.memory_space<vmem>>, %arg12: memref<1x256xf32, #tpu.memory_space<vmem>>, %arg13: memref<1x256xf32, #tpu.memory_space<vmem>>, %arg14: memref<200x256xf32, #tpu.memory_space<vmem>>) attributes {dimension_semantics = [#tpu.dimension_semantics<parallel>], iteration_bounds = array<i64: 1>, scalar_prefetch = 0 : i64, scratch_operands = 0 : i64, tpu.core_type = #tpu.core_type<tc>, window_params = [{transform_indices = @transform_0, window_bounds = array<i64: 200, 256>}, {pipeline_mode = #tpu.pipeline_mode<synchronous>, transform_indices = @transform_1, window_bounds = array<i64: 256, 256>}, {pipeline_mode = #tpu.pipeline_mode<synchronous>, transform_indices = @transform_2, window_bounds = array<i64: 1, 256>}, {pipeline_mode = #tpu.pipeline_mode<synchronous>, transform_indices = @transform_3, window_bounds = array<i64: 1, 256>}, {pipeline_mode = #tpu.pipeline_mode<synchronous>, transform_indices = @transform_4, window_bounds = array<i64: 1, 256>}, {pipeline_mode = #tpu.pipeline_mode<synchronous>, transform_indices = @transform_5, window_bounds = array<i64: 256, 256>}, {pipeline_mode = #tpu.pipeline_mode<synchronous>, transform_indices = @transform_6, window_bounds = array<i64: 1, 256>}, {pipeline_mode = #tpu.pipeline_mode<synchronous>, transform_indices = @transform_7, window_bounds = array<i64: 1, 256>}, {pipeline_mode = #tpu.pipeline_mode<synchronous>, transform_indices = @transform_8, window_bounds = array<i64: 1, 256>}, {pipeline_mode = #tpu.pipeline_mode<synchronous>, transform_indices = @transform_9, window_bounds = array<i64: 256, 256>}, {pipeline_mode = #tpu.pipeline_mode<synchronous>, transform_indices = @transform_10, window_bounds = array<i64: 1, 256>}, {pipeline_mode = #tpu.pipeline_mode<synchronous>, transform_indices = @transform_11, window_bounds = array<i64: 1, 256>}, {pipeline_mode = #tpu.pipeline_mode<synchronous>, transform_indices = @transform_12, window_bounds = array<i64: 1, 256>}, {transform_indices = @transform_13, window_bounds = array<i64: 200, 256>}]} {
    %c0 = arith.constant 0 : index
    %c0_0 = arith.constant 0 : index
    %0 = vector.load %arg1[%c0, %c0_0] : memref<200x256xbf16, #tpu.memory_space<vmem>>, vector<200x256xbf16>
    %c0_1 = arith.constant 0 : index
    %c0_2 = arith.constant 0 : index
    %1 = vector.load %arg2[%c0_1, %c0_2] : memref<256x256xbf16, #tpu.memory_space<vmem>>, vector<256x256xbf16>
    %cst = arith.constant dense<0.000000e+00> : vector<200x256xf32>
    %2 = tpu.matmul %0, %1, %cst {dimension_numbers = #tpu.dot_dimension_numbers<[1], [0], [0], [1], [0, 0, 1, 1], [], []>} : vector<200x256xbf16>, vector<256x256xbf16>, vector<200x256xf32> -> vector<200x256xf32>
    %c0_3 = arith.constant 0 : index
    %c0_4 = arith.constant 0 : index
    %3 = vector.load %arg3[%c0_3, %c0_4] : memref<1x256xf32, #tpu.memory_space<vmem>>, vector<1x256xf32>
    %4 = vector.broadcast %3 : vector<1x256xf32> to vector<200x256xf32>
    %5 = arith.addf %2, %4 : vector<200x256xf32>
    %cst_5 = arith.constant dense<0.000000e+00> : vector<200xf32>
    %6 = vector.multi_reduction <add>, %5, %cst_5 [1] : vector<200x256xf32> to vector<200xf32>
    %7 = vector.shape_cast %6 : vector<200xf32> to vector<200x1xf32>
    %cst_6 = arith.constant 2.560000e+02 : f32
    %8 = vector.broadcast %cst_6 : f32 to vector<200x1xf32>
    %9 = arith.divf %7, %8 : vector<200x1xf32>
    %10 = vector.broadcast %9 : vector<200x1xf32> to vector<200x256xf32>
    %11 = arith.subf %5, %10 : vector<200x256xf32>
    %12 = arith.mulf %11, %11 : vector<200x256xf32>
    %cst_7 = arith.constant dense<0.000000e+00> : vector<200xf32>
    %13 = vector.multi_reduction <add>, %12, %cst_7 [1] : vector<200x256xf32> to vector<200xf32>
    %14 = vector.shape_cast %13 : vector<200xf32> to vector<200x1xf32>
    %cst_8 = arith.constant 2.560000e+02 : f32
    %15 = vector.broadcast %cst_8 : f32 to vector<200x1xf32>
    %16 = arith.divf %14, %15 : vector<200x1xf32>
    %cst_9 = arith.constant 9.99999974E-6 : f32
    %17 = vector.broadcast %cst_9 : f32 to vector<200x1xf32>
    %18 = arith.addf %16, %17 : vector<200x1xf32>
    %19 = math.rsqrt %18 : vector<200x1xf32>
    %20 = vector.broadcast %19 : vector<200x1xf32> to vector<200x256xf32>
    %21 = arith.mulf %11, %20 : vector<200x256xf32>
    %c0_10 = arith.constant 0 : index
    %c0_11 = arith.constant 0 : index
    %22 = vector.load %arg4[%c0_10, %c0_11] : memref<1x256xf32, #tpu.memory_space<vmem>>, vector<1x256xf32>
    %23 = vector.broadcast %22 : vector<1x256xf32> to vector<200x256xf32>
    %24 = arith.mulf %21, %23 : vector<200x256xf32>
    %c0_12 = arith.constant 0 : index
    %c0_13 = arith.constant 0 : index
    %25 = vector.load %arg5[%c0_12, %c0_13] : memref<1x256xf32, #tpu.memory_space<vmem>>, vector<1x256xf32>
    %26 = vector.broadcast %25 : vector<1x256xf32> to vector<200x256xf32>
    %27 = arith.addf %24, %26 : vector<200x256xf32>
    %cst_14 = arith.constant 0.000000e+00 : f32
    %28 = vector.broadcast %cst_14 : f32 to vector<200x256xf32>
    %29 = arith.maximumf %27, %28 : vector<200x256xf32>
    %30 = arith.truncf %29 : vector<200x256xf32> to vector<200x256xbf16>
    %c0_15 = arith.constant 0 : index
    %c0_16 = arith.constant 0 : index
    %31 = vector.load %arg6[%c0_15, %c0_16] : memref<256x256xbf16, #tpu.memory_space<vmem>>, vector<256x256xbf16>
    %cst_17 = arith.constant dense<0.000000e+00> : vector<200x256xf32>
    %32 = tpu.matmul %30, %31, %cst_17 {dimension_numbers = #tpu.dot_dimension_numbers<[1], [0], [0], [1], [0, 0, 1, 1], [], []>} : vector<200x256xbf16>, vector<256x256xbf16>, vector<200x256xf32> -> vector<200x256xf32>
    %c0_18 = arith.constant 0 : index
    %c0_19 = arith.constant 0 : index
    %33 = vector.load %arg7[%c0_18, %c0_19] : memref<1x256xf32, #tpu.memory_space<vmem>>, vector<1x256xf32>
    %34 = vector.broadcast %33 : vector<1x256xf32> to vector<200x256xf32>
    %35 = arith.addf %32, %34 : vector<200x256xf32>
    %cst_20 = arith.constant dense<0.000000e+00> : vector<200xf32>
    %36 = vector.multi_reduction <add>, %35, %cst_20 [1] : vector<200x256xf32> to vector<200xf32>
    %37 = vector.shape_cast %36 : vector<200xf32> to vector<200x1xf32>
    %cst_21 = arith.constant 2.560000e+02 : f32
    %38 = vector.broadcast %cst_21 : f32 to vector<200x1xf32>
    %39 = arith.divf %37, %38 : vector<200x1xf32>
    %40 = vector.broadcast %39 : vector<200x1xf32> to vector<200x256xf32>
    %41 = arith.subf %35, %40 : vector<200x256xf32>
    %42 = arith.mulf %41, %41 : vector<200x256xf32>
    %cst_22 = arith.constant dense<0.000000e+00> : vector<200xf32>
    %43 = vector.multi_reduction <add>, %42, %cst_22 [1] : vector<200x256xf32> to vector<200xf32>
    %44 = vector.shape_cast %43 : vector<200xf32> to vector<200x1xf32>
    %cst_23 = arith.constant 2.560000e+02 : f32
    %45 = vector.broadcast %cst_23 : f32 to vector<200x1xf32>
    %46 = arith.divf %44, %45 : vector<200x1xf32>
    %cst_24 = arith.constant 9.99999974E-6 : f32
    %47 = vector.broadcast %cst_24 : f32 to vector<200x1xf32>
    %48 = arith.addf %46, %47 : vector<200x1xf32>
    %49 = math.rsqrt %48 : vector<200x1xf32>
    %50 = vector.broadcast %49 : vector<200x1xf32> to vector<200x256xf32>
    %51 = arith.mulf %41, %50 : vector<200x256xf32>
    %c0_25 = arith.constant 0 : index
    %c0_26 = arith.constant 0 : index
    %52 = vector.load %arg8[%c0_25, %c0_26] : memref<1x256xf32, #tpu.memory_space<vmem>>, vector<1x256xf32>
    %53 = vector.broadcast %52 : vector<1x256xf32> to vector<200x256xf32>
    %54 = arith.mulf %51, %53 : vector<200x256xf32>
    %c0_27 = arith.constant 0 : index
    %c0_28 = arith.constant 0 : index
    %55 = vector.load %arg9[%c0_27, %c0_28] : memref<1x256xf32, #tpu.memory_space<vmem>>, vector<1x256xf32>
    %56 = vector.broadcast %55 : vector<1x256xf32> to vector<200x256xf32>
    %57 = arith.addf %54, %56 : vector<200x256xf32>
    %cst_29 = arith.constant 0.000000e+00 : f32
    %58 = vector.broadcast %cst_29 : f32 to vector<200x256xf32>
    %59 = arith.maximumf %57, %58 : vector<200x256xf32>
    %60 = arith.truncf %59 : vector<200x256xf32> to vector<200x256xbf16>
    %c0_30 = arith.constant 0 : index
    %c0_31 = arith.constant 0 : index
    %61 = vector.load %arg10[%c0_30, %c0_31] : memref<256x256xbf16, #tpu.memory_space<vmem>>, vector<256x256xbf16>
    %cst_32 = arith.constant dense<0.000000e+00> : vector<200x256xf32>
    %62 = tpu.matmul %60, %61, %cst_32 {dimension_numbers = #tpu.dot_dimension_numbers<[1], [0], [0], [1], [0, 0, 1, 1], [], []>} : vector<200x256xbf16>, vector<256x256xbf16>, vector<200x256xf32> -> vector<200x256xf32>
    %c0_33 = arith.constant 0 : index
    %c0_34 = arith.constant 0 : index
    %63 = vector.load %arg11[%c0_33, %c0_34] : memref<1x256xf32, #tpu.memory_space<vmem>>, vector<1x256xf32>
    %64 = vector.broadcast %63 : vector<1x256xf32> to vector<200x256xf32>
    %65 = arith.addf %62, %64 : vector<200x256xf32>
    %cst_35 = arith.constant dense<0.000000e+00> : vector<200xf32>
    %66 = vector.multi_reduction <add>, %65, %cst_35 [1] : vector<200x256xf32> to vector<200xf32>
    %67 = vector.shape_cast %66 : vector<200xf32> to vector<200x1xf32>
    %cst_36 = arith.constant 2.560000e+02 : f32
    %68 = vector.broadcast %cst_36 : f32 to vector<200x1xf32>
    %69 = arith.divf %67, %68 : vector<200x1xf32>
    %70 = vector.broadcast %69 : vector<200x1xf32> to vector<200x256xf32>
    %71 = arith.subf %65, %70 : vector<200x256xf32>
    %72 = arith.mulf %71, %71 : vector<200x256xf32>
    %cst_37 = arith.constant dense<0.000000e+00> : vector<200xf32>
    %73 = vector.multi_reduction <add>, %72, %cst_37 [1] : vector<200x256xf32> to vector<200xf32>
    %74 = vector.shape_cast %73 : vector<200xf32> to vector<200x1xf32>
    %cst_38 = arith.constant 2.560000e+02 : f32
    %75 = vector.broadcast %cst_38 : f32 to vector<200x1xf32>
    %76 = arith.divf %74, %75 : vector<200x1xf32>
    %cst_39 = arith.constant 9.99999974E-6 : f32
    %77 = vector.broadcast %cst_39 : f32 to vector<200x1xf32>
    %78 = arith.addf %76, %77 : vector<200x1xf32>
    %79 = math.rsqrt %78 : vector<200x1xf32>
    %80 = vector.broadcast %79 : vector<200x1xf32> to vector<200x256xf32>
    %81 = arith.mulf %71, %80 : vector<200x256xf32>
    %c0_40 = arith.constant 0 : index
    %c0_41 = arith.constant 0 : index
    %82 = vector.load %arg12[%c0_40, %c0_41] : memref<1x256xf32, #tpu.memory_space<vmem>>, vector<1x256xf32>
    %83 = vector.broadcast %82 : vector<1x256xf32> to vector<200x256xf32>
    %84 = arith.mulf %81, %83 : vector<200x256xf32>
    %c0_42 = arith.constant 0 : index
    %c0_43 = arith.constant 0 : index
    %85 = vector.load %arg13[%c0_42, %c0_43] : memref<1x256xf32, #tpu.memory_space<vmem>>, vector<1x256xf32>
    %86 = vector.broadcast %85 : vector<1x256xf32> to vector<200x256xf32>
    %87 = arith.addf %84, %86 : vector<200x256xf32>
    %cst_44 = arith.constant 0.000000e+00 : f32
    %88 = vector.broadcast %cst_44 : f32 to vector<200x256xf32>
    %89 = arith.maximumf %87, %88 : vector<200x256xf32>
    %c0_45 = arith.constant 0 : index
    %c0_46 = arith.constant 0 : index
    %90 = vector.load %arg14[%c0_45, %c0_46] : memref<200x256xf32, #tpu.memory_space<vmem>>, vector<200x256xf32>
    tpu.vector_store %arg14[%c0_45, %c0_46], %89 {strides = array<i32>} : memref<200x256xf32, #tpu.memory_space<vmem>>, vector<200x256xf32>,
    return
  }
  func.func @transform_0(%arg0: i32) -> (i32, i32) {
    %c0_i32 = arith.constant 0 : i32
    %c0_i32_0 = arith.constant 0 : i32
    return %arg0, %c0_i32 : i32, i32
  }
  func.func @transform_1(%arg0: i32) -> (i32, i32) {
    %c0_i32 = arith.constant 0 : i32
    %c0_i32_0 = arith.constant 0 : i32
    %c0_i32_1 = arith.constant 0 : i32
    return %c0_i32, %c0_i32_0 : i32, i32
  }
  func.func @transform_2(%arg0: i32) -> (i32, i32) {
    %c0_i32 = arith.constant 0 : i32
    %c0_i32_0 = arith.constant 0 : i32
    %c0_i32_1 = arith.constant 0 : i32
    return %c0_i32, %c0_i32_0 : i32, i32
  }
  func.func @transform_3(%arg0: i32) -> (i32, i32) {
    %c0_i32 = arith.constant 0 : i32
    %c0_i32_0 = arith.constant 0 : i32
    %c0_i32_1 = arith.constant 0 : i32
    return %c0_i32, %c0_i32_0 : i32, i32
  }
  func.func @transform_4(%arg0: i32) -> (i32, i32) {
    %c0_i32 = arith.constant 0 : i32
    %c0_i32_0 = arith.constant 0 : i32
    %c0_i32_1 = arith.constant 0 : i32
    return %c0_i32, %c0_i32_0 : i32, i32
  }
  func.func @transform_5(%arg0: i32) -> (i32, i32) {
    %c0_i32 = arith.constant 0 : i32
    %c0_i32_0 = arith.constant 0 : i32
    %c0_i32_1 = arith.constant 0 : i32
    return %c0_i32, %c0_i32_0 : i32, i32
  }
  func.func @transform_6(%arg0: i32) -> (i32, i32) {
    %c0_i32 = arith.constant 0 : i32
    %c0_i32_0 = arith.constant 0 : i32
    %c0_i32_1 = arith.constant 0 : i32
    return %c0_i32, %c0_i32_0 : i32, i32
  }
  func.func @transform_7(%arg0: i32) -> (i32, i32) {
    %c0_i32 = arith.constant 0 : i32
    %c0_i32_0 = arith.constant 0 : i32
    %c0_i32_1 = arith.constant 0 : i32
    return %c0_i32, %c0_i32_0 : i32, i32
  }
  func.func @transform_8(%arg0: i32) -> (i32, i32) {
    %c0_i32 = arith.constant 0 : i32
    %c0_i32_0 = arith.constant 0 : i32
    %c0_i32_1 = arith.constant 0 : i32
    return %c0_i32, %c0_i32_0 : i32, i32
  }
  func.func @transform_9(%arg0: i32) -> (i32, i32) {
    %c0_i32 = arith.constant 0 : i32
    %c0_i32_0 = arith.constant 0 : i32
    %c0_i32_1 = arith.constant 0 : i32
    return %c0_i32, %c0_i32_0 : i32, i32
  }
  func.func @transform_10(%arg0: i32) -> (i32, i32) {
    %c0_i32 = arith.constant 0 : i32
    %c0_i32_0 = arith.constant 0 : i32
    %c0_i32_1 = arith.constant 0 : i32
    return %c0_i32, %c0_i32_0 : i32, i32
  }
  func.func @transform_11(%arg0: i32) -> (i32, i32) {
    %c0_i32 = arith.constant 0 : i32
    %c0_i32_0 = arith.constant 0 : i32
    %c0_i32_1 = arith.constant 0 : i32
    return %c0_i32, %c0_i32_0 : i32, i32
  }
  func.func @transform_12(%arg0: i32) -> (i32, i32) {
    %c0_i32 = arith.constant 0 : i32
    %c0_i32_0 = arith.constant 0 : i32
    %c0_i32_1 = arith.constant 0 : i32
    return %c0_i32, %c0_i32_0 : i32, i32
  }
  func.func @transform_13(%arg0: i32) -> (i32, i32) {
    %c0_i32 = arith.constant 0 : i32
    %c0_i32_0 = arith.constant 0 : i32
    return %arg0, %c0_i32 : i32, i32
  }
}

</mosaic_0001>

<bundles_post_ra>
// kernel: tpu_custom_call.1
= control target key start
LH: loop header
LB: loop body
LE: loop exit
PB: predicated region body
PF: predicated region fallthrough
CT: control target
= control target key end

     0   :  { %7 = vsyncpa [#allocation3], 0  ;;  %s690_s0 = inlined_call_operand.hbm [shape: f32[16,128], index: 0, kind: input, shape index: {}]   ;;  %s691_s1 = inlined_call_operand.hbm [shape: f32[8,128], index: 1, kind: input, shape index: {}]   ;;  %s692_s2 = inlined_call_operand.hbm [shape: f32[16,128], index: 2, kind: output, shape index: {}]  }
   0x1   :  { %9 = vsyncpa [#allocation3 + $0x1], 0 }
   0x2   :  { %10 = vsyncpa [#allocation6], 0 }
   0x3   :  { %11 = vsyncpa [#allocation4], 0 }
   0x4   :  { %13 = vsyncpa [#allocation4 + $0x1], 0  ;;  %s489_s9 = smov 0   ;;  %s491_s10 = smov 0  }
   0x5   :  { %s493_s11 = smov 0   ;;  %s495_s12 = smov 0  }
   0x6 LB: > { %s510_s13 = sadd.s32 4294967295, %s469_s12   ;;  %s270_s14 = sadd.s32 4294967294, %s469_s12   ;;  %s469_s12 = sphi %s495_s12, %s716_s12   ;;  %s465_s11 = sphi %s493_s11, %s715_s11   ;;  %s461_s10 = sphi %s491_s10, %s714_s10   ;;  %s457_s9 = sphi %s489_s9, %s713_s9  }
   0x7   : > { %p39_p0 = scmp.ne.s32.totalorder %s461_s10, %s457_s9  ;;  %p693_p1 = scmp.eq.s32.totalorder %s510_s13, 0 }
   0x8   : > { %p90_p3 = scmp.eq.s32.totalorder %s270_s14, 1  ;;  %p271_p5 = scmp.ge.s32.totalorder %s469_s12, 1 }
   0x9   : > { %p519_p4 = por %p693_p1, %p39_p0  ;;  %p97_p7 = scmp.lt.s32.totalorder %s469_s12, 3 }
   0xa   : > { %p524_p6 = por %p90_p3, %p39_p0  ;;  %s471_s18 = smov [#allocation5]  }
   0xb   : > { %s696_s15 = scalar_select %p519_p4, 1, 0 }
   0xc   : > { %s697_s16 = scalar_select %p524_p6, 1, 0 }
   0xd   : > { %p529_p8 = pnand %p271_p5, %p97_p7  ;;  %s110_s19 = sshll.u32 %s471_s18, 4  ;;  %s111_s19 = int_to_ptr.vmem [resolvable:$true] %s110_s19 }
   0xe   : > { %s537_s20 = sadd.s32 1, %s469_s12   ;;  %s26_s24 = sadd.s32 1, %s465_s11 }
   0xf   : > { %s698_s17 = scalar_select %p529_p8, 1, 0 }
  0x10   : > { %p292_p10 = pneg %p529_p8  ;;  %s23_s22 = ssub.s32 %s469_s12, %s537_s20 }
  0x11   : > { %p547_p12 = scmp.eq.s32.totalorder %s23_s22, 0  ;;  %s341_s27 = scalar_lea.hbm %s691_s1, 128 }
  0x12   : > { %p541_p11 = pnand %p292_p10, %p693_p1  ;;  %p342_p0 = scmp.ne.s32.totalorder %s691_s1, %s341_s27 }
  0x13   : > { %s700_s23 = scalar_select %p547_p12, 1, 0 }
  0x14   : > { %p343_p3 = pneg %p541_p11  ;;  %p348_p10 = scmp.lt.u32.totalorder %s341_s27, %s691_s1 }
  0x16   : > { %p344_p5 = pnand %p343_p3, %p342_p0 }
  0x18   : > { %p345_p7 = pneg %p344_p5 }
  0x1a   : > { %p350_p9 = pnand %p348_p10, %p345_p7 }
  0x1c   : > { %353 = shalt.err (!%p350_p9)
}
  0x1d   : > { %s354_s4 = scalar_lea.vmem %s111_s19, 128  ;;  %p362_p6 = scmp.lt.s32.totalorder %s111_s19, %s111_s19 }
  0x1e   : > { %p355_p1 = scmp.ne.s32.totalorder %s111_s19, %s354_s4  ;;  %p363_p4 = scmp.lt.s32.totalorder %s354_s4, %s354_s4 }
  0x20   : > { %p357_p2 = pnand %p355_p1, %p343_p3  ;;  %p364_p8 = por %p363_p4, %p362_p6 }
  0x22   : > { %p358_p13 = pneg %p357_p2 }
  0x24   : > { %p365_p12 = pnand %p364_p8, %p358_p13 }
  0x26   : > { %368 = shalt.err (!%p365_p12)
}
  0x27   : > { %295 = dma.hbm_to_vmem [thread:$0]  (!%p541_p11), %s691_s1, 128, %s111_s19, [#allocation6]  }
  0x28   : > { %p701_p1 = scmp.ne.s32.totalorder %s700_s23, 0  ;;  %p34_p2 = scmp.eq.s32.totalorder %s469_s12, 0 }
  0x29   : > { %p702_p4 = scmp.ne.s32.totalorder %s465_s11, %s461_s10  ;;  %p703_p6 = scmp.eq.s32.totalorder %s510_s13, 1 }
  0x2a   : > { %s573_s7 = scalar_select %p701_p1, %s465_s11, %s26_s24  }
  0x2b   : > { %p581_p8 = por %p703_p6, %p702_p4  ;;  %p305_p9 = scmp.lt.s32.totalorder %s469_s12, 2 }
  0x2c   : > { %s121_s14 = sand.u32 1, %s465_s11   ;;  %p705_p12 = pmov %p702_p4 }
  0x2d   : > { %s274_s18 = sshll.u32 %s121_s14, 3  ;;  %s275_s21 = sshll.u32 %s469_s12, 7 }
  0x2e   : > { %p35_p13 = por %p34_p2, %p705_p12  ;;  %s594_s19 = scalar_lea.hbm %s690_s0, %s275_s21 }
  0x2f   : > { %s125_s23 = scalar_lea.vmem [#allocation2], %s274_s18  ;;  %s122_s27 = scalar_lea.sflag [#allocation3], %s121_s14 }
  0x30   : > { %s132_s24 = sshll.u32 %s125_s23, 4  ;;  %p596_p11 = pnand %p305_p9, %p35_p13  ;;  %s600_s24 = int_to_ptr.vmem [resolvable:$true] %s132_s24 }
  0x31   : > { %s369_s28 = scalar_lea.hbm %s594_s19, 128  ;;  %s374_s3 = scalar_lea.hbm %s690_s0, 256 }
  0x32   : > { %p370_p0 = scmp.ne.s32.totalorder %s594_s19, %s369_s28  ;;  %p371_p3 = pneg %p596_p11 }
  0x33   : > { %p375_p10 = scmp.lt.u32.totalorder %s594_s19, %s690_s0  ;;  %p376_p1 = scmp.lt.u32.totalorder %s374_s3, %s369_s28 }
  0x34   : > { %p372_p5 = pnand %p371_p3, %p370_p0  ;;  %p378_p4 = scmp.lt.u32.totalorder %s369_s28, %s594_s19 }
  0x35   : > { %p377_p2 = por %p376_p1, %p375_p10 }
  0x36   : > { %p373_p7 = pneg %p372_p5 }
  0x37   : > { %p379_p6 = por %p378_p4, %p377_p2 }
  0x39   : > { %p380_p9 = pnand %p379_p6, %p373_p7 }
  0x3b   : > { %383 = shalt.err (!%p380_p9)
}
  0x3c   : > { %s384_s6 = scalar_lea.vmem %s600_s24, 128  ;;  %s472_s14 = smov [#allocation2]  }
  0x3d   : > { %p385_p12 = scmp.ne.s32.totalorder %s600_s24, %s384_s6  ;;  %s389_s18 = sshll.u32 %s472_s14, 4  ;;  %s390_s18 = int_to_ptr.vmem [resolvable:$false] %s389_s18 }
  0x3e   : > { %s391_s21 = scalar_lea.vmem %s390_s18, 256  ;;  %p392_p5 = scmp.lt.s32.totalorder %s600_s24, %s390_s18 }
  0x3f   : > { %p387_p13 = pnand %p385_p12, %p371_p3  ;;  %p393_p10 = scmp.lt.s32.totalorder %s391_s21, %s384_s6 }
  0x41   : > { %p388_p0 = pneg %p387_p13  ;;  %p394_p1 = por %p393_p10, %p392_p5 }
  0x43   : > { %p395_p2 = pnand %p394_p1, %p388_p0 }
  0x45   : > { %398 = shalt.err (!%p395_p2)
}
  0x46   : > { %299 = dma.hbm_to_vmem [thread:$0]  (!%p596_p11), %s594_s19, 128, %s600_s24, %s122_s27  }
  0x47   : > { %p707_p7 = scmp.ne.s32.totalorder %s698_s17, 0 }
  0x48   : > { %s630_s22 = sand.u32 (!%p707_p7), 1, %s461_s10   ;;  %p708_p3 = scmp.ne.s32.totalorder (!%p707_p7), %s696_s15, 0 }
  0x49   : > { %141 = sbr.rel (%p707_p7) target bundleno = 109 (0x6d), region = 28  ;;  %s277_s25 = sshll.u32 (!%p707_p7), %s630_s22, 3 }
  0x4a   : > { %s144_s23 = scalar_lea.sflag (!%p707_p7), [#allocation3], %s630_s22  ;;  %s147_s28 = scalar_lea.vmem (!%p707_p7), [#allocation2], %s277_s25 }
  0x50   : > { %444 = dma.done.wait (%p708_p3), %s144_s23, 128  }
  0x51   : > { %446 = vsyncadd (%p708_p3), %s144_s23, 4294967168  ;;  %p709_p4 = scmp.eq.s32.totalorder %s510_s13, 0 }
  0x53   : > { %448 = dma.done.wait (%p709_p4), [#allocation6], 128   ;;  %p710_p11 = pmov %p709_p4 }
  0x54   : > { %s171_s17 = scalar_lea.vmem [#allocation7], %s277_s25  ;;  %s281_s24 = sshll.u32 %s510_s13, 7  ;;  %v172_v0 = vld [vmem:[%s147_s28] sm:$0xff]  ;;  %v173_v1 = vld [vmem:[#allocation5] sm:$0xff] }
  0x55   : > { %450 = vsyncadd (%p710_p11), [#allocation6], 4294967168  ;;  %s190_s19 = sshll.u32 %s171_s17, 4  ;;  %v174_v2 = vadd.f32 %v173_v1, %v172_v0  ;;  %s648_s27 = scalar_lea.hbm %s692_s2, %s281_s24  ;;  %s643_s19 = int_to_ptr.vmem [resolvable:$true] %s190_s19 }
  0x56   : > { %s177_s29 = scalar_lea.sflag [#allocation4], %s630_s22  ;;  %s399_s30 = scalar_lea.vmem %s643_s19, 128 }
  0x57   : > { %175 = vst [vmem:[%s171_s17] sm:$0xff] %v174_v2  ;;  %p400_p6 = scmp.ne.s32.totalorder %s643_s19, %s399_s30  ;;  %s473_s13 = smov [#allocation7]  }
  0x58   : > { %s403_s3 = sshll.u32 %s473_s13, 4  ;;  %s404_s3 = int_to_ptr.vmem [resolvable:$false] %s403_s3 }
  0x59   : > { %p401_p9 = pnand %p400_p6, %p581_p8  ;;  %s405_s4 = scalar_lea.vmem %s404_s3, 256 }
  0x5a   : > { %p406_p13 = scmp.lt.s32.totalorder %s643_s19, %s404_s3  ;;  %p407_p0 = scmp.lt.s32.totalorder %s405_s4, %s399_s30 }
  0x5b   : > { %p402_p12 = pneg %p401_p9 }
  0x5c   : > { %p408_p5 = por %p407_p0, %p406_p13 }
  0x5e   : > { %p409_p10 = pnand %p408_p5, %p402_p12 }
  0x60   : > { %412 = shalt.err (!%p409_p10)
}
  0x61   : > { %s413_s5 = scalar_lea.hbm %s648_s27, 128  ;;  %s417_s18 = scalar_lea.hbm %s692_s2, 256 }
  0x62   : > { %p414_p1 = scmp.ne.s32.totalorder %s648_s27, %s413_s5  ;;  %p418_p3 = scmp.lt.u32.totalorder %s648_s27, %s692_s2 }
  0x63   : > { %p419_p4 = scmp.lt.u32.totalorder %s417_s18, %s413_s5  ;;  %p421_p6 = scmp.lt.u32.totalorder %s413_s5, %s648_s27 }
  0x64   : > { %p415_p2 = pnand %p414_p1, %p581_p8 }
  0x65   : > { %p420_p11 = por %p419_p4, %p418_p3 }
  0x66   : > { %p416_p7 = pneg %p415_p2 }
  0x67   : > { %p422_p9 = por %p421_p6, %p420_p11 }
  0x69   : > { %p423_p12 = pnand %p422_p9, %p416_p7 }
  0x6b   : > { %426 = shalt.err (!%p423_p12)
}
  0x6c   : > { %290 = dma.vmem_to_hbm [thread:$0]  (%p581_p8), %s643_s19, 128, %s648_s27, %s177_s29  }
  0x6d PF: > { %s202_s25 = sand.u32 1, %s457_s9   ;;  %p711_p13 = scmp.ne.s32.totalorder %s697_s16, 0 }
  0x6e   : > { %p712_p0 = scmp.ge.s32.totalorder %s469_s12, 2  ;;  %s203_s23 = scalar_lea.sflag [#allocation4], %s202_s25 }
  0x70   : > { %p301_p5 = pnand %p712_p0, %p711_p13 }
  0x72   : > { %452 = dma.done.wait (!%p301_p5), %s203_s23, 128  }
  0x73   : > { %454 = vsyncadd (!%p301_p5), %s203_s23, 4294967168  ;;  %p16_p10 = scmp.ge.s32.totalorder %s537_s20, 4   ;;  %s713_s9 = smov %s461_s10 }
  0x74   : > { %s714_s10 = smov %s465_s11  ;;  %s715_s11 = smov %s573_s7 }
  0x75   : > { %s716_s12 = smov %s537_s20  ;;  %18 = sbr.rel (!%p16_p10) target bundleno = 6 (0x6), region = 77 }
  0x7c   :  { %208 = vsyncpa [#allocation3], 1 }
  0x7d   :  { %210 = vsyncpa [#allocation3 + $0x1], 1 }
  0x7e   :  { %211 = vsyncpa [#allocation6], 1 }
  0x7f   :  { %212 = vsyncpa [#allocation4], 1 }
  0x80   :  { %214 = vsyncpa [#allocation4 + $0x1], 1 }

// kernel: _mlp_forward_impl.1
= control target key start
LH: loop header
LB: loop body
LE: loop exit
PB: predicated region body
PF: predicated region fallthrough
CT: control target
= control target key end

     0   :  { %18 = vsyncpa [#allocation3], 0  ;;  %s6009_s0 = inlined_call_operand.vmem [shape: bf16[200,256], index: 0, kind: input, shape index: {}]   ;;  %s6010_s1 = inlined_call_operand.vmem [shape: bf16[256,256], index: 1, kind: input, shape index: {}]   ;;  %s6011_s2 = inlined_call_operand.vmem [shape: f32[1,256], index: 2, kind: input, shape index: {}]   ;;  %s6012_s3 = inlined_call_operand.vmem [shape: f32[1,256], index: 3, kind: input, shape index: {}]   ;;  %s6013_s4 = inlined_call_operand.vmem [shape: f32[1,256], index: 4, kind: input, shape index: {}]   ;;  %s6014_s5 = inlined_call_operand.vmem [shape: bf16[256,256], index: 5, kind: input, shape index: {}]   ;;  %s6015_s6 = inlined_call_operand.vmem [shape: f32[1,256], index: 6, kind: input, shape index: {}]   ;;  %s6016_s7 = inlined_call_operand.vmem [shape: f32[1,256], index: 7, kind: input, shape index: {}]   ;;  %s6017_s8 = inlined_call_operand.vmem [shape: f32[1,256], index: 8, kind: input, shape index: {}]   ;;  %s6018_s9 = inlined_call_operand.hbm [shape: bf16[256,256], index: 9, kind: input, shape index: {}]   ;;  %s6019_s10 = inlined_call_operand.vmem [shape: f32[1,256], index: 10, kind: input, shape index: {}]   ;;  %s6020_s11 = inlined_call_operand.vmem [shape: f32[1,256], index: 11, kind: input, shape index: {}]   ;;  %s6021_s12 = inlined_call_operand.vmem [shape: f32[1,256], index: 12, kind: input, shape index: {}]   ;;  %s6022_s13 = inlined_call_operand.hbm [shape: f32[200,256], index: 13, kind: output, shape index: {}]  }
   0x1   :  { %19 = vsyncpa [#allocation4], 0  ;;  %s3688_s25 = smov [#allocation2]   ;;  %s3640_s29 = scalar_lea.hbm %s6018_s9, 4096 }
   0x2   :  { %s43_s26 = sshll.u32 %s3688_s25, 4  ;;  %p3641_p0 = scmp.ne.s32.totalorder %s6018_s9, %s3640_s29  ;;  %s44_s26 = int_to_ptr.vmem [resolvable:$true] %s43_s26 }
   0x3   :  { %p3644_p1 = scmp.lt.u32.totalorder %s3640_s29, %s6018_s9 }
   0x5   :  { %p3646_p2 = pnand %p3644_p1, %p3641_p0 }
   0x7   :  { %3649 = shalt.err (!%p3646_p2)
}
   0x8   :  { %s3650_s17 = scalar_lea.vmem %s44_s26, 4096  ;;  %p3655_p4 = scmp.lt.s32.totalorder %s44_s26, %s44_s26 }
   0x9   :  { %p3651_p3 = scmp.ne.s32.totalorder %s44_s26, %s3650_s17  ;;  %p3656_p5 = scmp.lt.s32.totalorder %s3650_s17, %s3650_s17 }
   0xb   :  { %p3657_p6 = por %p3656_p5, %p3655_p4 }
   0xd   :  { %p3658_p7 = pnand %p3657_p6, %p3651_p3 }
   0xf   :  { %3661 = shalt.err (!%p3658_p7)
}
  0x10   :  { %s3689_s18 = smov 128   ;;  %s3690_s19 = smov 8  }
  0x11   :  { %49 = dma.hbm_to_vmem [thread:$0]  %s6018_s9, 4096, %s44_s26, [#allocation3], %s3689_s18, %s3689_s18, %s3690_s19  }
  0x12   :  { %3684 = dma.done.wait [#allocation3], 4096  }
  0x13   :  { %3685 = vsyncadd [#allocation3], 4294963200  ;;  %v3308_v0 = vld [vmem:[%s6010_s1 + $0x4] ss:$8 sps:$4 sm:$0xff]   ;;  %v3310_v1 = vld [vmem:[%s6010_s1] ss:$8 sps:$4 sm:$0xff]   ;;  %v118_v59 = vlaneseq }
  0x14   :  { %415 = vmatprep.subr.bf16.mxu0 %v3308_v0  ;;  %v3311_v2 = vld [vmem:[%s6010_s1 + $0x14] ss:$8 sps:$4 sm:$0xff]   ;;  %v3313_v3 = vld [vmem:[%s6010_s1 + $0x10] ss:$8 sps:$4 sm:$0xff]   ;;  %v3314_v4 = vld [vmem:[%s6010_s1 + $0x24] ss:$8 sps:$4 sm:$0xff]  }
  0x15   :  { %416 = vmatpush1.bf16.msra.mxu0 %v3310_v1  ;;  %v3316_v5 = vld [vmem:[%s6010_s1 + $0x20] ss:$8 sps:$4 sm:$0xff]   ;;  %v3317_v6 = vld [vmem:[%s6010_s1 + $0x34] ss:$8 sps:$4 sm:$0xff]   ;;  %v3319_v7 = vld [vmem:[%s6010_s1 + $0x30] ss:$8 sps:$4 sm:$0xff]  }
  0x16   :  { %417 = vmatprep.subr.bf16.mxu0 %v3311_v2  ;;  %v3320_v8 = vld [vmem:[%s6010_s1 + $0x44] ss:$8 sps:$4 sm:$0xff]   ;;  %v3322_v9 = vld [vmem:[%s6010_s1 + $0x40] ss:$8 sps:$4 sm:$0xff]   ;;  %v3323_v10 = vld [vmem:[%s6010_s1 + $0x54] ss:$8 sps:$4 sm:$0xff]  }
  0x17   :  { %v3325_v11 = vld [vmem:[%s6010_s1 + $0x50] ss:$8 sps:$4 sm:$0xff]   ;;  %v3326_v12 = vld [vmem:[%s6010_s1 + $0x64] ss:$8 sps:$4 sm:$0xff]   ;;  %v3328_v14 = vld [vmem:[%s6010_s1 + $0x60] ss:$8 sps:$4 sm:$0xff]  }
  0x18   :  { %v3358_v13 = vld [vmem:[%s6009_s0 + $0x4] ss:$8 sps:$4 sm:$0xff]   ;;  %v3329_v15 = vld [vmem:[%s6010_s1 + $0x74] ss:$8 sps:$4 sm:$0xff]   ;;  %v3331_v16 = vld [vmem:[%s6010_s1 + $0x70] ss:$8 sps:$4 sm:$0xff]  }
  0x19   :  { %418 = vmatpush1.bf16.msra.mxu0 %v3313_v3  ;;  %447 = vmatprep.mubr.bf16.mxu0 %v3358_v13  ;;  %v3332_v17 = vld [vmem:[%s6010_s1 + $0x84] ss:$8 sps:$4 sm:$0xff]   ;;  %v3334_v18 = vld [vmem:[%s6010_s1 + $0x80] ss:$8 sps:$4 sm:$0xff]   ;;  %v3335_v19 = vld [vmem:[%s6010_s1 + $0x94] ss:$8 sps:$4 sm:$0xff]  }
  0x1a   :  { %419 = vmatprep.subr.bf16.mxu0 %v3314_v4  ;;  %v3337_v20 = vld [vmem:[%s6010_s1 + $0x90] ss:$8 sps:$4 sm:$0xff]   ;;  %v3338_v21 = vld [vmem:[%s6010_s1 + $0xa4] ss:$8 sps:$4 sm:$0xff]   ;;  %v3340_v22 = vld [vmem:[%s6010_s1 + $0xa0] ss:$8 sps:$4 sm:$0xff]  }
  0x1b   :  { %v3341_v23 = vld [vmem:[%s6010_s1 + $0xb4] ss:$8 sps:$4 sm:$0xff]   ;;  %v3343_v24 = vld [vmem:[%s6010_s1 + $0xb0] ss:$8 sps:$4 sm:$0xff]   ;;  %v3344_v25 = vld [vmem:[%s6010_s1 + $0xc4] ss:$8 sps:$4 sm:$0xff]  }
  0x1c   :  { %v3346_v26 = vld [vmem:[%s6010_s1 + $0xc0] ss:$8 sps:$4 sm:$0xff]   ;;  %v3347_v27 = vld [vmem:[%s6010_s1 + $0xd4] ss:$8 sps:$4 sm:$0xff]   ;;  %v3349_v28 = vld [vmem:[%s6010_s1 + $0xd0] ss:$8 sps:$4 sm:$0xff]  }
  0x1d   :  { %420 = vmatpush1.bf16.msra.mxu0 %v3316_v5  ;;  %v3350_v29 = vld [vmem:[%s6010_s1 + $0xe4] ss:$8 sps:$4 sm:$0xff]   ;;  %v3352_v30 = vld [vmem:[%s6010_s1 + $0xe0] ss:$8 sps:$4 sm:$0xff]   ;;  %v3353_v31 = vld [vmem:[%s6010_s1 + $0xf4] ss:$8 sps:$4 sm:$0xff]  }
  0x1e   :  { %421 = vmatprep.subr.bf16.mxu0 %v3317_v6  ;;  %v3355_v32 = vld [vmem:[%s6010_s1 + $0xf0] ss:$8 sps:$4 sm:$0xff]   ;;  %v3356_v33 = vld [vmem:[%s6009_s0] ss:$8 sps:$4 sm:$0xff]   ;;  %v3359_v34 = vld [vmem:[%s6009_s0 + $0x14] ss:$8 sps:$4 sm:$0xff]  }
  0x1f   :  { %v3361_v35 = vld [vmem:[%s6009_s0 + $0x10] ss:$8 sps:$4 sm:$0xff]   ;;  %v3362_v36 = vld [vmem:[%s6009_s0 + $0x24] ss:$8 sps:$4 sm:$0xff]   ;;  %v3364_v37 = vld [vmem:[%s6009_s0 + $0x20] ss:$8 sps:$4 sm:$0xff]  }
  0x20   :  { %v3365_v38 = vld [vmem:[%s6009_s0 + $0x34] ss:$8 sps:$4 sm:$0xff]   ;;  %v3367_v39 = vld [vmem:[%s6009_s0 + $0x30] ss:$8 sps:$4 sm:$0xff]   ;;  %v3368_v40 = vld [vmem:[%s6009_s0 + $0x44] ss:$8 sps:$4 sm:$0xff]  }
  0x21   :  { %422 = vmatpush1.bf16.msra.mxu0 %v3319_v7  ;;  %v3370_v41 = vld [vmem:[%s6009_s0 + $0x40] ss:$8 sps:$4 sm:$0xff]   ;;  %v3371_v42 = vld [vmem:[%s6009_s0 + $0x54] ss:$8 sps:$4 sm:$0xff]   ;;  %v3373_v43 = vld [vmem:[%s6009_s0 + $0x50] ss:$8 sps:$4 sm:$0xff]  }
  0x22   :  { %423 = vmatprep.subr.bf16.mxu0 %v3320_v8  ;;  %v3374_v44 = vld [vmem:[%s6009_s0 + $0x64] ss:$8 sps:$4 sm:$0xff]   ;;  %v3376_v45 = vld [vmem:[%s6009_s0 + $0x60] ss:$8 sps:$4 sm:$0xff]   ;;  %v3377_v46 = vld [vmem:[%s6009_s0 + $0x74] ss:$8 sps:$4 sm:$0xff]  }
  0x23   :  { %v3379_v47 = vld [vmem:[%s6009_s0 + $0x70] ss:$8 sps:$4 sm:$0xff]   ;;  %v3380_v48 = vld [vmem:[%s6009_s0 + $0x84] ss:$8 sps:$4 sm:$0xff]   ;;  %v3382_v49 = vld [vmem:[%s6009_s0 + $0x80] ss:$8 sps:$4 sm:$0xff]  }
  0x24   :  { %v3383_v50 = vld [vmem:[%s6009_s0 + $0x94] ss:$8 sps:$4 sm:$0xff]   ;;  %v3385_v51 = vld [vmem:[%s6009_s0 + $0x90] ss:$8 sps:$4 sm:$0xff]   ;;  %v3386_v52 = vld [vmem:[%s6009_s0 + $0xa4] ss:$8 sps:$4 sm:$0xff]  }
  0x25   :  { %424 = vmatpush1.bf16.msra.mxu0 %v3322_v9  ;;  %v3388_v53 = vld [vmem:[%s6009_s0 + $0xa0] ss:$8 sps:$4 sm:$0xff]   ;;  %v3389_v54 = vld [vmem:[%s6009_s0 + $0xb4] ss:$8 sps:$4 sm:$0xff]   ;;  %v3391_v56 = vld [vmem:[%s6009_s0 + $0xb0] ss:$8 sps:$4 sm:$0xff]  }
  0x26   :  { %425 = vmatprep.subr.bf16.mxu0 %v3323_v10  ;;  %v83_v55 = vld [vmem:[%s6009_s0 + $0xc0] sm:$0xff]  ;;  %v119_v60 = vshrl.u32 %v118_v59, 7 }
  0x27   :  { %v3173_v57 = vcombine.high %v83_v55, %v83_v55  ;;  %v3172_v58 = vcombine.low %v83_v55, %v83_v55  ;;  %v116_v62 = vld [vmem:[%s6011_s2] sm:$0x3] }
  0x28   :  { %v3947_v61 = vsub.s32 0, %v119_v60  ;;  %v3952_v63 = vsub.s32 1, %v119_v60 }
  0x29   :  { %426 = vmatpush1.bf16.msra.mxu0 %v3325_v11 }
  0x2a   :  { %427 = vmatprep.subr.bf16.mxu0 %v3326_v12  ;;  %6050 = vst [vmem:[#allocation8_spill] sm:$0xff] %v3947_v61  ;;  %6051 = vst [vmem:[#allocation9_spill] sm:$0xff] %v3952_v63  ;;  %v3955_v0 = vrot.slane %v116_v62, %v3947_v61  ;;  %v3958_v1 = vrot.slane %v116_v62, %v3952_v63 }
  0x2d   :  { %428 = vmatpush1.bf16.msra.mxu0 %v3328_v14 }
  0x2e   :  { %429 = vmatprep.subr.bf16.mxu0 %v3329_v15 }
  0x31   :  { %430 = vmatpush1.bf16.msra.mxu0 %v3331_v16 }
  0x32   :  { %431 = vmatprep.subr.bf16.mxu0 %v3332_v17 }
  0x35   :  { %432 = vmatpush1.bf16.msra.mxu0 %v3334_v18 }
  0x36   :  { %433 = vmatprep.subr.bf16.mxu0 %v3335_v19 }
  0x39   :  { %434 = vmatpush1.bf16.msra.mxu0 %v3337_v20 }
  0x3a   :  { %435 = vmatprep.subr.bf16.mxu0 %v3338_v21 }
  0x3d   :  { %436 = vmatpush1.bf16.msra.mxu0 %v3340_v22 }
  0x3e   :  { %437 = vmatprep.subr.bf16.mxu0 %v3341_v23 }
  0x41   :  { %438 = vmatpush1.bf16.msra.mxu0 %v3343_v24 }
  0x42   :  { %439 = vmatprep.subr.bf16.mxu0 %v3344_v25 }
  0x45   :  { %440 = vmatpush1.bf16.msra.mxu0 %v3346_v26 }
  0x46   :  { %441 = vmatprep.subr.bf16.mxu0 %v3347_v27 }
  0x49   :  { %442 = vmatpush1.bf16.msra.mxu0 %v3349_v28 }
  0x4a   :  { %443 = vmatprep.subr.bf16.mxu0 %v3350_v29 }
  0x4d   :  { %444 = vmatpush1.bf16.msra.mxu0 %v3352_v30 }
  0x4e   :  { %445 = vmatprep.subr.bf16.mxu0 %v3353_v31 }
  0x51   :  { %446 = vmatpush1.bf16.msra.mxu0 %v3355_v32 }
  0x54   :  { %448 = vmatmul.mubr.bf16.vlgmr.msra.gmra.mrb[0].mxu0 %v3356_v33 }
  0x55   :  { %457 = vmatprep.mubr.bf16.mxu0 %v3359_v34 }
  0x5c   :  { %458 = vmatmul.mubr.bf16.gmra.mrb[4].mxu0 %v3361_v35 }
  0x5d   :  { %467 = vmatprep.mubr.bf16.mxu0 %v3362_v36 }
  0x64   :  { %468 = vmatmul.mubr.bf16.gmra.mrb[8].mxu0 %v3364_v37 }
  0x65   :  { %477 = vmatprep.mubr.bf16.mxu0 %v3365_v38 }
  0x6c   :  { %478 = vmatmul.mubr.bf16.gmra.mrb[12].mxu0 %v3367_v39 }
  0x6d   :  { %487 = vmatprep.mubr.bf16.mxu0 %v3368_v40 }
  0x74   :  { %488 = vmatmul.mubr.bf16.gmra.mrb[16].mxu0 %v3370_v41 }
  0x75   :  { %497 = vmatprep.mubr.bf16.mxu0 %v3371_v42 }
  0x7c   :  { %498 = vmatmul.mubr.bf16.gmra.mrb[20].mxu0 %v3373_v43 }
  0x7d   :  { %507 = vmatprep.mubr.bf16.mxu0 %v3374_v44 }
  0x84   :  { %508 = vmatmul.mubr.bf16.gmra.mrb[24].mxu0 %v3376_v45 }
  0x85   :  { %517 = vmatprep.mubr.bf16.mxu0 %v3377_v46 }
  0x8c   :  { %518 = vmatmul.mubr.bf16.gmra.mrb[28].mxu0 %v3379_v47 }
  0x8d   :  { %527 = vmatprep.mubr.bf16.mxu0 %v3380_v48 }
  0x94   :  { %528 = vmatmul.mubr.bf16.gmra.mrb[32].mxu0 %v3382_v49 }
  0x95   :  { %537 = vmatprep.mubr.bf16.mxu0 %v3383_v50 }
  0x9c   :  { %538 = vmatmul.mubr.bf16.gmra.mrb[36].mxu0 %v3385_v51 }
  0x9d   :  { %547 = vmatprep.mubr.bf16.mxu0 %v3386_v52 }
  0xa4   :  { %548 = vmatmul.mubr.bf16.gmra.mrb[40].mxu0 %v3388_v53 }
  0xa5   :  { %557 = vmatprep.mubr.bf16.mxu0 %v3389_v54 }
  0xac   :  { %558 = vmatmul.mubr.bf16.gmra.mrb[44].mxu0 %v3391_v56 }
  0xad   :  { %567 = vmatprep.mubr.bf16.mxu0 %v3173_v57 }
  0xb4   :  { %568 = vmatmul.mubr.bf16.gmra.mrb[48].mxu0 %v3172_v58 }
 0x127   :  { %v449_v2 = vpop.f32.mrb[0].mxu0 }
 0x128   :  { %v3961_v3 = vadd.f32 %v449_v2, %v3955_v0  ;;  %v451_v4 = vpop.f32.mrb[1].mxu0 }
 0x129   :  { %v3964_v5 = vadd.f32 %v451_v4, %v3958_v1  ;;  %v453_v6 = vpop.f32.mrb[2].mxu0 }
 0x12a   :  { %v455_v7 = vpop.f32.mrb[3].mxu0  ;;  %v3967_v8 = vadd.f32 %v453_v6, %v3955_v0 }
 0x12b   :  { %v3970_v9 = vadd.f32 %v455_v7, %v3958_v1  ;;  %v576_v10 = vadd.f32 %v3964_v5, %v3961_v3 }
 0x12d   :  { %577 = vadd.xlane.f32.xlu0 %v576_v10  ;;  %v579_v12 = vadd.f32 %v3970_v9, %v3967_v8 }
 0x12f   :  { %v459_v11 = vpop.f32.mrb[4].mxu0 }
 0x130   :  { %v3977_v13 = vadd.f32 %v459_v11, %v3955_v0  ;;  %v461_v14 = vpop.f32.mrb[5].mxu0 }
 0x131   :  { %v3980_v15 = vadd.f32 %v461_v14, %v3958_v1  ;;  %580 = vadd.xlane.f32.xlu0 %v579_v12  ;;  %v463_v16 = vpop.f32.mrb[6].mxu0 }
 0x132   :  { %v3983_v17 = vadd.f32 %v463_v16, %v3955_v0  ;;  %v465_v18 = vpop.f32.mrb[7].mxu0 }
 0x133   :  { %v3986_v19 = vadd.f32 %v465_v18, %v3958_v1  ;;  %v582_v20 = vadd.f32 %v3980_v15, %v3977_v13 }
 0x135   :  { %583 = vadd.xlane.f32.xlu1 %v582_v20  ;;  %v585_v21 = vadd.f32 %v3986_v19, %v3983_v17 }
 0x137   :  { %v469_v22 = vpop.f32.mrb[8].mxu0 }
 0x138   :  { %v3993_v23 = vadd.f32 %v469_v22, %v3955_v0  ;;  %v471_v24 = vpop.f32.mrb[9].mxu0 }
 0x139   :  { %v3996_v25 = vadd.f32 %v471_v24, %v3958_v1  ;;  %v473_v26 = vpop.f32.mrb[10].mxu0  ;;  %586 = vadd.xlane.f32.xlu1 %v585_v21 }
 0x13a   :  { %v3999_v27 = vadd.f32 %v473_v26, %v3955_v0  ;;  %v475_v28 = vpop.f32.mrb[11].mxu0 }
 0x13b   :  { %v4002_v29 = vadd.f32 %v475_v28, %v3958_v1  ;;  %v588_v30 = vadd.f32 %v3996_v25, %v3993_v23 }
 0x13d   :  { %589 = vadd.xlane.f32.xlu0 %v588_v30  ;;  %v591_v31 = vadd.f32 %v4002_v29, %v3999_v27 }
 0x13f   :  { %v479_v32 = vpop.f32.mrb[12].mxu0  ;;  %592 = vadd.xlane.f32.xlu1 %v591_v31 }
 0x140   :  { %v4009_v33 = vadd.f32 %v479_v32, %v3955_v0  ;;  %v481_v34 = vpop.f32.mrb[13].mxu0 }
 0x141   :  { %v4012_v35 = vadd.f32 %v481_v34, %v3958_v1  ;;  %v483_v36 = vpop.f32.mrb[14].mxu0 }
 0x142   :  { %v4015_v37 = vadd.f32 %v483_v36, %v3955_v0  ;;  %v485_v38 = vpop.f32.mrb[15].mxu0 }
 0x143   :  { %v4018_v39 = vadd.f32 %v485_v38, %v3958_v1  ;;  %v594_v40 = vadd.f32 %v4012_v35, %v4009_v33 }
 0x145   :  { %595 = vadd.xlane.f32.xlu0 %v594_v40  ;;  %v597_v41 = vadd.f32 %v4018_v39, %v4015_v37 }
 0x147   :  { %v489_v42 = vpop.f32.mrb[16].mxu0  ;;  %598 = vadd.xlane.f32.xlu1 %v597_v41 }
 0x148   :  { %v4025_v43 = vadd.f32 %v489_v42, %v3955_v0  ;;  %v491_v44 = vpop.f32.mrb[17].mxu0 }
 0x149   :  { %v4028_v45 = vadd.f32 %v491_v44, %v3958_v1  ;;  %v493_v46 = vpop.f32.mrb[18].mxu0 }
 0x14a   :  { %v4031_v47 = vadd.f32 %v493_v46, %v3955_v0  ;;  %v495_v48 = vpop.f32.mrb[19].mxu0 }
 0x14b   :  { %v4034_v49 = vadd.f32 %v495_v48, %v3958_v1  ;;  %v600_v50 = vadd.f32 %v4028_v45, %v4025_v43 }
 0x14d   :  { %601 = vadd.xlane.f32.xlu0 %v600_v50  ;;  %v603_v51 = vadd.f32 %v4034_v49, %v4031_v47 }
 0x14f   :  { %v499_v52 = vpop.f32.mrb[20].mxu0  ;;  %604 = vadd.xlane.f32.xlu1 %v603_v51 }
 0x150   :  { %v4041_v53 = vadd.f32 %v499_v52, %v3955_v0  ;;  %v501_v54 = vpop.f32.mrb[21].mxu0 }
 0x151   :  { %v4044_v55 = vadd.f32 %v501_v54, %v3958_v1  ;;  %v503_v56 = vpop.f32.mrb[22].mxu0 }
 0x152   :  { %v4047_v57 = vadd.f32 %v503_v56, %v3955_v0  ;;  %v505_v58 = vpop.f32.mrb[23].mxu0 }
 0x153   :  { %v4050_v59 = vadd.f32 %v505_v58, %v3958_v1  ;;  %v606_v60 = vadd.f32 %v4044_v55, %v4041_v53 }
 0x155   :  { %607 = vadd.xlane.f32.xlu0 %v606_v60  ;;  %v609_v62 = vadd.f32 %v4050_v59, %v4047_v57 }
 0x157   :  { %v509_v2 = vpop.f32.mrb[24].mxu0  ;;  %610 = vadd.xlane.f32.xlu1 %v609_v62 }
 0x158   :  { %v4057_v4 = vadd.f32 %v509_v2, %v3955_v0  ;;  %v511_v6 = vpop.f32.mrb[25].mxu0 }
 0x159   :  { %v4060_v7 = vadd.f32 %v511_v6, %v3958_v1  ;;  %v513_v10 = vpop.f32.mrb[26].mxu0 }
 0x15a   :  { %v4063_v11 = vadd.f32 %v513_v10, %v3955_v0  ;;  %v515_v12 = vpop.f32.mrb[27].mxu0 }
 0x15b   :  { %v4066_v14 = vadd.f32 %v515_v12, %v3958_v1  ;;  %v612_v16 = vadd.f32 %v4060_v7, %v4057_v4 }
 0x15d   :  { %613 = vadd.xlane.f32.xlu0 %v612_v16  ;;  %v615_v18 = vadd.f32 %v4066_v14, %v4063_v11 }
 0x15f   :  { %v519_v20 = vpop.f32.mrb[28].mxu0  ;;  %616 = vadd.xlane.f32.xlu1 %v615_v18 }
 0x160   :  { %v4073_v21 = vadd.f32 %v519_v20, %v3955_v0  ;;  %v521_v22 = vpop.f32.mrb[29].mxu0 }
 0x161   :  { %v4076_v24 = vadd.f32 %v521_v22, %v3958_v1  ;;  %v523_v26 = vpop.f32.mrb[30].mxu0 }
 0x162   :  { %v4079_v28 = vadd.f32 %v523_v26, %v3955_v0  ;;  %v525_v30 = vpop.f32.mrb[31].mxu0 }
 0x163   :  { %v4082_v31 = vadd.f32 %v525_v30, %v3958_v1  ;;  %v618_v32 = vadd.f32 %v4076_v24, %v4073_v21 }
 0x165   :  { %619 = vadd.xlane.f32.xlu0 %v618_v32  ;;  %v621_v34 = vadd.f32 %v4082_v31, %v4079_v28 }
 0x167   :  { %v529_v36 = vpop.f32.mrb[32].mxu0  ;;  %622 = vadd.xlane.f32.xlu1 %v621_v34 }
 0x168   :  { %v4089_v38 = vadd.f32 %v529_v36, %v3955_v0  ;;  %v531_v40 = vpop.f32.mrb[33].mxu0 }
 0x169   :  { %v4092_v41 = vadd.f32 %v531_v40, %v3958_v1  ;;  %v533_v42 = vpop.f32.mrb[34].mxu0 }
 0x16a   :  { %v4095_v44 = vadd.f32 %v533_v42, %v3955_v0  ;;  %v535_v46 = vpop.f32.mrb[35].mxu0 }
 0x16b   :  { %v4098_v48 = vadd.f32 %v535_v46, %v3958_v1  ;;  %v624_v50 = vadd.f32 %v4092_v41, %v4089_v38 }
 0x16d   :  { %625 = vadd.xlane.f32.xlu0 %v624_v50  ;;  %v627_v51 = vadd.f32 %v4098_v48, %v4095_v44 }
 0x16f   :  { %v539_v52 = vpop.f32.mrb[36].mxu0  ;;  %628 = vadd.xlane.f32.xlu1 %v627_v51 }
 0x170   :  { %v4105_v54 = vadd.f32 %v539_v52, %v3955_v0  ;;  %v541_v56 = vpop.f32.mrb[37].mxu0 }
 0x171   :  { %v4108_v58 = vadd.f32 %v541_v56, %v3958_v1  ;;  %v543_v60 = vpop.f32.mrb[38].mxu0 }
 0x172   :  { %v4111_v62 = vadd.f32 %v543_v60, %v3955_v0  ;;  %v545_v2 = vpop.f32.mrb[39].mxu0 }
 0x173   :  { %v4114_v6 = vadd.f32 %v545_v2, %v3958_v1  ;;  %v630_v10 = vadd.f32 %v4108_v58, %v4105_v54 }
 0x175   :  { %631 = vadd.xlane.f32.xlu0 %v630_v10  ;;  %v633_v12 = vadd.f32 %v4114_v6, %v4111_v62  ;;  %v3394_v10 = vld [vmem:[%s6014_s5 + $0x4] ss:$8 sps:$4 sm:$0xff]  }
 0x176   :  { %1381 = vmatprep.subr.bf16.mxu1 %v3394_v10  ;;  %v3409_v10 = vld [vmem:[%s6014_s5 + $0x54] ss:$8 sps:$4 sm:$0xff]  }
 0x177   :  { %v549_v16 = vpop.f32.mrb[40].mxu0  ;;  %634 = vadd.xlane.f32.xlu1 %v633_v12  ;;  %v3396_v12 = vld [vmem:[%s6014_s5] ss:$8 sps:$4 sm:$0xff]  }
 0x178   :  { %v4121_v18 = vadd.f32 %v549_v16, %v3955_v0  ;;  %v551_v20 = vpop.f32.mrb[41].mxu0  ;;  %v3397_v16 = vld [vmem:[%s6014_s5 + $0x14] ss:$8 sps:$4 sm:$0xff]   ;;  %1382 = vmatpush1.bf16.msra.mxu1 %v3396_v12  ;;  %v3411_v12 = vld [vmem:[%s6014_s5 + $0x50] ss:$8 sps:$4 sm:$0xff]  }
 0x179   :  { %v4124_v22 = vadd.f32 %v551_v20, %v3958_v1  ;;  %v553_v26 = vpop.f32.mrb[42].mxu0  ;;  %v3399_v20 = vld [vmem:[%s6014_s5 + $0x10] ss:$8 sps:$4 sm:$0xff]   ;;  %1383 = vmatprep.subr.bf16.mxu1 %v3397_v16  ;;  %v3412_v16 = vld [vmem:[%s6014_s5 + $0x64] ss:$8 sps:$4 sm:$0xff]  }
 0x17a   :  { %v4127_v30 = vadd.f32 %v553_v26, %v3955_v0  ;;  %v555_v32 = vpop.f32.mrb[43].mxu0  ;;  %v3400_v26 = vld [vmem:[%s6014_s5 + $0x24] ss:$8 sps:$4 sm:$0xff]  }
 0x17b   :  { %v4130_v34 = vadd.f32 %v555_v32, %v3958_v1  ;;  %v636_v36 = vadd.f32 %v4124_v22, %v4121_v18  ;;  %v3402_v32 = vld [vmem:[%s6014_s5 + $0x20] ss:$8 sps:$4 sm:$0xff]  }
 0x17c   :  { %1384 = vmatpush1.bf16.msra.mxu1 %v3399_v20  ;;  %v3414_v20 = vld [vmem:[%s6014_s5 + $0x60] ss:$8 sps:$4 sm:$0xff]  }
 0x17d   :  { %637 = vadd.xlane.f32.xlu0 %v636_v36  ;;  %v639_v40 = vadd.f32 %v4130_v34, %v4127_v30  ;;  %1385 = vmatprep.subr.bf16.mxu1 %v3400_v26  ;;  %v3403_v36 = vld [vmem:[%s6014_s5 + $0x34] ss:$8 sps:$4 sm:$0xff]  }
 0x17e   :  { %v3415_v26 = vld [vmem:[%s6014_s5 + $0x74] ss:$8 sps:$4 sm:$0xff]  }
 0x17f   :  { %640 = vadd.xlane.f32.xlu1 %v639_v40  ;;  %v559_v42 = vpop.f32.mrb[44].mxu0  ;;  %v3405_v40 = vld [vmem:[%s6014_s5 + $0x30] ss:$8 sps:$4 sm:$0xff]  }
 0x180   :  { %v561_v46 = vpop.f32.mrb[45].mxu0  ;;  %1386 = vmatpush1.bf16.msra.mxu1 %v3402_v32  ;;  %v3417_v32 = vld [vmem:[%s6014_s5 + $0x70] ss:$8 sps:$4 sm:$0xff]  }
 0x181   :  { %v563_v50 = vpop.f32.mrb[46].mxu0  ;;  %1387 = vmatprep.subr.bf16.mxu1 %v3403_v36  ;;  %v3418_v36 = vld [vmem:[%s6014_s5 + $0x84] ss:$8 sps:$4 sm:$0xff]  }
 0x182   :  { %v4136_v51 = vpop.f32.mrb[47].mxu0 }
 0x184   :  { %1388 = vmatpush1.bf16.msra.mxu1 %v3405_v40  ;;  %v3420_v40 = vld [vmem:[%s6014_s5 + $0x80] ss:$8 sps:$4 sm:$0xff]  }
 0x187   :  { %v4138_v52 = vpop.f32.mrb[48].mxu0 }
 0x188   :  { %v4140_v56 = vpop.f32.mrb[49].mxu0 }
 0x189   :  { %v573_v60 = vpop.f32.mrb[50].mxu0 }
 0x18a   :  { %v574_v2 = vpop.f32.mrb[51].mxu0  ;;  %v3406_v60 = vld [vmem:[%s6014_s5 + $0x44] ss:$8 sps:$4 sm:$0xff]  }
 0x18b   :  { %v3408_v2 = vld [vmem:[%s6014_s5 + $0x40] ss:$8 sps:$4 sm:$0xff]   ;;  %1389 = vmatprep.subr.bf16.mxu1 %v3406_v60 }
 0x18c   :  { %1390 = vmatpush1.bf16.msra.mxu1 %v3408_v2 }
 0x18d   :  { %1391 = vmatprep.subr.bf16.mxu1 %v3409_v10 }
 0x190   :  { %1392 = vmatpush1.bf16.msra.mxu1 %v3411_v12 }
 0x191   :  { %1393 = vmatprep.subr.bf16.mxu1 %v3412_v16 }
 0x194   :  { %1394 = vmatpush1.bf16.msra.mxu1 %v3414_v20  ;;  %v4203_v20 = vadd.f32 %v559_v42, %v3955_v0 }
 0x195   :  { %1395 = vmatprep.subr.bf16.mxu1 %v3415_v26 }
 0x198   :  { %1396 = vmatpush1.bf16.msra.mxu1 %v3417_v32  ;;  %v4206_v32 = vadd.f32 %v561_v46, %v3958_v1 }
 0x199   :  { %1397 = vmatprep.subr.bf16.mxu1 %v3418_v36 }
 0x19a   :  { %v642_v46 = vadd.f32 %v4206_v32, %v4203_v20 }
 0x19c   :  { %1398 = vmatpush1.bf16.msra.mxu1 %v3420_v40 }
 0x1ba   :  { %v578_v60 = vpop.xlane.xlu0 %577 }
 0x1bb   :  { %v652_v2 = vmul.f32 0.00390625, %v578_v60 }
 0x1bd   :  { %v4197_v10 = vsub.f32 %v3961_v3, %v652_v2  ;;  %v4200_v12 = vsub.f32 %v3964_v5, %v652_v2 }
 0x1be   :  { %v581_v16 = vpop.xlane.xlu0 %580 }
 0x1bf   :  { %6052 = vst [vmem:[#allocation10_spill] sm:$0xff] %v4197_v10  ;;  %6053 = vst [vmem:[#allocation11_spill] sm:$0xff] %v4200_v12  ;;  %v653_v26 = vmul.f32 0.00390625, %v581_v16  ;;  %v727_v36 = vmul.f32 %v4197_v10, %v4197_v10  ;;  %v728_v40 = vmul.f32 %v4200_v12, %v4200_v12  ;;  %v4225_v12 = vadd.f32 %v563_v50, %v3955_v0 }
 0x1c1   :  { %v4213_v3 = vsub.f32 %v3967_v8, %v653_v26  ;;  %v4216_v5 = vsub.f32 %v3970_v9, %v653_v26  ;;  %v777_v60 = vadd.f32 %v728_v40, %v727_v36  ;;  %v4235_v26 = vadd.f32 %v4136_v51, %v3958_v1 }
 0x1c2   :  { %v584_v2 = vpop.xlane.xlu1 %583 }
 0x1c3   :  { %v654_v42 = vmul.f32 0.00390625, %v584_v2  ;;  %778 = vadd.xlane.f32.xlu0 %v777_v60  ;;  %v729_v16 = vmul.f32 %v4213_v3, %v4213_v3  ;;  %v730_v10 = vmul.f32 %v4216_v5, %v4216_v5  ;;  %v645_v51 = vadd.f32 %v4235_v26, %v4225_v12 }
 0x1c5   :  { %v4228_v8 = vsub.f32 %v3977_v13, %v654_v42  ;;  %v4231_v9 = vsub.f32 %v3980_v15, %v654_v42  ;;  %v780_v36 = vadd.f32 %v730_v10, %v729_v16 }
 0x1c6   :  { %v587_v40 = vpop.xlane.xlu1 %586 }
 0x1c7   :  { %v655_v60 = vmul.f32 0.00390625, %v587_v40  ;;  %643 = vadd.xlane.f32.xlu0 %v642_v46  ;;  %781 = vadd.xlane.f32.xlu1 %v780_v36  ;;  %v731_v2 = vmul.f32 %v4228_v8, %v4228_v8  ;;  %v732_v50 = vmul.f32 %v4231_v9, %v4231_v9 }
 0x1c9   :  { %v4242_v13 = vsub.f32 %v3983_v17, %v655_v60  ;;  %v4245_v15 = vsub.f32 %v3986_v19, %v655_v60  ;;  %v783_v42 = vadd.f32 %v732_v50, %v731_v2  ;;  %v4261_v50 = vadd.f32 %v4138_v52, %v3955_v0  ;;  %v3423_v52 = vld [vmem:[%s6014_s5 + $0x90] ss:$8 sps:$4 sm:$0xff]  }
 0x1ca   :  { %v590_v10 = vpop.xlane.xlu0 %589 }
 0x1cb   :  { %v656_v16 = vmul.f32 0.00390625, %v590_v10  ;;  %784 = vadd.xlane.f32.xlu0 %v783_v42  ;;  %646 = vadd.xlane.f32.xlu1 %v645_v51  ;;  %v733_v46 = vmul.f32 %v4242_v13, %v4242_v13  ;;  %v734_v36 = vmul.f32 %v4245_v15, %v4245_v15  ;;  %v4265_v42 = vadd.f32 %v4140_v56, %v3958_v1 }
 0x1cc   :  { %v593_v40 = vpop.xlane.xlu1 %592 }
 0x1cd   :  { %v4254_v17 = vsub.f32 %v3993_v23, %v656_v16  ;;  %v4257_v19 = vsub.f32 %v3996_v25, %v656_v16  ;;  %v657_v60 = vmul.f32 0.00390625, %v593_v40  ;;  %v786_v2 = vadd.f32 %v734_v36, %v733_v46 }
 0x1ce   :  { %v648_v36 = vadd.f32 %v4265_v42, %v4261_v50 }
 0x1cf   :  { %v4268_v51 = vsub.f32 %v3999_v27, %v657_v60  ;;  %v4271_v10 = vsub.f32 %v4002_v29, %v657_v60  ;;  %787 = vadd.xlane.f32.xlu1 %v786_v2  ;;  %v735_v23 = vmul.f32 %v4254_v17, %v4254_v17  ;;  %v736_v25 = vmul.f32 %v4257_v19, %v4257_v19  ;;  %v3421_v27 = vld [vmem:[%s6014_s5 + $0x94] ss:$8 sps:$4 sm:$0xff]  }
 0x1d0   :  { %1399 = vmatprep.subr.bf16.mxu1 %v3421_v27 }
 0x1d1   :  { %v789_v16 = vadd.f32 %v736_v25, %v735_v23  ;;  %v737_v0 = vmul.f32 %v4268_v51, %v4268_v51  ;;  %v738_v1 = vmul.f32 %v4271_v10, %v4271_v10  ;;  %1400 = vmatpush1.bf16.msra.mxu1 %v3423_v52  ;;  %v3424_v25 = vld [vmem:[%s6014_s5 + $0xa4] ss:$8 sps:$4 sm:$0xff]  }
 0x1d2   :  { %v596_v29 = vpop.xlane.xlu0 %595  ;;  %1401 = vmatprep.subr.bf16.mxu1 %v3424_v25 }
 0x1d3   :  { %v658_v56 = vmul.f32 0.00390625, %v596_v29  ;;  %790 = vadd.xlane.f32.xlu0 %v789_v16  ;;  %v792_v46 = vadd.f32 %v738_v1, %v737_v0  ;;  %v3426_v16 = vld [vmem:[%s6014_s5 + $0xa0] ss:$8 sps:$4 sm:$0xff]  }
 0x1d4   :  { %v599_v40 = vpop.xlane.xlu1 %598 }
 0x1d5   :  { %v4290_v60 = vsub.f32 %v4009_v33, %v658_v56  ;;  %v4293_v2 = vsub.f32 %v4012_v35, %v658_v56  ;;  %v659_v23 = vmul.f32 0.00390625, %v599_v40  ;;  %793 = vadd.xlane.f32.xlu1 %v792_v46  ;;  %1402 = vmatpush1.bf16.msra.mxu1 %v3426_v16  ;;  %v3429_v56 = vld [vmem:[%s6014_s5 + $0xb0] ss:$8 sps:$4 sm:$0xff]  }
 0x1d7   :  { %v4302_v0 = vsub.f32 %v4015_v37, %v659_v23  ;;  %v4305_v1 = vsub.f32 %v4018_v39, %v659_v23  ;;  %649 = vadd.xlane.f32.xlu0 %v648_v36  ;;  %v739_v33 = vmul.f32 %v4290_v60, %v4290_v60  ;;  %v740_v35 = vmul.f32 %v4293_v2, %v4293_v2  ;;  %v3427_v37 = vld [vmem:[%s6014_s5 + $0xb4] ss:$8 sps:$4 sm:$0xff]  }
 0x1d8   :  { %1403 = vmatprep.subr.bf16.mxu1 %v3427_v37 }
 0x1d9   :  { %v795_v27 = vadd.f32 %v740_v35, %v739_v33  ;;  %v741_v29 = vmul.f32 %v4302_v0, %v4302_v0  ;;  %v742_v52 = vmul.f32 %v4305_v1, %v4305_v1  ;;  %1404 = vmatpush1.bf16.msra.mxu1 %v3429_v56  ;;  %v3430_v33 = vld [vmem:[%s6014_s5 + $0xc4] ss:$8 sps:$4 sm:$0xff]  }
 0x1da   :  { %v602_v39 = vpop.xlane.xlu0 %601  ;;  %1405 = vmatprep.subr.bf16.mxu1 %v3430_v33 }
 0x1db   :  { %v660_v46 = vmul.f32 0.00390625, %v602_v39  ;;  %796 = vadd.xlane.f32.xlu1 %v795_v27  ;;  %v798_v36 = vadd.f32 %v742_v52, %v741_v29  ;;  %v3432_v29 = vld [vmem:[%s6014_s5 + $0xc0] ss:$8 sps:$4 sm:$0xff]   ;;  %v3433_v39 = vld [vmem:[%s6014_s5 + $0xd4] ss:$8 sps:$4 sm:$0xff]  }
 0x1dc   :  { %v605_v40 = vpop.xlane.xlu1 %604 }
 0x1dd   :  { %v4322_v23 = vsub.f32 %v4025_v43, %v660_v46  ;;  %v4325_v25 = vsub.f32 %v4028_v45, %v660_v46  ;;  %v661_v16 = vmul.f32 0.00390625, %v605_v40  ;;  %799 = vadd.xlane.f32.xlu0 %v798_v36  ;;  %1406 = vmatpush1.bf16.msra.mxu1 %v3432_v29  ;;  %v3435_v36 = vld [vmem:[%s6014_s5 + $0xd0] ss:$8 sps:$4 sm:$0xff]  }
 0x1de   :  { %1407 = vmatprep.subr.bf16.mxu1 %v3433_v39  ;;  %v3439_v39 = vld [vmem:[%s6014_s5 + $0xf4] ss:$8 sps:$4 sm:$0xff]  }
 0x1df   :  { %v4331_v35 = vsub.f32 %v4031_v47, %v661_v16  ;;  %v4334_v27 = vsub.f32 %v4034_v49, %v661_v16  ;;  %v743_v43 = vmul.f32 %v4322_v23, %v4322_v23  ;;  %v744_v45 = vmul.f32 %v4325_v25, %v4325_v25 }
 0x1e1   :  { %v801_v52 = vadd.f32 %v744_v45, %v743_v43  ;;  %v745_v37 = vmul.f32 %v4331_v35, %v4331_v35  ;;  %v746_v47 = vmul.f32 %v4334_v27, %v4334_v27  ;;  %1408 = vmatpush1.bf16.msra.mxu1 %v3435_v36  ;;  %v3436_v45 = vld [vmem:[%s6014_s5 + $0xe4] ss:$8 sps:$4 sm:$0xff]   ;;  %v3441_v36 = vld [vmem:[%s6014_s5 + $0xf0] ss:$8 sps:$4 sm:$0xff]  }
 0x1e2   :  { %v608_v49 = vpop.xlane.xlu0 %607  ;;  %1409 = vmatprep.subr.bf16.mxu1 %v3436_v45 }
 0x1e3   :  { %v662_v56 = vmul.f32 0.00390625, %v608_v49  ;;  %802 = vadd.xlane.f32.xlu1 %v801_v52  ;;  %v804_v46 = vadd.f32 %v746_v47, %v745_v37  ;;  %v3438_v37 = vld [vmem:[%s6014_s5 + $0xe0] ss:$8 sps:$4 sm:$0xff]  }
 0x1e4   :  { %v611_v40 = vpop.xlane.xlu1 %610 }
 0x1e5   :  { %v4354_v16 = vsub.f32 %v4041_v53, %v662_v56  ;;  %v4357_v33 = vsub.f32 %v4044_v55, %v662_v56  ;;  %v663_v43 = vmul.f32 0.00390625, %v611_v40  ;;  %805 = vadd.xlane.f32.xlu0 %v804_v46  ;;  %1410 = vmatpush1.bf16.msra.mxu1 %v3438_v37 }
 0x1e6   :  { %1411 = vmatprep.subr.bf16.mxu1 %v3439_v39 }
 0x1e7   :  { %v4363_v29 = vsub.f32 %v4047_v57, %v663_v43  ;;  %v4366_v52 = vsub.f32 %v4050_v59, %v663_v43  ;;  %v747_v53 = vmul.f32 %v4354_v16, %v4354_v16  ;;  %v748_v55 = vmul.f32 %v4357_v33, %v4357_v33 }
 0x1e9   :  { %v807_v47 = vadd.f32 %v748_v55, %v747_v53  ;;  %v749_v49 = vmul.f32 %v4363_v29, %v4363_v29  ;;  %v750_v57 = vmul.f32 %v4366_v52, %v4366_v52  ;;  %1412 = vmatpush1.bf16.msra.mxu1 %v3441_v36 }
 0x1ea   :  { %v614_v59 = vpop.xlane.xlu0 %613 }
 0x1eb   :  { %v664_v56 = vmul.f32 0.00390625, %v614_v59  ;;  %808 = vadd.xlane.f32.xlu1 %v807_v47  ;;  %v810_v46 = vadd.f32 %v750_v57, %v749_v49 }
 0x1ec   :  { %v617_v40 = vpop.xlane.xlu1 %616 }
 0x1ed   :  { %v4386_v43 = vsub.f32 %v4057_v4, %v664_v56  ;;  %v4389_v45 = vsub.f32 %v4060_v7, %v664_v56  ;;  %v665_v53 = vmul.f32 0.00390625, %v617_v40  ;;  %811 = vadd.xlane.f32.xlu0 %v810_v46 }
 0x1ef   :  { %v4392_v55 = vsub.f32 %v4063_v11, %v665_v53  ;;  %v4395_v37 = vsub.f32 %v4066_v14, %v665_v53  ;;  %v751_v47 = vmul.f32 %v4386_v43, %v4386_v43  ;;  %v752_v49 = vmul.f32 %v4389_v45, %v4389_v45 }
 0x1f1   :  { %v813_v4 = vadd.f32 %v752_v49, %v751_v47  ;;  %v753_v7 = vmul.f32 %v4392_v55, %v4392_v55  ;;  %v754_v57 = vmul.f32 %v4395_v37, %v4395_v37 }
 0x1f2   :  { %v620_v59 = vpop.xlane.xlu0 %619 }
 0x1f3   :  { %v666_v39 = vmul.f32 0.00390625, %v620_v59  ;;  %814 = vadd.xlane.f32.xlu1 %v813_v4  ;;  %v816_v11 = vadd.f32 %v754_v57, %v753_v7 }
 0x1f4   :  { %v623_v56 = vpop.xlane.xlu1 %622 }
 0x1f5   :  { %v4406_v14 = vsub.f32 %v4073_v21, %v666_v39  ;;  %v4409_v46 = vsub.f32 %v4076_v24, %v666_v39  ;;  %v667_v36 = vmul.f32 0.00390625, %v623_v56  ;;  %817 = vadd.xlane.f32.xlu0 %v816_v11 }
 0x1f7   :  { %v4412_v40 = vsub.f32 %v4079_v28, %v667_v36  ;;  %v4415_v53 = vsub.f32 %v4082_v31, %v667_v36  ;;  %v755_v47 = vmul.f32 %v4406_v14, %v4406_v14  ;;  %v756_v49 = vmul.f32 %v4409_v46, %v4409_v46 }
 0x1f9   :  { %v819_v4 = vadd.f32 %v756_v49, %v755_v47  ;;  %v757_v21 = vmul.f32 %v4412_v40, %v4412_v40  ;;  %v758_v24 = vmul.f32 %v4415_v53, %v4415_v53 }
 0x1fa   :  { %v626_v7 = vpop.xlane.xlu0 %625 }
 0x1fb   :  { %v668_v57 = vmul.f32 0.00390625, %v626_v7  ;;  %820 = vadd.xlane.f32.xlu1 %v819_v4  ;;  %v822_v28 = vadd.f32 %v758_v24, %v757_v21 }
 0x1fc   :  { %v629_v59 = vpop.xlane.xlu1 %628 }
 0x1fd   :  { %v4426_v31 = vsub.f32 %v4089_v38, %v668_v57  ;;  %v4429_v39 = vsub.f32 %v4092_v41, %v668_v57  ;;  %v669_v11 = vmul.f32 0.00390625, %v629_v59  ;;  %823 = vadd.xlane.f32.xlu0 %v822_v28 }
 0x1ff   :  { %v4432_v56 = vsub.f32 %v4095_v44, %v669_v11  ;;  %v4435_v36 = vsub.f32 %v4098_v48, %v669_v11  ;;  %v759_v47 = vmul.f32 %v4426_v31, %v4426_v31  ;;  %v760_v49 = vmul.f32 %v4429_v39, %v4429_v39 }
 0x201   :  { %v825_v4 = vadd.f32 %v760_v49, %v759_v47  ;;  %v761_v38 = vmul.f32 %v4432_v56, %v4432_v56  ;;  %v762_v41 = vmul.f32 %v4435_v36, %v4435_v36 }
 0x202   :  { %v632_v21 = vpop.xlane.xlu0 %631 }
 0x203   :  { %v670_v24 = vmul.f32 0.00390625, %v632_v21  ;;  %826 = vadd.xlane.f32.xlu1 %v825_v4  ;;  %v828_v44 = vadd.f32 %v762_v41, %v761_v38 }
 0x204   :  { %v635_v7 = vpop.xlane.xlu1 %634 }
 0x205   :  { %v4446_v48 = vsub.f32 %v4105_v54, %v670_v24  ;;  %v4449_v57 = vsub.f32 %v4108_v58, %v670_v24  ;;  %v671_v28 = vmul.f32 0.00390625, %v635_v7  ;;  %829 = vadd.xlane.f32.xlu0 %v828_v44 }
 0x207   :  { %v4452_v59 = vsub.f32 %v4111_v62, %v671_v28  ;;  %v4455_v11 = vsub.f32 %v4114_v6, %v671_v28  ;;  %v763_v47 = vmul.f32 %v4446_v48, %v4446_v48  ;;  %v764_v49 = vmul.f32 %v4449_v57, %v4449_v57 }
 0x209   :  { %v831_v4 = vadd.f32 %v764_v49, %v763_v47  ;;  %v765_v54 = vmul.f32 %v4452_v59, %v4452_v59  ;;  %v766_v58 = vmul.f32 %v4455_v11, %v4455_v11 }
 0x20a   :  { %v638_v38 = vpop.xlane.xlu0 %637 }
 0x20b   :  { %v672_v41 = vmul.f32 0.00390625, %v638_v38  ;;  %832 = vadd.xlane.f32.xlu1 %v831_v4  ;;  %v834_v62 = vadd.f32 %v766_v58, %v765_v54 }
 0x20c   :  { %v641_v21 = vpop.xlane.xlu1 %640 }
 0x20d   :  { %v4466_v6 = vsub.f32 %v4121_v18, %v672_v41  ;;  %v4469_v24 = vsub.f32 %v4124_v22, %v672_v41  ;;  %v673_v44 = vmul.f32 0.00390625, %v641_v21  ;;  %835 = vadd.xlane.f32.xlu0 %v834_v62 }
 0x20f   :  { %6054 = vst [vmem:[#allocation12_spill] sm:$0xff] %v4466_v6  ;;  %v4472_v7 = vsub.f32 %v4127_v30, %v673_v44  ;;  %v4475_v28 = vsub.f32 %v4130_v34, %v673_v44  ;;  %v767_v47 = vmul.f32 %v4466_v6, %v4466_v6  ;;  %v768_v49 = vmul.f32 %v4469_v24, %v4469_v24 }
 0x211   :  { %6055 = vst [vmem:[#allocation13_spill] sm:$0xff] %v4472_v7  ;;  %6056 = vst [vmem:[#allocation14_spill] sm:$0xff] %v4475_v28  ;;  %v837_v4 = vadd.f32 %v768_v49, %v767_v47  ;;  %v769_v18 = vmul.f32 %v4472_v7, %v4472_v7  ;;  %v770_v22 = vmul.f32 %v4475_v28, %v4475_v28 }
 0x213   :  { %838 = vadd.xlane.f32.xlu1 %v837_v4  ;;  %v840_v54 = vadd.f32 %v770_v22, %v769_v18 }
 0x215   :  { %841 = vadd.xlane.f32.xlu0 %v840_v54 }
 0x250   :  { %v779_v30 = vpop.xlane.xlu0 %778 }
 0x251   :  { %v852_v58 = vmul.f32 0.00390625, %v779_v30 }
 0x253   :  { %v877_v34 = vadd.f32 1e-05, %v852_v58 }
 0x254   :  { %v782_v38 = vpop.xlane.xlu1 %781  ;;  %v644_v41 = vpop.xlane.xlu0 %643 }
 0x255   :  { %3490 = vrsqrt.f32 %v877_v34  ;;  %v853_v62 = vmul.f32 0.00390625, %v782_v38  ;;  %v674_v21 = vmul.f32 0.00390625, %v644_v41 }
 0x257   :  { %v878_v44 = vadd.f32 1e-05, %v853_v62  ;;  %v4486_v47 = vsub.f32 %v4203_v20, %v674_v21  ;;  %v4489_v49 = vsub.f32 %v4206_v32, %v674_v21  ;;  %v977_v32 = vld [vmem:[%s6012_s3] sm:$0x3] }
 0x258   :  { %v647_v7 = vpop.xlane.xlu1 %646  ;;  %v785_v28 = vpop.xlane.xlu0 %784  ;;  %v4515_v62 = vrot.slane %v977_v32, %v3952_v63 }
 0x259   :  { %6057 = vst [vmem:[#allocation15_spill] sm:$0xff] %v4486_v47  ;;  %6058 = vst [vmem:[#allocation16_spill] sm:$0xff] %v4489_v49  ;;  %3492 = vrsqrt.f32 %v878_v44  ;;  %v675_v4 = vmul.f32 0.00390625, %v647_v7  ;;  %v854_v18 = vmul.f32 0.00390625, %v785_v28  ;;  %v771_v22 = vmul.f32 %v4486_v47, %v4486_v47 }
 0x25a   :  { %v772_v54 = vmul.f32 %v4489_v49, %v4489_v49 }
 0x25b   :  { %v4496_v30 = vsub.f32 %v4225_v12, %v675_v4  ;;  %v4499_v20 = vsub.f32 %v4235_v26, %v675_v4  ;;  %v879_v58 = vadd.f32 1e-05, %v854_v18  ;;  %v1039_v12 = vld [vmem:[%s6013_s4] sm:$0x3]  ;;  %v4512_v26 = vrot.slane %v977_v32, %v3947_v61 }
 0x25c   :  { %v788_v34 = vpop.xlane.xlu1 %787  ;;  %v843_v7 = vadd.f32 %v772_v54, %v771_v22  ;;  %v6061_v22 = vld [vmem:[#allocation11_spill] sm:$0xff] }
 0x25d   :  { %6059 = vst [vmem:[#allocation17_spill] sm:$0xff] %v4496_v30  ;;  %6060 = vst [vmem:[#allocation18_spill] sm:$0xff] %v4499_v20  ;;  %3494 = vrsqrt.f32 %v879_v58  ;;  %v855_v28 = vmul.f32 0.00390625, %v788_v34  ;;  %v773_v38 = vmul.f32 %v4496_v30, %v4496_v30  ;;  %v774_v41 = vmul.f32 %v4499_v20, %v4499_v20  ;;  %v6062_v34 = vld [vmem:[#allocation10_spill] sm:$0xff] }
 0x25e   :  { %844 = vadd.xlane.f32.xlu1 %v843_v7  ;;  %v4519_v58 = vrot.slane %v1039_v12, %v3952_v63  ;;  %v4523_v7 = vrot.slane %v1039_v12, %v3947_v61 }
 0x25f   :  { %v3491_v21 = vpop.eup %3490  ;;  %v880_v44 = vadd.f32 1e-05, %v855_v28  ;;  %v846_v4 = vadd.f32 %v774_v41, %v773_v38 }
 0x260   :  { %v791_v18 = vpop.xlane.xlu0 %790  ;;  %v928_v54 = vmul.f32 %v3491_v21, %v6061_v22  ;;  %v927_v30 = vmul.f32 %v3491_v21, %v6062_v34 }
 0x261   :  { %3496 = vrsqrt.f32 %v880_v44  ;;  %v856_v20 = vmul.f32 0.00390625, %v791_v18  ;;  %847 = vadd.xlane.f32.xlu0 %v846_v4 }
 0x262   :  { %v794_v47 = vpop.xlane.xlu1 %793  ;;  %v990_v32 = vmul.f32 %v4515_v62, %v928_v54  ;;  %v989_v28 = vmul.f32 %v4512_v26, %v927_v30 }
 0x263   :  { %v3493_v38 = vpop.eup %3492  ;;  %v881_v41 = vadd.f32 1e-05, %v856_v20  ;;  %v857_v49 = vmul.f32 0.00390625, %v794_v47 }
 0x264   :  { %v650_v22 = vpop.xlane.xlu0 %649  ;;  %v930_v63 = vmul.f32 %v3493_v38, %v4216_v5  ;;  %v1052_v6 = vadd.f32 %v4519_v58, %v990_v32  ;;  %v929_v21 = vmul.f32 %v3493_v38, %v4213_v3  ;;  %v1051_v12 = vadd.f32 %v4523_v7, %v989_v28 }
 0x265   :  { %3498 = vrsqrt.f32 %v881_v41  ;;  %v882_v44 = vadd.f32 1e-05, %v857_v49  ;;  %v676_v4 = vmul.f32 0.00390625, %v650_v22 }
 0x266   :  { %v992_v18 = vmul.f32 %v4515_v62, %v930_v63  ;;  %v991_v54 = vmul.f32 %v4512_v26, %v929_v21  ;;  %v1102_v20 = vmax.f32 %v1052_v6, 0.0  ;;  %v1101_v41 = vmax.f32 %v1051_v12, 0.0 }
 0x267   :  { %v3495_v30 = vpop.eup %3494  ;;  %3500 = vrsqrt.f32 %v882_v44  ;;  %v4534_v47 = vsub.f32 %v4261_v50, %v676_v4  ;;  %v4537_v5 = vsub.f32 %v4265_v42, %v676_v4 }
 0x268   :  { %v797_v34 = vpop.xlane.xlu1 %796  ;;  %v1054_v3 = vadd.f32 %v4519_v58, %v992_v18  ;;  %v1053_v49 = vadd.f32 %v4523_v7, %v991_v54  ;;  %v932_v32 = vmul.f32 %v3495_v30, %v4231_v9  ;;  %v931_v63 = vmul.f32 %v3495_v30, %v4228_v8 }
 0x269   :  { %6063 = vst [vmem:[#allocation11_spill] sm:$0xff] %v4534_v47  ;;  %v858_v28 = vmul.f32 0.00390625, %v797_v34  ;;  %v775_v38 = vmul.f32 %v4534_v47, %v4534_v47  ;;  %v776_v50 = vmul.f32 %v4537_v5, %v4537_v5 }
 0x26a   :  { %v800_v42 = vpop.xlane.xlu0 %799  ;;  %v1104_v22 = vmax.f32 %v1054_v3, 0.0  ;;  %v1103_v6 = vmax.f32 %v1053_v49, 0.0  ;;  %v994_v21 = vmul.f32 %v4515_v62, %v932_v32  ;;  %v993_v44 = vmul.f32 %v4512_v26, %v931_v63 }
 0x26b   :  { %v3497_v4 = vpop.eup %3496  ;;  %v883_v18 = vadd.f32 1e-05, %v858_v28  ;;  %v859_v9 = vmul.f32 0.00390625, %v800_v42  ;;  %v849_v54 = vadd.f32 %v776_v50, %v775_v38 }
 0x26c   :  { %v1152_v8 = vpack.c.bf16 %v1104_v22, %v1102_v20  ;;  %v1151_v30 = vpack.c.bf16 %v1103_v6, %v1101_v41  ;;  %v934_v34 = vmul.f32 %v3497_v4, %v4245_v15  ;;  %v1056_v61 = vadd.f32 %v4519_v58, %v994_v21 }
 0x26d   :  { %3502 = vrsqrt.f32 %v883_v18  ;;  %v884_v47 = vadd.f32 1e-05, %v859_v9  ;;  %850 = vadd.xlane.f32.xlu1 %v849_v54  ;;  %v933_v12 = vmul.f32 %v3497_v4, %v4242_v13  ;;  %v1055_v3 = vadd.f32 %v4523_v7, %v993_v44 }
 0x26e   :  { %1413 = vmatprep.mubr.bf16.mxu1 %v1152_v8  ;;  %v996_v49 = vmul.f32 %v4515_v62, %v934_v34  ;;  %v1106_v13 = vmax.f32 %v1056_v61, 0.0 }
 0x26f   :  { %v3499_v32 = vpop.eup %3498  ;;  %3504 = vrsqrt.f32 %v884_v47  ;;  %1414 = vmatmul.mubr.bf16.vlgmr.msra.gmra.mrb[0].mxu1 %v1151_v30  ;;  %v995_v20 = vmul.f32 %v4512_v26, %v933_v12  ;;  %v1105_v22 = vmax.f32 %v1055_v3, 0.0 }
 0x270   :  { %v803_v63 = vpop.xlane.xlu1 %802  ;;  %v1058_v15 = vadd.f32 %v4519_v58, %v996_v49  ;;  %v936_v28 = vmul.f32 %v3499_v32, %v4257_v19  ;;  %v935_v38 = vmul.f32 %v3499_v32, %v4254_v17 }
 0x271   :  { %v3501_v50 = vpop.eup %3500  ;;  %v860_v41 = vmul.f32 0.00390625, %v803_v63  ;;  %v1057_v42 = vadd.f32 %v4523_v7, %v995_v20 }
 0x272   :  { %v806_v6 = vpop.xlane.xlu0 %805  ;;  %v1108_v21 = vmax.f32 %v1058_v15, 0.0  ;;  %v938_v47 = vmul.f32 %v3501_v50, %v4271_v10  ;;  %v998_v44 = vmul.f32 %v4515_v62, %v936_v28  ;;  %v937_v4 = vmul.f32 %v3501_v50, %v4268_v51 }
 0x273   :  { %v885_v18 = vadd.f32 1e-05, %v860_v41  ;;  %v861_v9 = vmul.f32 0.00390625, %v806_v6  ;;  %v1107_v54 = vmax.f32 %v1057_v42, 0.0  ;;  %v997_v19 = vmul.f32 %v4512_v26, %v935_v38 }
 0x274   :  { %v1154_v17 = vpack.c.bf16 %v1108_v21, %v1106_v13  ;;  %v1000_v8 = vmul.f32 %v4515_v62, %v938_v47  ;;  %v1060_v61 = vadd.f32 %v4519_v58, %v998_v44  ;;  %v999_v30 = vmul.f32 %v4512_v26, %v937_v4 }
 0x275   :  { %3506 = vrsqrt.f32 %v885_v18  ;;  %v886_v34 = vadd.f32 1e-05, %v861_v9  ;;  %v1153_v12 = vpack.c.bf16 %v1107_v54, %v1105_v22  ;;  %v1059_v51 = vadd.f32 %v4523_v7, %v997_v19 }
 0x276   :  { %1423 = vmatprep.mubr.bf16.mxu1 %v1154_v17  ;;  %v1062_v10 = vadd.f32 %v4519_v58, %v1000_v8  ;;  %v1061_v3 = vadd.f32 %v4523_v7, %v999_v30  ;;  %v1110_v20 = vmax.f32 %v1060_v61, 0.0 }
 0x277   :  { %v3503_v49 = vpop.eup %3502  ;;  %3508 = vrsqrt.f32 %v886_v34  ;;  %1424 = vmatmul.mubr.bf16.gmra.mrb[4].mxu1 %v1153_v12  ;;  %v1109_v22 = vmax.f32 %v1059_v51, 0.0 }
 0x278   :  { %v809_v32 = vpop.xlane.xlu1 %808  ;;  %v1112_v63 = vmax.f32 %v1062_v10, 0.0  ;;  %v940_v15 = vmul.f32 %v3503_v49, %v4293_v2  ;;  %v939_v28 = vmul.f32 %v3503_v49, %v4290_v60  ;;  %v1111_v41 = vmax.f32 %v1061_v3, 0.0 }
 0x279   :  { %v3505_v38 = vpop.eup %3504  ;;  %v862_v50 = vmul.f32 0.00390625, %v809_v32 }
 0x27a   :  { %v812_v13 = vpop.xlane.xlu0 %811  ;;  %v1156_v42 = vpack.c.bf16 %v1112_v63, %v1110_v20  ;;  %v942_v6 = vmul.f32 %v3505_v38, %v4305_v1  ;;  %v1002_v21 = vmul.f32 %v4515_v62, %v940_v15  ;;  %v941_v4 = vmul.f32 %v3505_v38, %v4302_v0 }
 0x27b   :  { %v887_v47 = vadd.f32 1e-05, %v862_v50  ;;  %v863_v44 = vmul.f32 0.00390625, %v812_v13  ;;  %v1001_v18 = vmul.f32 %v4512_v26, %v939_v28  ;;  %v1155_v54 = vpack.c.bf16 %v1111_v41, %v1109_v22 }
 0x27c   :  { %1433 = vmatprep.mubr.bf16.mxu1 %v1156_v42  ;;  %v1004_v2 = vmul.f32 %v4515_v62, %v942_v6  ;;  %v1064_v60 = vadd.f32 %v4519_v58, %v1002_v21  ;;  %v1003_v19 = vmul.f32 %v4512_v26, %v941_v4 }
 0x27d   :  { %3510 = vrsqrt.f32 %v887_v47  ;;  %v888_v9 = vadd.f32 1e-05, %v863_v44  ;;  %v1063_v8 = vadd.f32 %v4523_v7, %v1001_v18 }
 0x27e   :  { %v1066_v1 = vadd.f32 %v4519_v58, %v1004_v2  ;;  %v1065_v0 = vadd.f32 %v4523_v7, %v1003_v19  ;;  %v1114_v30 = vmax.f32 %v1064_v60, 0.0 }
 0x27f   :  { %v3507_v17 = vpop.eup %3506  ;;  %3512 = vrsqrt.f32 %v888_v9  ;;  %1434 = vmatmul.mubr.bf16.gmra.mrb[8].mxu1 %v1155_v54  ;;  %v1113_v41 = vmax.f32 %v1063_v8, 0.0 }
 0x280   :  { %v815_v61 = vpop.xlane.xlu1 %814  ;;  %v1116_v34 = vmax.f32 %v1066_v1, 0.0  ;;  %v944_v12 = vmul.f32 %v3507_v17, %v4325_v25  ;;  %v943_v10 = vmul.f32 %v3507_v17, %v4322_v23  ;;  %v1115_v49 = vmax.f32 %v1065_v0, 0.0 }
 0x281   :  { %v3509_v51 = vpop.eup %3508  ;;  %v864_v3 = vmul.f32 0.00390625, %v815_v61 }
 0x282   :  { %v818_v32 = vpop.xlane.xlu0 %817  ;;  %v1158_v20 = vpack.c.bf16 %v1116_v34, %v1114_v30  ;;  %v946_v63 = vmul.f32 %v3509_v51, %v4334_v27  ;;  %v1006_v15 = vmul.f32 %v4515_v62, %v944_v12  ;;  %v945_v28 = vmul.f32 %v3509_v51, %v4331_v35 }
 0x283   :  { %v889_v38 = vadd.f32 1e-05, %v864_v3  ;;  %v865_v50 = vmul.f32 0.00390625, %v818_v32  ;;  %v1005_v13 = vmul.f32 %v4512_v26, %v943_v10  ;;  %v1157_v6 = vpack.c.bf16 %v1115_v49, %v1113_v41 }
 0x284   :  { %1443 = vmatprep.mubr.bf16.mxu1 %v1158_v20  ;;  %v1008_v25 = vmul.f32 %v4515_v62, %v946_v63  ;;  %v1068_v23 = vadd.f32 %v4519_v58, %v1006_v15  ;;  %v1007_v42 = vmul.f32 %v4512_v26, %v945_v28 }
 0x285   :  { %3514 = vrsqrt.f32 %v889_v38  ;;  %v890_v22 = vadd.f32 1e-05, %v865_v50  ;;  %v1067_v21 = vadd.f32 %v4523_v7, %v1005_v13 }
 0x286   :  { %v1070_v27 = vadd.f32 %v4519_v58, %v1008_v25  ;;  %v1069_v35 = vadd.f32 %v4523_v7, %v1007_v42  ;;  %v1118_v4 = vmax.f32 %v1068_v23, 0.0 }
 0x287   :  { %v3511_v47 = vpop.eup %3510  ;;  %3516 = vrsqrt.f32 %v890_v22  ;;  %1444 = vmatmul.mubr.bf16.gmra.mrb[12].mxu1 %v1157_v6  ;;  %v1117_v8 = vmax.f32 %v1067_v21, 0.0 }
 0x288   :  { %v821_v44 = vpop.xlane.xlu1 %820  ;;  %v1120_v18 = vmax.f32 %v1070_v27, 0.0  ;;  %v948_v2 = vmul.f32 %v3511_v47, %v4357_v33  ;;  %v947_v60 = vmul.f32 %v3511_v47, %v4354_v16  ;;  %v1119_v19 = vmax.f32 %v1069_v35, 0.0 }
 0x289   :  { %v3513_v9 = vpop.eup %3512  ;;  %v866_v54 = vmul.f32 0.00390625, %v821_v44 }
 0x28a   :  { %v824_v1 = vpop.xlane.xlu0 %823  ;;  %v1160_v17 = vpack.c.bf16 %v1120_v18, %v1118_v4  ;;  %v950_v0 = vmul.f32 %v3513_v9, %v4366_v52  ;;  %v1010_v61 = vmul.f32 %v4515_v62, %v948_v2  ;;  %v949_v12 = vmul.f32 %v3513_v9, %v4363_v29 }
 0x28b   :  { %v891_v30 = vadd.f32 1e-05, %v866_v54  ;;  %v867_v34 = vmul.f32 0.00390625, %v824_v1  ;;  %v1009_v10 = vmul.f32 %v4512_v26, %v947_v60  ;;  %v1159_v3 = vpack.c.bf16 %v1119_v19, %v1117_v8 }
 0x28c   :  { %1453 = vmatprep.mubr.bf16.mxu1 %v1160_v17  ;;  %v1012_v33 = vmul.f32 %v4515_v62, %v950_v0  ;;  %v1072_v16 = vadd.f32 %v4519_v58, %v1010_v61  ;;  %v1011_v49 = vmul.f32 %v4512_v26, %v949_v12 }
 0x28d   :  { %3518 = vrsqrt.f32 %v891_v30  ;;  %v892_v51 = vadd.f32 1e-05, %v867_v34  ;;  %v1071_v20 = vadd.f32 %v4523_v7, %v1009_v10 }
 0x28e   :  { %v1074_v52 = vadd.f32 %v4519_v58, %v1012_v33  ;;  %v1073_v29 = vadd.f32 %v4523_v7, %v1011_v49  ;;  %v1122_v15 = vmax.f32 %v1072_v16, 0.0 }
 0x28f   :  { %v3515_v32 = vpop.eup %3514  ;;  %3520 = vrsqrt.f32 %v892_v51  ;;  %1454 = vmatmul.mubr.bf16.gmra.mrb[16].mxu1 %v1159_v3  ;;  %v1121_v47 = vmax.f32 %v1071_v20, 0.0 }
 0x290   :  { %v827_v63 = vpop.xlane.xlu1 %826  ;;  %v1124_v28 = vmax.f32 %v1074_v52, 0.0  ;;  %v952_v38 = vmul.f32 %v3515_v32, %v4389_v45  ;;  %v951_v50 = vmul.f32 %v3515_v32, %v4386_v43  ;;  %v1123_v25 = vmax.f32 %v1073_v29, 0.0 }
 0x291   :  { %v3517_v41 = vpop.eup %3516  ;;  %v868_v13 = vmul.f32 0.00390625, %v827_v63 }
 0x292   :  { %v830_v23 = vpop.xlane.xlu0 %829  ;;  %v1162_v42 = vpack.c.bf16 %v1124_v28, %v1122_v15  ;;  %v954_v22 = vmul.f32 %v3517_v41, %v4395_v37  ;;  %v1014_v6 = vmul.f32 %v4515_v62, %v952_v38  ;;  %v953_v27 = vmul.f32 %v3517_v41, %v4392_v55 }
 0x293   :  { %v893_v21 = vadd.f32 1e-05, %v868_v13  ;;  %v869_v35 = vmul.f32 0.00390625, %v830_v23  ;;  %v1013_v44 = vmul.f32 %v4512_v26, %v951_v50  ;;  %v1161_v2 = vpack.c.bf16 %v1123_v25, %v1121_v47 }
 0x294   :  { %1463 = vmatprep.mubr.bf16.mxu1 %v1162_v42  ;;  %v1016_v45 = vmul.f32 %v4515_v62, %v954_v22  ;;  %v1076_v43 = vadd.f32 %v4519_v58, %v1014_v6  ;;  %v1015_v4 = vmul.f32 %v4512_v26, %v953_v27 }
 0x295   :  { %3522 = vrsqrt.f32 %v893_v21  ;;  %v894_v18 = vadd.f32 1e-05, %v869_v35  ;;  %v1075_v60 = vadd.f32 %v4523_v7, %v1013_v44 }
 0x296   :  { %v1078_v37 = vadd.f32 %v4519_v58, %v1016_v45  ;;  %v1077_v55 = vadd.f32 %v4523_v7, %v1015_v4  ;;  %v1126_v19 = vmax.f32 %v1076_v43, 0.0 }
 0x297   :  { %v3519_v9 = vpop.eup %3518  ;;  %3524 = vrsqrt.f32 %v894_v18  ;;  %1464 = vmatmul.mubr.bf16.gmra.mrb[20].mxu1 %v1161_v2  ;;  %v1125_v10 = vmax.f32 %v1075_v60, 0.0 }
 0x298   :  { %v833_v54 = vpop.xlane.xlu1 %832  ;;  %v1128_v1 = vmax.f32 %v1078_v37, 0.0  ;;  %v956_v17 = vmul.f32 %v3519_v9, %v4409_v46  ;;  %v955_v8 = vmul.f32 %v3519_v9, %v4406_v14  ;;  %v1127_v30 = vmax.f32 %v1077_v55, 0.0 }
 0x299   :  { %v3521_v0 = vpop.eup %3520  ;;  %v870_v61 = vmul.f32 0.00390625, %v833_v54 }
 0x29a   :  { %v836_v34 = vpop.xlane.xlu0 %835  ;;  %v1164_v12 = vpack.c.bf16 %v1128_v1, %v1126_v19  ;;  %v958_v33 = vmul.f32 %v3521_v0, %v4415_v53  ;;  %v1018_v16 = vmul.f32 %v4515_v62, %v956_v17  ;;  %v957_v49 = vmul.f32 %v3521_v0, %v4412_v40 }
 0x29b   :  { %v895_v51 = vadd.f32 1e-05, %v870_v61  ;;  %v871_v3 = vmul.f32 0.00390625, %v836_v34  ;;  %v1017_v52 = vmul.f32 %v4512_v26, %v955_v8  ;;  %v1163_v20 = vpack.c.bf16 %v1127_v30, %v1125_v10 }
 0x29c   :  { %1473 = vmatprep.mubr.bf16.mxu1 %v1164_v12  ;;  %v1020_v46 = vmul.f32 %v4515_v62, %v958_v33  ;;  %v1080_v14 = vadd.f32 %v4519_v58, %v1018_v16  ;;  %v1019_v29 = vmul.f32 %v4512_v26, %v957_v49 }
 0x29d   :  { %3526 = vrsqrt.f32 %v895_v51  ;;  %v896_v32 = vadd.f32 1e-05, %v871_v3  ;;  %v1079_v15 = vadd.f32 %v4523_v7, %v1017_v52 }
 0x29e   :  { %v1082_v53 = vadd.f32 %v4519_v58, %v1020_v46  ;;  %v1081_v40 = vadd.f32 %v4523_v7, %v1019_v29  ;;  %v1130_v38 = vmax.f32 %v1080_v14, 0.0  ;;  %v6064_v46 = vld [vmem:[#allocation12_spill] sm:$0xff] }
 0x29f   :  { %v3523_v63 = vpop.eup %3522  ;;  %3528 = vrsqrt.f32 %v896_v32  ;;  %1474 = vmatmul.mubr.bf16.gmra.mrb[24].mxu1 %v1163_v20  ;;  %v1129_v45 = vmax.f32 %v1079_v15, 0.0 }
 0x2a0   :  { %v839_v28 = vpop.xlane.xlu1 %838  ;;  %v1132_v50 = vmax.f32 %v1082_v53, 0.0  ;;  %v960_v41 = vmul.f32 %v3523_v63, %v4429_v39  ;;  %v959_v13 = vmul.f32 %v3523_v63, %v4426_v31  ;;  %v1131_v42 = vmax.f32 %v1081_v40, 0.0  ;;  %v6065_v53 = vld [vmem:[#allocation14_spill] sm:$0xff]  ;;  %v6066_v40 = vld [vmem:[#allocation13_spill] sm:$0xff] }
 0x2a1   :  { %v3525_v25 = vpop.eup %3524  ;;  %v872_v23 = vmul.f32 0.00390625, %v839_v28 }
 0x2a2   :  { %v842_v22 = vpop.xlane.xlu0 %841  ;;  %v1166_v6 = vpack.c.bf16 %v1132_v50, %v1130_v38  ;;  %v962_v27 = vmul.f32 %v3525_v25, %v4435_v36  ;;  %v1022_v21 = vmul.f32 %v4515_v62, %v960_v41  ;;  %v961_v35 = vmul.f32 %v3525_v25, %v4432_v56 }
 0x2a3   :  { %v897_v47 = vadd.f32 1e-05, %v872_v23  ;;  %v873_v44 = vmul.f32 0.00390625, %v842_v22  ;;  %v1021_v43 = vmul.f32 %v4512_v26, %v959_v13  ;;  %v1165_v2 = vpack.c.bf16 %v1131_v42, %v1129_v45 }
 0x2a4   :  { %1483 = vmatprep.mubr.bf16.mxu1 %v1166_v6  ;;  %v1024_v39 = vmul.f32 %v4515_v62, %v962_v27  ;;  %v1084_v31 = vadd.f32 %v4519_v58, %v1022_v21  ;;  %v1023_v4 = vmul.f32 %v4512_v26, %v961_v35 }
 0x2a5   :  { %3530 = vrsqrt.f32 %v897_v47  ;;  %v898_v18 = vadd.f32 1e-05, %v873_v44  ;;  %v1083_v60 = vadd.f32 %v4523_v7, %v1021_v43 }
 0x2a6   :  { %v1086_v36 = vadd.f32 %v4519_v58, %v1024_v39  ;;  %v1085_v37 = vadd.f32 %v4523_v7, %v1023_v4  ;;  %v1134_v55 = vmax.f32 %v1084_v31, 0.0 }
 0x2a7   :  { %v3527_v56 = vpop.eup %3526  ;;  %3532 = vrsqrt.f32 %v898_v18  ;;  %1484 = vmatmul.mubr.bf16.gmra.mrb[28].mxu1 %v1165_v2  ;;  %v1133_v30 = vmax.f32 %v1083_v60, 0.0 }
 0x2a8   :  { %v1136_v9 = vmax.f32 %v1086_v36, 0.0  ;;  %v964_v54 = vmul.f32 %v3527_v56, %v4449_v57  ;;  %v963_v19 = vmul.f32 %v3527_v56, %v4446_v48  ;;  %v1135_v17 = vmax.f32 %v1085_v37, 0.0  ;;  %v6067_v56 = vld [vmem:[#allocation16_spill] sm:$0xff] }
 0x2a9   :  { %v3529_v1 = vpop.eup %3528 }
 0x2aa   :  { %v1168_v8 = vpack.c.bf16 %v1136_v9, %v1134_v55  ;;  %v966_v0 = vmul.f32 %v3529_v1, %v4455_v11  ;;  %v1026_v61 = vmul.f32 %v4515_v62, %v964_v54  ;;  %v965_v34 = vmul.f32 %v3529_v1, %v4452_v59  ;;  %v6068_v55 = vld [vmem:[#allocation15_spill] sm:$0xff] }
 0x2ab   :  { %v1025_v12 = vmul.f32 %v4512_v26, %v963_v19  ;;  %v1167_v57 = vpack.c.bf16 %v1135_v17, %v1133_v30 }
 0x2ac   :  { %1493 = vmatprep.mubr.bf16.mxu1 %v1168_v8  ;;  %v1028_v10 = vmul.f32 %v4515_v62, %v966_v0  ;;  %v1088_v33 = vadd.f32 %v4519_v58, %v1026_v61  ;;  %v1027_v48 = vmul.f32 %v4512_v26, %v965_v34  ;;  %v6069_v8 = vld [vmem:[#allocation18_spill] sm:$0xff]  ;;  %v6070_v61 = vld [vmem:[#allocation17_spill] sm:$0xff] }
 0x2ad   :  { %v1087_v11 = vadd.f32 %v4523_v7, %v1025_v12 }
 0x2ae   :  { %v1090_v16 = vadd.f32 %v4519_v58, %v1028_v10  ;;  %v1089_v3 = vadd.f32 %v4523_v7, %v1027_v48  ;;  %v1138_v49 = vmax.f32 %v1088_v33, 0.0 }
 0x2af   :  { %v3531_v51 = vpop.eup %3530  ;;  %1494 = vmatmul.mubr.bf16.gmra.mrb[32].mxu1 %v1167_v57  ;;  %v1137_v38 = vmax.f32 %v1087_v11, 0.0 }
 0x2b0   :  { %v1140_v59 = vmax.f32 %v1090_v16, 0.0  ;;  %v968_v52 = vmul.f32 %v3531_v51, %v4469_v24  ;;  %v967_v14 = vmul.f32 %v3531_v51, %v6064_v46  ;;  %v1139_v20 = vmax.f32 %v1089_v3, 0.0 }
 0x2b1   :  { %v3533_v32 = vpop.eup %3532 }
 0x2b2   :  { %v1170_v29 = vpack.c.bf16 %v1140_v59, %v1138_v49  ;;  %v970_v63 = vmul.f32 %v3533_v32, %v6065_v53  ;;  %v1030_v15 = vmul.f32 %v4515_v62, %v968_v52  ;;  %v969_v28 = vmul.f32 %v3533_v32, %v6066_v40 }
 0x2b3   :  { %v1029_v50 = vmul.f32 %v4512_v26, %v967_v14  ;;  %v1169_v25 = vpack.c.bf16 %v1139_v20, %v1137_v38  ;;  %v6071_v14 = vld [vmem:[#allocation11_spill] sm:$0xff] }
 0x2b4   :  { %1503 = vmatprep.mubr.bf16.mxu1 %v1170_v29  ;;  %v1032_v41 = vmul.f32 %v4515_v62, %v970_v63  ;;  %v1092_v13 = vadd.f32 %v4519_v58, %v1030_v15  ;;  %v1031_v24 = vmul.f32 %v4512_v26, %v969_v28 }
 0x2b5   :  { %v1091_v22 = vadd.f32 %v4523_v7, %v1029_v50  ;;  %v6072_v50 = vld [vmem:[#allocation8_spill] sm:$0xff] }
 0x2b6   :  { %v1094_v23 = vadd.f32 %v4519_v58, %v1032_v41  ;;  %v1093_v42 = vadd.f32 %v4523_v7, %v1031_v24  ;;  %v1142_v6 = vmax.f32 %v1092_v13, 0.0 }
 0x2b7   :  { %1504 = vmatmul.mubr.bf16.gmra.mrb[36].mxu1 %v1169_v25  ;;  %v1141_v47 = vmax.f32 %v1091_v22, 0.0 }
 0x2b8   :  { %v1144_v27 = vmax.f32 %v1094_v23, 0.0  ;;  %v1143_v21 = vmax.f32 %v1093_v42, 0.0 }
 0x2ba   :  { %v1172_v35 = vpack.c.bf16 %v1144_v27, %v1142_v6  ;;  %v1171_v44 = vpack.c.bf16 %v1143_v21, %v1141_v47 }
 0x2bc   :  { %1513 = vmatprep.mubr.bf16.mxu1 %v1172_v35 }
 0x2bf   :  { %1514 = vmatmul.mubr.bf16.gmra.mrb[40].mxu1 %v1171_v44 }
 0x2eb   :  { %v845_v45 = vpop.xlane.xlu1 %844 }
 0x2ec   :  { %v874_v43 = vmul.f32 0.00390625, %v845_v45 }
 0x2ee   :  { %v899_v39 = vadd.f32 1e-05, %v874_v43  ;;  %v848_v31 = vpop.xlane.xlu0 %847 }
 0x2ef   :  { %v875_v4 = vmul.f32 0.00390625, %v848_v31 }
 0x2f0   :  { %3534 = vrsqrt.f32 %v899_v39 }
 0x2f1   :  { %v900_v18 = vadd.f32 1e-05, %v875_v4 }
 0x2f3   :  { %3536 = vrsqrt.f32 %v900_v18 }
 0x2fa   :  { %v3535_v2 = vpop.eup %3534  ;;  %v851_v36 = vpop.xlane.xlu1 %850 }
 0x2fb   :  { %v876_v37 = vmul.f32 0.00390625, %v851_v36  ;;  %v972_v60 = vmul.f32 %v3535_v2, %v6067_v56  ;;  %v971_v9 = vmul.f32 %v3535_v2, %v6068_v55 }
 0x2fd   :  { %v3537_v54 = vpop.eup %3536  ;;  %v901_v19 = vadd.f32 1e-05, %v876_v37  ;;  %v1034_v1 = vmul.f32 %v4515_v62, %v972_v60  ;;  %v1033_v17 = vmul.f32 %v4512_v26, %v971_v9 }
 0x2fe   :  { %v974_v0 = vmul.f32 %v3537_v54, %v6069_v8  ;;  %v973_v30 = vmul.f32 %v3537_v54, %v6070_v61 }
 0x2ff   :  { %3538 = vrsqrt.f32 %v901_v19  ;;  %v1096_v12 = vadd.f32 %v4519_v58, %v1034_v1  ;;  %v1095_v33 = vadd.f32 %v4523_v7, %v1033_v17 }
 0x300   :  { %v1036_v34 = vmul.f32 %v4515_v62, %v974_v0  ;;  %v1035_v10 = vmul.f32 %v4512_v26, %v973_v30 }
 0x301   :  { %v1146_v16 = vmax.f32 %v1096_v12, 0.0  ;;  %v1145_v11 = vmax.f32 %v1095_v33, 0.0 }
 0x302   :  { %v1098_v57 = vadd.f32 %v4519_v58, %v1036_v34  ;;  %v1097_v48 = vadd.f32 %v4523_v7, %v1035_v10 }
 0x304   :  { %v1148_v51 = vmax.f32 %v1098_v57, 0.0  ;;  %v1147_v3 = vmax.f32 %v1097_v48, 0.0 }
 0x306   :  { %v1174_v49 = vpack.c.bf16 %v1148_v51, %v1146_v16  ;;  %v1173_v59 = vpack.c.bf16 %v1147_v3, %v1145_v11 }
 0x308   :  { %1523 = vmatprep.mubr.bf16.mxu1 %v1174_v49 }
 0x309   :  { %v3539_v52 = vpop.eup %3538  ;;  %1524 = vmatmul.mubr.bf16.gmra.mrb[44].mxu1 %v1173_v59 }
 0x30a   :  { %v976_v46 = vmul.f32 %v3539_v52, %v4537_v5  ;;  %v975_v32 = vmul.f32 %v3539_v52, %v6071_v14  ;;  %v1209_v5 = vld [vmem:[%s6015_s6] sm:$0x3] }
 0x30b   :  { %v4687_v41 = vrot.slane %v1209_v5, %v6072_v50 }
 0x30c   :  { %v1038_v20 = vmul.f32 %v4515_v62, %v976_v46  ;;  %v1037_v29 = vmul.f32 %v4512_v26, %v975_v32  ;;  %v6073_v62 = vld [vmem:[#allocation9_spill] sm:$0xff] }
 0x30d   :  { %v4690_v13 = vrot.slane %v1209_v5, %v6073_v62 }
 0x30e   :  { %v1100_v53 = vadd.f32 %v4519_v58, %v1038_v20  ;;  %v1099_v63 = vadd.f32 %v4523_v7, %v1037_v29 }
 0x310   :  { %v1150_v15 = vmax.f32 %v1100_v53, 0.0  ;;  %v1149_v40 = vmax.f32 %v1099_v63, 0.0 }
 0x312   :  { %v1176_v28 = vpack.c.bf16 %v1150_v15, %v1150_v15  ;;  %v1175_v38 = vpack.c.bf16 %v1149_v40, %v1149_v40 }
 0x314   :  { %1533 = vmatprep.mubr.bf16.mxu1 %v1176_v28 }
 0x315   :  { %1534 = vmatmul.mubr.bf16.gmra.mrb[48].mxu1 %v1175_v38 }
 0x342   :  { %v1415_v26 = vpop.f32.mrb[0].mxu1 }
 0x343   :  { %v4693_v58 = vadd.f32 %v1415_v26, %v4687_v41  ;;  %v1417_v7 = vpop.f32.mrb[1].mxu1 }
 0x344   :  { %v4696_v24 = vadd.f32 %v1417_v7, %v4690_v13  ;;  %v1419_v25 = vpop.f32.mrb[2].mxu1 }
 0x345   :  { %v4699_v23 = vadd.f32 %v1419_v25, %v4687_v41  ;;  %v1421_v42 = vpop.f32.mrb[3].mxu1 }
 0x346   :  { %v4702_v22 = vadd.f32 %v1421_v42, %v4690_v13  ;;  %v1542_v6 = vadd.f32 %v4696_v24, %v4693_v58 }
 0x348   :  { %1543 = vadd.xlane.f32.xlu0 %v1542_v6  ;;  %v1545_v27 = vadd.f32 %v4702_v22, %v4699_v23 }
 0x34a   :  { %v1425_v21 = vpop.f32.mrb[4].mxu1  ;;  %1546 = vadd.xlane.f32.xlu1 %v1545_v27 }
 0x34b   :  { %v4709_v35 = vadd.f32 %v1425_v21, %v4687_v41  ;;  %v1427_v47 = vpop.f32.mrb[5].mxu1 }
 0x34c   :  { %v4712_v44 = vadd.f32 %v1427_v47, %v4690_v13  ;;  %v1429_v45 = vpop.f32.mrb[6].mxu1 }
 0x34d   :  { %v4715_v43 = vadd.f32 %v1429_v45, %v4687_v41  ;;  %v1431_v39 = vpop.f32.mrb[7].mxu1 }
 0x34e   :  { %v4718_v31 = vadd.f32 %v1431_v39, %v4690_v13  ;;  %v1548_v4 = vadd.f32 %v4712_v44, %v4709_v35 }
 0x350   :  { %1549 = vadd.xlane.f32.xlu0 %v1548_v4  ;;  %v1551_v18 = vadd.f32 %v4718_v31, %v4715_v43 }
 0x352   :  { %v1435_v2 = vpop.f32.mrb[8].mxu1  ;;  %1552 = vadd.xlane.f32.xlu1 %v1551_v18 }
 0x353   :  { %v1437_v36 = vpop.f32.mrb[9].mxu1  ;;  %v4750_v52 = vadd.f32 %v1435_v2, %v4687_v41 }
 0x354   :  { %v1439_v37 = vpop.f32.mrb[10].mxu1  ;;  %v4753_v46 = vadd.f32 %v1437_v36, %v4690_v13 }
 0x355   :  { %v1441_v56 = vpop.f32.mrb[11].mxu1  ;;  %v4761_v20 = vadd.f32 %v1439_v37, %v4687_v41 }
 0x356   :  { %v4764_v29 = vadd.f32 %v1441_v56, %v4690_v13  ;;  %v1554_v15 = vadd.f32 %v4753_v46, %v4750_v52 }
 0x358   :  { %v1557_v26 = vadd.f32 %v4764_v29, %v4761_v20 }
 0x35a   :  { %v1445_v60 = vpop.f32.mrb[12].mxu1 }
 0x35b   :  { %v1447_v55 = vpop.f32.mrb[13].mxu1  ;;  %v4782_v42 = vadd.f32 %v1445_v60, %v4687_v41 }
 0x35c   :  { %v1449_v9 = vpop.f32.mrb[14].mxu1  ;;  %v4785_v6 = vadd.f32 %v1447_v55, %v4690_v13 }
 0x35d   :  { %v1451_v54 = vpop.f32.mrb[15].mxu1  ;;  %v4793_v47 = vadd.f32 %v1449_v9, %v4687_v41 }
 0x35e   :  { %v4796_v45 = vadd.f32 %v1451_v54, %v4690_v13  ;;  %v1560_v18 = vadd.f32 %v4785_v6, %v4782_v42 }
 0x360   :  { %v1563_v60 = vadd.f32 %v4796_v45, %v4793_v47 }
 0x362   :  { %v1455_v19 = vpop.f32.mrb[16].mxu1 }
 0x363   :  { %v1457_v1 = vpop.f32.mrb[17].mxu1  ;;  %v4814_v54 = vadd.f32 %v1455_v19, %v4687_v41 }
 0x364   :  { %v1459_v17 = vpop.f32.mrb[18].mxu1 }
 0x365   :  { %v1461_v8 = vpop.f32.mrb[19].mxu1 }
 0x36a   :  { %v4724_v0 = vpop.f32.mrb[20].mxu1 }
 0x36b   :  { %v4726_v61 = vpop.f32.mrb[21].mxu1 }
 0x36c   :  { %v4728_v30 = vpop.f32.mrb[22].mxu1 }
 0x36d   :  { %v4730_v34 = vpop.f32.mrb[23].mxu1 }
 0x372   :  { %v4732_v12 = vpop.f32.mrb[24].mxu1 }
 0x373   :  { %v4734_v10 = vpop.f32.mrb[25].mxu1 }
 0x374   :  { %v4736_v33 = vpop.f32.mrb[26].mxu1 }
 0x375   :  { %v4738_v57 = vpop.f32.mrb[27].mxu1 }
 0x37a   :  { %v1485_v48 = vpop.f32.mrb[28].mxu1 }
 0x37b   :  { %v4741_v16 = vadd.f32 %v1485_v48, %v4687_v41  ;;  %v1487_v51 = vpop.f32.mrb[29].mxu1  ;;  %v4817_v48 = vadd.f32 %v1457_v1, %v4690_v13 }
 0x37c   :  { %v4744_v11 = vadd.f32 %v1487_v51, %v4690_v13  ;;  %v1489_v3 = vpop.f32.mrb[30].mxu1 }
 0x37d   :  { %v4747_v49 = vadd.f32 %v1489_v3, %v4687_v41  ;;  %v1491_v59 = vpop.f32.mrb[31].mxu1 }
 0x37e   :  { %v4756_v14 = vadd.f32 %v1491_v59, %v4690_v13  ;;  %v1584_v32 = vadd.f32 %v4744_v11, %v4741_v16  ;;  %v4825_v59 = vadd.f32 %v1459_v17, %v4687_v41 }
 0x380   :  { %1585 = vadd.xlane.f32.xlu0 %v1584_v32  ;;  %v1587_v53 = vadd.f32 %v4756_v14, %v4747_v49  ;;  %v4828_v32 = vadd.f32 %v1461_v8, %v4690_v13 }
 0x382   :  { %1588 = vadd.xlane.f32.xlu1 %v1587_v53  ;;  %v1495_v63 = vpop.f32.mrb[32].mxu1  ;;  %v1566_v53 = vadd.f32 %v4817_v48, %v4814_v54  ;;  %v1569_v8 = vadd.f32 %v4828_v32, %v4825_v59 }
 0x383   :  { %v4771_v40 = vadd.f32 %v1495_v63, %v4687_v41  ;;  %v1497_v28 = vpop.f32.mrb[33].mxu1 }
 0x384   :  { %v4774_v38 = vadd.f32 %v1497_v28, %v4690_v13  ;;  %1555 = vadd.xlane.f32.xlu0 %v1554_v15  ;;  %v1499_v5 = vpop.f32.mrb[34].mxu1 }
 0x385   :  { %v4779_v7 = vadd.f32 %v1499_v5, %v4687_v41  ;;  %v1501_v25 = vpop.f32.mrb[35].mxu1 }
 0x386   :  { %v4788_v27 = vadd.f32 %v1501_v25, %v4690_v13  ;;  %1558 = vadd.xlane.f32.xlu1 %v1557_v26  ;;  %v1590_v21 = vadd.f32 %v4774_v38, %v4771_v40  ;;  %v4847_v25 = vadd.f32 %v4724_v0, %v4687_v41 }
 0x388   :  { %1591 = vadd.xlane.f32.xlu0 %v1590_v21  ;;  %v1593_v39 = vadd.f32 %v4788_v27, %v4779_v7  ;;  %v4851_v21 = vadd.f32 %v4726_v61, %v4690_v13 }
 0x38a   :  { %1594 = vadd.xlane.f32.xlu1 %v1593_v39  ;;  %v1505_v4 = vpop.f32.mrb[36].mxu1  ;;  %v1572_v61 = vadd.f32 %v4851_v21, %v4847_v25 }
 0x38b   :  { %v4803_v2 = vadd.f32 %v1505_v4, %v4687_v41  ;;  %v1507_v36 = vpop.f32.mrb[37].mxu1 }
 0x38c   :  { %v4806_v37 = vadd.f32 %v1507_v36, %v4690_v13  ;;  %1561 = vadd.xlane.f32.xlu0 %v1560_v18  ;;  %v1509_v56 = vpop.f32.mrb[38].mxu1  ;;  %v4860_v18 = vadd.f32 %v4728_v30, %v4687_v41  ;;  %v4864_v36 = vadd.f32 %v4730_v34, %v4690_v13  ;;  %v3444_v30 = vld [vmem:[#allocation2 + $0x4] ss:$8 sps:$4 sm:$0xff]   ;;  %v3445_v34 = vld [vmem:[#allocation2 + $0x10] ss:$8 sps:$4 sm:$0xff]  }
 0x38d   :  { %v4811_v55 = vadd.f32 %v1509_v56, %v4687_v41  ;;  %v1511_v9 = vpop.f32.mrb[39].mxu1  ;;  %2346 = vmatprep.subr.bf16.mxu0 %v3444_v30  ;;  %3270 = vmatprep.subr.bf16.mxu1 %v3444_v30 }
 0x38e   :  { %v4820_v51 = vadd.f32 %v1511_v9, %v4690_v13  ;;  %1564 = vadd.xlane.f32.xlu1 %v1563_v60  ;;  %v1596_v3 = vadd.f32 %v4806_v37, %v4803_v2  ;;  %v1575_v56 = vadd.f32 %v4864_v36, %v4860_v18  ;;  %v3442_v60 = vld [vmem:[#allocation2] ss:$8 sps:$4 sm:$0xff]   ;;  %v3447_v9 = vld [vmem:[#allocation2 + $0x14] ss:$8 sps:$4 sm:$0xff]  }
 0x38f   :  { %2347 = vmatpush1.bf16.msra.mxu0 %v3442_v60  ;;  %3286 = vmatpush1.bf16.msra.mxu1 %v3442_v60 }
 0x390   :  { %1597 = vadd.xlane.f32.xlu0 %v1596_v3  ;;  %v1599_v19 = vadd.f32 %v4820_v51, %v4811_v55  ;;  %2348 = vmatprep.subr.bf16.mxu0 %v3447_v9  ;;  %v3450_v3 = vld [vmem:[#allocation2 + $0x24] ss:$8 sps:$4 sm:$0xff]  }
 0x391   :  { %3271 = vmatprep.subr.bf16.mxu1 %v3447_v9 }
 0x392   :  { %1600 = vadd.xlane.f32.xlu1 %v1599_v19  ;;  %v1515_v1 = vpop.f32.mrb[40].mxu1  ;;  %v3448_v19 = vld [vmem:[#allocation2 + $0x20] ss:$8 sps:$4 sm:$0xff]  }
 0x393   :  { %v4835_v63 = vadd.f32 %v1515_v1, %v4687_v41  ;;  %v1517_v15 = vpop.f32.mrb[41].mxu1  ;;  %2349 = vmatpush1.bf16.msra.mxu0 %v3445_v34  ;;  %3287 = vmatpush1.bf16.msra.mxu1 %v3445_v34  ;;  %v3453_v1 = vld [vmem:[#allocation2 + $0x34] ss:$8 sps:$4 sm:$0xff]  }
 0x394   :  { %v4838_v28 = vadd.f32 %v1517_v15, %v4690_v13  ;;  %1567 = vadd.xlane.f32.xlu0 %v1566_v53  ;;  %v1519_v17 = vpop.f32.mrb[42].mxu1  ;;  %2350 = vmatprep.subr.bf16.mxu0 %v3450_v3  ;;  %v3451_v53 = vld [vmem:[#allocation2 + $0x30] ss:$8 sps:$4 sm:$0xff]   ;;  %v3456_v15 = vld [vmem:[#allocation2 + $0x44] ss:$8 sps:$4 sm:$0xff]  }
 0x395   :  { %v4843_v5 = vadd.f32 %v1519_v17, %v4687_v41  ;;  %v1521_v26 = vpop.f32.mrb[43].mxu1  ;;  %3272 = vmatprep.subr.bf16.mxu1 %v3450_v3  ;;  %v3454_v17 = vld [vmem:[#allocation2 + $0x40] ss:$8 sps:$4 sm:$0xff]  }
 0x396   :  { %v4854_v39 = vadd.f32 %v1521_v26, %v4690_v13  ;;  %1570 = vadd.xlane.f32.xlu1 %v1569_v8  ;;  %v1602_v4 = vadd.f32 %v4838_v28, %v4835_v63  ;;  %v3459_v8 = vld [vmem:[#allocation2 + $0x54] ss:$8 sps:$4 sm:$0xff]   ;;  %v3457_v26 = vld [vmem:[#allocation2 + $0x50] ss:$8 sps:$4 sm:$0xff]  }
 0x397   :  { %2351 = vmatpush1.bf16.msra.mxu0 %v3448_v19  ;;  %3288 = vmatpush1.bf16.msra.mxu1 %v3448_v19 }
 0x398   :  { %1603 = vadd.xlane.f32.xlu0 %v1602_v4  ;;  %v1605_v0 = vadd.f32 %v4854_v39, %v4843_v5  ;;  %2352 = vmatprep.subr.bf16.mxu0 %v3453_v1 }
 0x399   :  { %3273 = vmatprep.subr.bf16.mxu1 %v3453_v1  ;;  %v4883_v1 = vadd.f32 %v4732_v12, %v4687_v41 }
 0x39a   :  { %1606 = vadd.xlane.f32.xlu1 %v1605_v0 }
 0x39b   :  { %2353 = vmatpush1.bf16.msra.mxu0 %v3451_v53  ;;  %3289 = vmatpush1.bf16.msra.mxu1 %v3451_v53 }
 0x39c   :  { %1573 = vadd.xlane.f32.xlu0 %v1572_v61  ;;  %2354 = vmatprep.subr.bf16.mxu0 %v3456_v15 }
 0x39d   :  { %3274 = vmatprep.subr.bf16.mxu1 %v3456_v15 }
 0x39e   :  { %1576 = vadd.xlane.f32.xlu1 %v1575_v56 }
 0x39f   :  { %2355 = vmatpush1.bf16.msra.mxu0 %v3454_v17  ;;  %3290 = vmatpush1.bf16.msra.mxu1 %v3454_v17  ;;  %v4890_v17 = vadd.f32 %v4734_v10, %v4690_v13 }
 0x3a0   :  { %2356 = vmatprep.subr.bf16.mxu0 %v3459_v8  ;;  %3275 = vmatprep.subr.bf16.mxu1 %v3459_v8  ;;  %v4894_v8 = vadd.f32 %v4736_v33, %v4687_v41 }
 0x3a3   :  { %2357 = vmatpush1.bf16.msra.mxu0 %v3457_v26  ;;  %3291 = vmatpush1.bf16.msra.mxu1 %v3457_v26  ;;  %v4898_v26 = vadd.f32 %v4738_v57, %v4690_v13  ;;  %v1578_v57 = vadd.f32 %v4890_v17, %v4883_v1 }
 0x3d5   :  { %v1544_v4 = vpop.xlane.xlu0 %1543 }
 0x3d6   :  { %v1617_v60 = vmul.f32 0.00390625, %v1544_v4 }
 0x3d7   :  { %v1547_v53 = vpop.xlane.xlu1 %1546 }
 0x3d8   :  { %v4903_v4 = vsub.f32 %v4693_v58, %v1617_v60 }
 0x3da   :  { %6074 = vst [vmem:[#allocation10_spill] sm:$0xff] %v4903_v4 }
 0x3dc   :  { %v1525_v0 = vpop.f32.mrb[44].mxu1 }
 0x3dd   :  { %v4873_v61 = vadd.f32 %v1525_v0, %v4687_v41  ;;  %v1527_v56 = vpop.f32.mrb[45].mxu1  ;;  %v1550_v34 = vpop.xlane.xlu0 %1549  ;;  %v4906_v0 = vsub.f32 %v4696_v24, %v1617_v60  ;;  %v1692_v60 = vmul.f32 %v4903_v4, %v4903_v4 }
 0x3de   :  { %v4876_v30 = vadd.f32 %v1527_v56, %v4690_v13  ;;  %v1529_v9 = vpop.f32.mrb[46].mxu1  ;;  %v1619_v56 = vmul.f32 0.00390625, %v1550_v34 }
 0x3df   :  { %v4879_v3 = vadd.f32 %v1529_v9, %v4687_v41  ;;  %v1531_v19 = vpop.f32.mrb[47].mxu1  ;;  %v1618_v9 = vmul.f32 0.00390625, %v1547_v53  ;;  %v1553_v33 = vpop.xlane.xlu1 %1552  ;;  %v1693_v34 = vmul.f32 %v4906_v0, %v4906_v0 }
 0x3e0   :  { %v4886_v15 = vadd.f32 %v1531_v19, %v4690_v13  ;;  %v1608_v12 = vadd.f32 %v4876_v30, %v4873_v61  ;;  %v1581_v19 = vadd.f32 %v4898_v26, %v4894_v8  ;;  %v4915_v58 = vsub.f32 %v4709_v35, %v1619_v56 }
 0x3e1   :  { %v4918_v24 = vsub.f32 %v4712_v44, %v1619_v56  ;;  %v4925_v53 = vsub.f32 %v4699_v23, %v1618_v9  ;;  %v1742_v50 = vadd.f32 %v1693_v34, %v1692_v60  ;;  %v3462_v34 = vld [vmem:[#allocation2 + $0x64] ss:$8 sps:$4 sm:$0xff]  }
 0x3e2   :  { %v1611_v10 = vadd.f32 %v4886_v15, %v4879_v3  ;;  %1609 = vadd.xlane.f32.xlu0 %v1608_v12  ;;  %v4928_v12 = vsub.f32 %v4702_v22, %v1618_v9  ;;  %v1696_v23 = vmul.f32 %v4915_v58, %v4915_v58  ;;  %2358 = vmatprep.subr.bf16.mxu0 %v3462_v34 }
 0x3e3   :  { %v1694_v9 = vmul.f32 %v4925_v53, %v4925_v53  ;;  %3276 = vmatprep.subr.bf16.mxu1 %v3462_v34 }
 0x3e4   :  { %1612 = vadd.xlane.f32.xlu1 %v1611_v10  ;;  %v1620_v10 = vmul.f32 0.00390625, %v1553_v33 }
 0x3e6   :  { %1579 = vadd.xlane.f32.xlu0 %v1578_v57  ;;  %v1697_v57 = vmul.f32 %v4918_v24, %v4918_v24  ;;  %v4943_v33 = vsub.f32 %v4715_v43, %v1620_v10 }
 0x3e8   :  { %v1535_v62 = vpop.f32.mrb[48].mxu1  ;;  %1582 = vadd.xlane.f32.xlu1 %v1581_v19  ;;  %v1698_v60 = vmul.f32 %v4943_v33, %v4943_v33 }
 0x3e9   :  { %v4931_v35 = vadd.f32 %v1535_v62, %v4687_v41  ;;  %v1537_v44 = vpop.f32.mrb[49].mxu1  ;;  %v4946_v41 = vsub.f32 %v4718_v31, %v1620_v10  ;;  %v3460_v31 = vld [vmem:[#allocation2 + $0x60] ss:$8 sps:$4 sm:$0xff]   ;;  %v3465_v10 = vld [vmem:[#allocation2 + $0x74] ss:$8 sps:$4 sm:$0xff]  }
 0x3ea   :  { %v4934_v56 = vadd.f32 %v1537_v44, %v4690_v13  ;;  %v1539_v4 = vpop.f32.mrb[50].mxu1  ;;  %v1695_v13 = vmul.f32 %v4928_v12, %v4928_v12  ;;  %2359 = vmatpush1.bf16.msra.mxu0 %v3460_v31  ;;  %3292 = vmatpush1.bf16.msra.mxu1 %v3460_v31  ;;  %v3463_v44 = vld [vmem:[#allocation2 + $0x70] ss:$8 sps:$4 sm:$0xff]   ;;  %v3483_v31 = vld [vmem:[#allocation2 + $0xd4] ss:$8 sps:$4 sm:$0xff]  }
 0x3eb   :  { %v1540_v22 = vpop.f32.mrb[51].mxu1  ;;  %v1748_v4 = vadd.f32 %v1697_v57, %v1696_v23  ;;  %v1699_v43 = vmul.f32 %v4946_v41, %v4946_v41  ;;  %2360 = vmatprep.subr.bf16.mxu0 %v3465_v10  ;;  %3277 = vmatprep.subr.bf16.mxu1 %v3465_v10  ;;  %v3468_v23 = vld [vmem:[#allocation2 + $0x84] ss:$8 sps:$4 sm:$0xff]   ;;  %v3466_v57 = vld [vmem:[#allocation2 + $0x80] ss:$8 sps:$4 sm:$0xff]  }
 0x3ec   :  { %1743 = vadd.xlane.f32.xlu1 %v1742_v50  ;;  %v1614_v62 = vadd.f32 %v4934_v56, %v4931_v35  ;;  %v1745_v19 = vadd.f32 %v1695_v13, %v1694_v9  ;;  %v3471_v22 = vld [vmem:[#allocation2 + $0x94] ss:$8 sps:$4 sm:$0xff]   ;;  %v3469_v9 = vld [vmem:[#allocation2 + $0x90] ss:$8 sps:$4 sm:$0xff]   ;;  %v3472_v13 = vld [vmem:[#allocation2 + $0xa0] ss:$8 sps:$4 sm:$0xff]  }
 0x3ed   :  { %v1751_v50 = vadd.f32 %v1699_v43, %v1698_v60  ;;  %v3480_v60 = vld [vmem:[#allocation2 + $0xc4] ss:$8 sps:$4 sm:$0xff]   ;;  %v3478_v43 = vld [vmem:[#allocation2 + $0xc0] ss:$8 sps:$4 sm:$0xff]   ;;  %v3481_v10 = vld [vmem:[#allocation2 + $0xd0] ss:$8 sps:$4 sm:$0xff]  }
 0x3ee   :  { %1615 = vadd.xlane.f32.xlu0 %v1614_v62  ;;  %2361 = vmatpush1.bf16.msra.mxu0 %v3463_v44  ;;  %v3474_v62 = vld [vmem:[#allocation2 + $0xa4] ss:$8 sps:$4 sm:$0xff]  }
 0x3ef   :  { %3293 = vmatpush1.bf16.msra.mxu1 %v3463_v44  ;;  %2362 = vmatprep.subr.bf16.mxu0 %v3468_v23 }
 0x3f0   :  { %1749 = vadd.xlane.f32.xlu1 %v1748_v4  ;;  %3278 = vmatprep.subr.bf16.mxu1 %v3468_v23  ;;  %v3477_v4 = vld [vmem:[#allocation2 + $0xb4] ss:$8 sps:$4 sm:$0xff]  }
 0x3f2   :  { %1746 = vadd.xlane.f32.xlu0 %v1745_v19  ;;  %2363 = vmatpush1.bf16.msra.mxu0 %v3466_v57  ;;  %v3475_v19 = vld [vmem:[#allocation2 + $0xb0] ss:$8 sps:$4 sm:$0xff]  }
 0x3f3   :  { %3294 = vmatpush1.bf16.msra.mxu1 %v3466_v57  ;;  %2364 = vmatprep.subr.bf16.mxu0 %v3471_v22 }
 0x3f4   :  { %3279 = vmatprep.subr.bf16.mxu1 %v3471_v22 }
 0x3f6   :  { %1752 = vadd.xlane.f32.xlu0 %v1751_v50  ;;  %2365 = vmatpush1.bf16.msra.mxu0 %v3469_v9 }
 0x3f7   :  { %3295 = vmatpush1.bf16.msra.mxu1 %v3469_v9  ;;  %2366 = vmatprep.subr.bf16.mxu0 %v3474_v62 }
 0x3f8   :  { %3280 = vmatprep.subr.bf16.mxu1 %v3474_v62  ;;  %v3484_v62 = vld [vmem:[#allocation2 + $0xe0] ss:$8 sps:$4 sm:$0xff]  }
 0x3fa   :  { %2367 = vmatpush1.bf16.msra.mxu0 %v3472_v13 }
 0x3fb   :  { %3296 = vmatpush1.bf16.msra.mxu1 %v3472_v13  ;;  %2368 = vmatprep.subr.bf16.mxu0 %v3477_v4  ;;  %v3486_v13 = vld [vmem:[#allocation2 + $0xe4] ss:$8 sps:$4 sm:$0xff]  }
 0x3fc   :  { %3281 = vmatprep.subr.bf16.mxu1 %v3477_v4 }
 0x3fe   :  { %2369 = vmatpush1.bf16.msra.mxu0 %v3475_v19 }
 0x3ff   :  { %3297 = vmatpush1.bf16.msra.mxu1 %v3475_v19  ;;  %2370 = vmatprep.subr.bf16.mxu0 %v3480_v60 }
 0x400   :  { %3282 = vmatprep.subr.bf16.mxu1 %v3480_v60 }
 0x402   :  { %2371 = vmatpush1.bf16.msra.mxu0 %v3478_v43 }
 0x403   :  { %3298 = vmatpush1.bf16.msra.mxu1 %v3478_v43  ;;  %2372 = vmatprep.subr.bf16.mxu0 %v3483_v31  ;;  %v3489_v43 = vld [vmem:[#allocation2 + $0xf4] ss:$8 sps:$4 sm:$0xff]  }
 0x404   :  { %3283 = vmatprep.subr.bf16.mxu1 %v3483_v31 }
 0x406   :  { %2373 = vmatpush1.bf16.msra.mxu0 %v3481_v10 }
 0x407   :  { %3299 = vmatpush1.bf16.msra.mxu1 %v3481_v10  ;;  %2374 = vmatprep.subr.bf16.mxu0 %v3486_v13  ;;  %v3487_v10 = vld [vmem:[#allocation2 + $0xf0] ss:$8 sps:$4 sm:$0xff]  }
 0x408   :  { %3284 = vmatprep.subr.bf16.mxu1 %v3486_v13 }
 0x40a   :  { %2375 = vmatpush1.bf16.msra.mxu0 %v3484_v62 }
 0x40b   :  { %3300 = vmatpush1.bf16.msra.mxu1 %v3484_v62  ;;  %2376 = vmatprep.subr.bf16.mxu0 %v3489_v43 }
 0x40c   :  { %3285 = vmatprep.subr.bf16.mxu1 %v3489_v43 }
 0x40d   :  { %v1586_v34 = vpop.xlane.xlu0 %1585 }
 0x40e   :  { %v1631_v50 = vmul.f32 0.00390625, %v1586_v34  ;;  %2377 = vmatpush1.bf16.msra.mxu0 %v3487_v10 }
 0x40f   :  { %v1589_v44 = vpop.xlane.xlu1 %1588  ;;  %3301 = vmatpush1.bf16.msra.mxu1 %v3487_v10 }
 0x410   :  { %v4957_v23 = vsub.f32 %v4741_v16, %v1631_v50  ;;  %v4960_v57 = vsub.f32 %v4744_v11, %v1631_v50  ;;  %v1632_v22 = vmul.f32 0.00390625, %v1589_v44 }
 0x411   :  { %v1556_v9 = vpop.xlane.xlu0 %1555 }
 0x412   :  { %v4963_v4 = vsub.f32 %v4747_v49, %v1632_v22  ;;  %v4966_v19 = vsub.f32 %v4756_v14, %v1632_v22  ;;  %v1621_v60 = vmul.f32 0.00390625, %v1556_v9  ;;  %v1720_v16 = vmul.f32 %v4957_v23, %v4957_v23 }
 0x413   :  { %v1559_v34 = vpop.xlane.xlu1 %1558  ;;  %v1721_v11 = vmul.f32 %v4960_v57, %v4960_v57 }
 0x414   :  { %v4973_v31 = vsub.f32 %v4750_v52, %v1621_v60  ;;  %v4976_v49 = vsub.f32 %v4753_v46, %v1621_v60  ;;  %v1622_v50 = vmul.f32 0.00390625, %v1559_v34  ;;  %v1722_v14 = vmul.f32 %v4963_v4, %v4963_v4 }
 0x415   :  { %v1592_v44 = vpop.xlane.xlu0 %1591  ;;  %v1784_v22 = vadd.f32 %v1721_v11, %v1720_v16  ;;  %v1723_v9 = vmul.f32 %v4966_v19, %v4966_v19 }
 0x416   :  { %v4983_v52 = vsub.f32 %v4761_v20, %v1622_v50  ;;  %v4986_v46 = vsub.f32 %v4764_v29, %v1622_v50  ;;  %v1633_v13 = vmul.f32 0.00390625, %v1592_v44  ;;  %v1700_v60 = vmul.f32 %v4973_v31, %v4973_v31 }
 0x417   :  { %1785 = vadd.xlane.f32.xlu1 %v1784_v22  ;;  %v1595_v34 = vpop.xlane.xlu1 %1594  ;;  %v1787_v62 = vadd.f32 %v1723_v9, %v1722_v14  ;;  %v1701_v16 = vmul.f32 %v4976_v49, %v4976_v49 }
 0x418   :  { %v4993_v11 = vsub.f32 %v4771_v40, %v1633_v13  ;;  %v4996_v43 = vsub.f32 %v4774_v38, %v1633_v13  ;;  %v1634_v20 = vmul.f32 0.00390625, %v1595_v34  ;;  %v1702_v29 = vmul.f32 %v4983_v52, %v4983_v52 }
 0x419   :  { %1788 = vadd.xlane.f32.xlu0 %v1787_v62  ;;  %v1562_v50 = vpop.xlane.xlu0 %1561  ;;  %v1754_v44 = vadd.f32 %v1701_v16, %v1700_v60  ;;  %v1703_v14 = vmul.f32 %v4986_v46, %v4986_v46 }
 0x41a   :  { %v5003_v22 = vsub.f32 %v4779_v7, %v1634_v20  ;;  %v5006_v40 = vsub.f32 %v4788_v27, %v1634_v20  ;;  %v1623_v38 = vmul.f32 0.00390625, %v1562_v50  ;;  %v1724_v9 = vmul.f32 %v4993_v11, %v4993_v11 }
 0x41b   :  { %1755 = vadd.xlane.f32.xlu1 %v1754_v44  ;;  %v1565_v13 = vpop.xlane.xlu1 %1564  ;;  %v1757_v34 = vadd.f32 %v1703_v14, %v1702_v29  ;;  %v1725_v10 = vmul.f32 %v4996_v43, %v4996_v43 }
 0x41c   :  { %v5013_v60 = vsub.f32 %v4782_v42, %v1623_v38  ;;  %v5016_v62 = vsub.f32 %v4785_v6, %v1623_v38  ;;  %v1624_v7 = vmul.f32 0.00390625, %v1565_v13  ;;  %v1726_v27 = vmul.f32 %v5003_v22, %v5003_v22 }
 0x41d   :  { %1758 = vadd.xlane.f32.xlu0 %v1757_v34  ;;  %v1598_v16 = vpop.xlane.xlu0 %1597  ;;  %v1790_v20 = vadd.f32 %v1725_v10, %v1724_v9  ;;  %v1727_v50 = vmul.f32 %v5006_v40, %v5006_v40 }
 0x41e   :  { %v5023_v29 = vsub.f32 %v4793_v47, %v1624_v7  ;;  %v5026_v44 = vsub.f32 %v4796_v45, %v1624_v7  ;;  %v1635_v42 = vmul.f32 0.00390625, %v1598_v16  ;;  %v1704_v6 = vmul.f32 %v5013_v60, %v5013_v60 }
 0x41f   :  { %1791 = vadd.xlane.f32.xlu1 %v1790_v20  ;;  %v1601_v14 = vpop.xlane.xlu1 %1600  ;;  %v1793_v38 = vadd.f32 %v1727_v50, %v1726_v27  ;;  %v1705_v13 = vmul.f32 %v5016_v62, %v5016_v62 }
 0x420   :  { %v5033_v9 = vsub.f32 %v4803_v2, %v1635_v42  ;;  %v5036_v34 = vsub.f32 %v4806_v37, %v1635_v42  ;;  %v1636_v47 = vmul.f32 0.00390625, %v1601_v14  ;;  %v1706_v45 = vmul.f32 %v5023_v29, %v5023_v29 }
 0x421   :  { %1794 = vadd.xlane.f32.xlu0 %v1793_v38  ;;  %v1568_v10 = vpop.xlane.xlu0 %1567  ;;  %v1760_v7 = vadd.f32 %v1705_v13, %v1704_v6  ;;  %v1707_v16 = vmul.f32 %v5026_v44, %v5026_v44 }
 0x422   :  { %v5043_v27 = vsub.f32 %v4811_v55, %v1636_v47  ;;  %v5046_v20 = vsub.f32 %v4820_v51, %v1636_v47  ;;  %v1625_v2 = vmul.f32 0.00390625, %v1568_v10  ;;  %v1728_v37 = vmul.f32 %v5033_v9, %v5033_v9 }
 0x423   :  { %1761 = vadd.xlane.f32.xlu1 %v1760_v7  ;;  %v1571_v50 = vpop.xlane.xlu1 %1570  ;;  %v1763_v42 = vadd.f32 %v1707_v16, %v1706_v45  ;;  %v1729_v14 = vmul.f32 %v5036_v34, %v5036_v34 }
 0x424   :  { %v5053_v6 = vsub.f32 %v4814_v54, %v1625_v2  ;;  %v5056_v38 = vsub.f32 %v4817_v48, %v1625_v2  ;;  %v1626_v55 = vmul.f32 0.00390625, %v1571_v50  ;;  %v1730_v51 = vmul.f32 %v5043_v27, %v5043_v27 }
 0x425   :  { %1764 = vadd.xlane.f32.xlu0 %v1763_v42  ;;  %v1604_v13 = vpop.xlane.xlu0 %1603  ;;  %v1796_v47 = vadd.f32 %v1729_v14, %v1728_v37  ;;  %v1731_v10 = vmul.f32 %v5046_v20, %v5046_v20 }
 0x426   :  { %v5063_v45 = vsub.f32 %v4825_v59, %v1626_v55  ;;  %v5066_v7 = vsub.f32 %v4828_v32, %v1626_v55  ;;  %v1637_v54 = vmul.f32 0.00390625, %v1604_v13  ;;  %v1708_v48 = vmul.f32 %v5053_v6, %v5053_v6 }
 0x427   :  { %1797 = vadd.xlane.f32.xlu1 %v1796_v47  ;;  %v1607_v16 = vpop.xlane.xlu1 %1606  ;;  %v1799_v2 = vadd.f32 %v1731_v10, %v1730_v51  ;;  %v1709_v50 = vmul.f32 %v5056_v38, %v5056_v38 }
 0x428   :  { %v5073_v37 = vsub.f32 %v4835_v63, %v1637_v54  ;;  %v5076_v42 = vsub.f32 %v4838_v28, %v1637_v54  ;;  %v1638_v59 = vmul.f32 0.00390625, %v1607_v16  ;;  %v1710_v32 = vmul.f32 %v5063_v45, %v5063_v45 }
 0x429   :  { %1800 = vadd.xlane.f32.xlu0 %v1799_v2  ;;  %v1574_v14 = vpop.xlane.xlu0 %1573  ;;  %v1766_v55 = vadd.f32 %v1709_v50, %v1708_v48  ;;  %v1711_v13 = vmul.f32 %v5066_v7, %v5066_v7 }
 0x42a   :  { %v5083_v51 = vsub.f32 %v4843_v5, %v1638_v59  ;;  %v5086_v47 = vsub.f32 %v4854_v39, %v1638_v59  ;;  %v1627_v63 = vmul.f32 0.00390625, %v1574_v14  ;;  %v1732_v28 = vmul.f32 %v5073_v37, %v5073_v37 }
 0x42b   :  { %1767 = vadd.xlane.f32.xlu1 %v1766_v55  ;;  %v1577_v10 = vpop.xlane.xlu1 %1576  ;;  %v1769_v54 = vadd.f32 %v1711_v13, %v1710_v32  ;;  %v1733_v16 = vmul.f32 %v5076_v42, %v5076_v42 }
 0x42c   :  { %v5093_v48 = vsub.f32 %v4847_v25, %v1627_v63  ;;  %v5096_v2 = vsub.f32 %v4851_v21, %v1627_v63  ;;  %v1628_v5 = vmul.f32 0.00390625, %v1577_v10  ;;  %v1734_v39 = vmul.f32 %v5083_v51, %v5083_v51 }
 0x42d   :  { %1770 = vadd.xlane.f32.xlu0 %v1769_v54  ;;  %v1802_v50 = vadd.f32 %v1733_v16, %v1732_v28  ;;  %v1735_v59 = vmul.f32 %v5086_v47, %v5086_v47 }
 0x42e   :  { %v5103_v32 = vsub.f32 %v4860_v18, %v1628_v5  ;;  %v5106_v14 = vsub.f32 %v4864_v36, %v1628_v5  ;;  %v1712_v25 = vmul.f32 %v5093_v48, %v5093_v48  ;;  %v1713_v21 = vmul.f32 %v5096_v2, %v5096_v2 }
 0x42f   :  { %1803 = vadd.xlane.f32.xlu1 %v1802_v50  ;;  %v1805_v55 = vadd.f32 %v1735_v59, %v1734_v39 }
 0x430   :  { %v1772_v13 = vadd.f32 %v1713_v21, %v1712_v25  ;;  %v1714_v63 = vmul.f32 %v5103_v32, %v5103_v32  ;;  %v1715_v28 = vmul.f32 %v5106_v14, %v5106_v14 }
 0x431   :  { %1806 = vadd.xlane.f32.xlu0 %v1805_v55 }
 0x432   :  { %v1775_v18 = vadd.f32 %v1715_v28, %v1714_v63 }
 0x433   :  { %1773 = vadd.xlane.f32.xlu1 %v1772_v13 }
 0x435   :  { %1776 = vadd.xlane.f32.xlu0 %v1775_v18 }
 0x46f   :  { %v1610_v36 = vpop.xlane.xlu0 %1609 }
 0x470   :  { %v1639_v10 = vmul.f32 0.00390625, %v1610_v36 }
 0x471   :  { %v1613_v54 = vpop.xlane.xlu1 %1612 }
 0x472   :  { %v1640_v16 = vmul.f32 0.00390625, %v1613_v54  ;;  %v5117_v5 = vsub.f32 %v4873_v61, %v1639_v10  ;;  %v5120_v39 = vsub.f32 %v4876_v30, %v1639_v10 }
 0x473   :  { %v1580_v25 = vpop.xlane.xlu0 %1579 }
 0x474   :  { %v5123_v50 = vsub.f32 %v4879_v3, %v1640_v16  ;;  %v5126_v59 = vsub.f32 %v4886_v15, %v1640_v16  ;;  %v1629_v21 = vmul.f32 0.00390625, %v1580_v25  ;;  %v1736_v13 = vmul.f32 %v5117_v5, %v5117_v5 }
 0x475   :  { %v1583_v55 = vpop.xlane.xlu1 %1582  ;;  %v1737_v63 = vmul.f32 %v5120_v39, %v5120_v39 }
 0x476   :  { %v1630_v61 = vmul.f32 0.00390625, %v1583_v55  ;;  %v1738_v30 = vmul.f32 %v5123_v50, %v5123_v50  ;;  %v1739_v3 = vmul.f32 %v5126_v59, %v5126_v59  ;;  %v5137_v28 = vsub.f32 %v4883_v1, %v1629_v21 }
 0x477   :  { %v5140_v15 = vsub.f32 %v4890_v17, %v1629_v21  ;;  %v1808_v18 = vadd.f32 %v1737_v63, %v1736_v13 }
 0x478   :  { %6075 = vst [vmem:[#allocation12_spill] sm:$0xff] %v5137_v28  ;;  %v5143_v36 = vsub.f32 %v4894_v8, %v1630_v61  ;;  %v5146_v10 = vsub.f32 %v4898_v26, %v1630_v61  ;;  %v1811_v54 = vadd.f32 %v1739_v3, %v1738_v30  ;;  %v1716_v25 = vmul.f32 %v5137_v28, %v5137_v28 }
 0x479   :  { %1809 = vadd.xlane.f32.xlu1 %v1808_v18  ;;  %v1744_v16 = vpop.xlane.xlu1 %1743  ;;  %v1717_v1 = vmul.f32 %v5140_v15, %v5140_v15 }
 0x47a   :  { %6076 = vst [vmem:[#allocation14_spill] sm:$0xff] %v5143_v36  ;;  %v1718_v17 = vmul.f32 %v5143_v36, %v5143_v36  ;;  %v1719_v21 = vmul.f32 %v5146_v10, %v5146_v10  ;;  %v1817_v8 = vmul.f32 0.00390625, %v1744_v16  ;;  %1812 = vadd.xlane.f32.xlu0 %v1811_v54 }
 0x47b   :  { %v1616_v55 = vpop.xlane.xlu0 %1615  ;;  %v1778_v26 = vadd.f32 %v1717_v1, %v1716_v25 }
 0x47c   :  { %v1842_v13 = vadd.f32 1e-05, %v1817_v8  ;;  %v1641_v63 = vmul.f32 0.00390625, %v1616_v55  ;;  %v1781_v61 = vadd.f32 %v1719_v21, %v1718_v17 }
 0x47d   :  { %1779 = vadd.xlane.f32.xlu1 %v1778_v26  ;;  %v1750_v30 = vpop.xlane.xlu1 %1749 }
 0x47e   :  { %3540 = vrsqrt.f32 %v1842_v13  ;;  %v5157_v3 = vsub.f32 %v4931_v35, %v1641_v63  ;;  %v5160_v18 = vsub.f32 %v4934_v56, %v1641_v63  ;;  %v1819_v36 = vmul.f32 0.00390625, %v1750_v30  ;;  %1782 = vadd.xlane.f32.xlu0 %v1781_v61  ;;  %v1942_v56 = vld [vmem:[%s6016_s7] sm:$0x3]  ;;  %v6079_v13 = vld [vmem:[#allocation8_spill] sm:$0xff]  ;;  %v6080_v61 = vld [vmem:[#allocation9_spill] sm:$0xff] }
 0x47f   :  { %v1747_v28 = vpop.xlane.xlu0 %1746  ;;  %v5170_v63 = vrot.slane %v1942_v56, %v6079_v13 }
 0x480   :  { %6077 = vst [vmem:[#allocation13_spill] sm:$0xff] %v5157_v3  ;;  %6078 = vst [vmem:[#allocation16_spill] sm:$0xff] %v5160_v18  ;;  %v1740_v54 = vmul.f32 %v5157_v3, %v5157_v3  ;;  %v1741_v16 = vmul.f32 %v5160_v18, %v5160_v18  ;;  %v1844_v25 = vadd.f32 1e-05, %v1819_v36  ;;  %v1818_v1 = vmul.f32 0.00390625, %v1747_v28  ;;  %v6081_v28 = vld [vmem:[#allocation10_spill] sm:$0xff] }
 0x481   :  { %v5173_v36 = vrot.slane %v1942_v56, %v6080_v61 }
 0x482   :  { %3542 = vrsqrt.f32 %v1844_v25  ;;  %v1843_v17 = vadd.f32 1e-05, %v1818_v1  ;;  %v1814_v21 = vadd.f32 %v1741_v16, %v1740_v54  ;;  %v2004_v16 = vld [vmem:[%s6017_s8] sm:$0x3] }
 0x483   :  { %v1753_v8 = vpop.xlane.xlu0 %1752 }
 0x484   :  { %3544 = vrsqrt.f32 %v1843_v17  ;;  %v1820_v35 = vmul.f32 0.00390625, %v1753_v8  ;;  %1815 = vadd.xlane.f32.xlu1 %v1814_v21  ;;  %v5183_v21 = vrot.slane %v2004_v16, %v6079_v13  ;;  %v5186_v8 = vrot.slane %v2004_v16, %v6080_v61 }
 0x486   :  { %v1845_v55 = vadd.f32 1e-05, %v1820_v35 }
 0x488   :  { %v3541_v26 = vpop.eup %3540  ;;  %3546 = vrsqrt.f32 %v1845_v55 }
 0x489   :  { %v1892_v30 = vmul.f32 %v3541_v26, %v6081_v28  ;;  %v1893_v54 = vmul.f32 %v3541_v26, %v4906_v0 }
 0x48b   :  { %v1954_v1 = vmul.f32 %v5170_v63, %v1892_v30  ;;  %v1955_v17 = vmul.f32 %v5173_v36, %v1893_v54 }
 0x48c   :  { %v3543_v25 = vpop.eup %3542 }
 0x48d   :  { %v1897_v35 = vmul.f32 %v3543_v25, %v4918_v24  ;;  %v2017_v26 = vadd.f32 %v5186_v8, %v1955_v17  ;;  %v2016_v28 = vadd.f32 %v5183_v21, %v1954_v1  ;;  %v1896_v16 = vmul.f32 %v3543_v25, %v4915_v58 }
 0x48e   :  { %v3545_v56 = vpop.eup %3544 }
 0x48f   :  { %v1894_v0 = vmul.f32 %v3545_v56, %v4925_v53  ;;  %v1895_v55 = vmul.f32 %v3545_v56, %v4928_v12  ;;  %v1959_v30 = vmul.f32 %v5173_v36, %v1897_v35  ;;  %v2067_v17 = vmax.f32 %v2017_v26, 0.0 }
 0x490   :  { %v2066_v56 = vmax.f32 %v2016_v28, 0.0  ;;  %v1958_v58 = vmul.f32 %v5170_v63, %v1896_v16 }
 0x491   :  { %v1956_v54 = vmul.f32 %v5170_v63, %v1894_v0  ;;  %v1957_v13 = vmul.f32 %v5173_v36, %v1895_v55  ;;  %v2021_v1 = vadd.f32 %v5186_v8, %v1959_v30 }
 0x492   :  { %v3547_v3 = vpop.eup %3546  ;;  %v2020_v26 = vadd.f32 %v5183_v21, %v1958_v58 }
 0x493   :  { %v2019_v24 = vadd.f32 %v5186_v8, %v1957_v13  ;;  %v2018_v61 = vadd.f32 %v5183_v21, %v1956_v54  ;;  %v1899_v53 = vmul.f32 %v3547_v3, %v4946_v41  ;;  %v1898_v12 = vmul.f32 %v3547_v3, %v4943_v33 }
 0x494   :  { %v2071_v33 = vmax.f32 %v2021_v1, 0.0  ;;  %v2070_v30 = vmax.f32 %v2020_v26, 0.0 }
 0x495   :  { %v2069_v35 = vmax.f32 %v2019_v24, 0.0  ;;  %v2068_v18 = vmax.f32 %v2018_v61, 0.0  ;;  %v1961_v0 = vmul.f32 %v5173_v36, %v1899_v53  ;;  %v1960_v55 = vmul.f32 %v5170_v63, %v1898_v12 }
 0x497   :  { %v2117_v25 = vpack.c.bf16 %v2069_v35, %v2067_v17  ;;  %v2116_v13 = vpack.c.bf16 %v2068_v18, %v2066_v56  ;;  %v2023_v54 = vadd.f32 %v5186_v8, %v1961_v0  ;;  %v2022_v41 = vadd.f32 %v5183_v21, %v1960_v55 }
 0x499   :  { %2378 = vmatprep.mubr.bf16.mxu0 %v2117_v25  ;;  %v2073_v3 = vmax.f32 %v2023_v54, 0.0  ;;  %v2072_v61 = vmax.f32 %v2022_v41, 0.0 }
 0x49a   :  { %2379 = vmatmul.mubr.bf16.vlgmr.msra.gmra.mrb[52].mxu0 %v2116_v13 }
 0x49b   :  { %v2119_v28 = vpack.c.bf16 %v2073_v3, %v2071_v33  ;;  %v2118_v24 = vpack.c.bf16 %v2072_v61, %v2070_v30 }
 0x49d   :  { %2388 = vmatprep.mubr.bf16.mxu0 %v2119_v28 }
 0x4a2   :  { %2389 = vmatmul.mubr.bf16.gmra.mrb[56].mxu0 %v2118_v24 }
 0x4a4   :  { %v1786_v53 = vpop.xlane.xlu1 %1785 }
 0x4a5   :  { %v1831_v16 = vmul.f32 0.00390625, %v1786_v53 }
 0x4a6   :  { %v1789_v12 = vpop.xlane.xlu0 %1788 }
 0x4a7   :  { %v1856_v18 = vadd.f32 1e-05, %v1831_v16  ;;  %v1832_v17 = vmul.f32 0.00390625, %v1789_v12 }
 0x4a8   :  { %v1756_v56 = vpop.xlane.xlu1 %1755 }
 0x4a9   :  { %3548 = vrsqrt.f32 %v1856_v18  ;;  %v1857_v35 = vadd.f32 1e-05, %v1832_v17  ;;  %v1821_v0 = vmul.f32 0.00390625, %v1756_v56 }
 0x4aa   :  { %v1759_v1 = vpop.xlane.xlu0 %1758 }
 0x4ab   :  { %3550 = vrsqrt.f32 %v1857_v35  ;;  %v1846_v55 = vadd.f32 1e-05, %v1821_v0  ;;  %v1822_v25 = vmul.f32 0.00390625, %v1759_v1 }
 0x4ac   :  { %v1792_v58 = vpop.xlane.xlu1 %1791 }
 0x4ad   :  { %3552 = vrsqrt.f32 %v1846_v55  ;;  %v1847_v13 = vadd.f32 1e-05, %v1822_v25  ;;  %v1833_v54 = vmul.f32 0.00390625, %v1792_v58 }
 0x4ae   :  { %v1795_v41 = vpop.xlane.xlu0 %1794 }
 0x4af   :  { %3554 = vrsqrt.f32 %v1847_v13  ;;  %v1858_v33 = vadd.f32 1e-05, %v1833_v54  ;;  %v1834_v3 = vmul.f32 0.00390625, %v1795_v41 }
 0x4b0   :  { %v1762_v26 = vpop.xlane.xlu1 %1761 }
 0x4b1   :  { %v1859_v28 = vadd.f32 1e-05, %v1834_v3  ;;  %v1823_v61 = vmul.f32 0.00390625, %v1762_v26  ;;  %3556 = vrsqrt.f32 %v1858_v33 }
 0x4b2   :  { %v1765_v30 = vpop.xlane.xlu0 %1764 }
 0x4b3   :  { %v3549_v24 = vpop.eup %3548  ;;  %v1848_v53 = vadd.f32 1e-05, %v1823_v61  ;;  %v1824_v16 = vmul.f32 0.00390625, %v1765_v30  ;;  %3558 = vrsqrt.f32 %v1859_v28 }
 0x4b4   :  { %v1920_v12 = vmul.f32 %v3549_v24, %v4957_v23  ;;  %v1798_v18 = vpop.xlane.xlu1 %1797  ;;  %v1921_v17 = vmul.f32 %v3549_v24, %v4960_v57 }
 0x4b5   :  { %v3551_v56 = vpop.eup %3550  ;;  %3560 = vrsqrt.f32 %v1848_v53  ;;  %v1849_v35 = vadd.f32 1e-05, %v1824_v16  ;;  %v1835_v0 = vmul.f32 0.00390625, %v1798_v18 }
 0x4b6   :  { %v1982_v1 = vmul.f32 %v5170_v63, %v1920_v12  ;;  %v1922_v55 = vmul.f32 %v3551_v56, %v4963_v4  ;;  %v1801_v25 = vpop.xlane.xlu0 %1800  ;;  %v1923_v58 = vmul.f32 %v3551_v56, %v4966_v19  ;;  %v1983_v13 = vmul.f32 %v5173_v36, %v1921_v17 }
 0x4b7   :  { %v3553_v54 = vpop.eup %3552  ;;  %3562 = vrsqrt.f32 %v1849_v35  ;;  %v1860_v23 = vadd.f32 1e-05, %v1835_v0  ;;  %v1836_v41 = vmul.f32 0.00390625, %v1801_v25 }
 0x4b8   :  { %v1984_v33 = vmul.f32 %v5170_v63, %v1922_v55  ;;  %v1768_v57 = vpop.xlane.xlu1 %1767  ;;  %v1985_v3 = vmul.f32 %v5173_v36, %v1923_v58  ;;  %v2045_v26 = vadd.f32 %v5186_v8, %v1983_v13  ;;  %v2044_v28 = vadd.f32 %v5183_v21, %v1982_v1 }
 0x4b9   :  { %v3555_v61 = vpop.eup %3554  ;;  %3564 = vrsqrt.f32 %v1860_v23  ;;  %v1861_v4 = vadd.f32 1e-05, %v1836_v41  ;;  %v1825_v30 = vmul.f32 0.00390625, %v1768_v57  ;;  %v1901_v19 = vmul.f32 %v3553_v54, %v4976_v49 }
 0x4ba   :  { %v1771_v24 = vpop.xlane.xlu0 %1770  ;;  %v2047_v53 = vadd.f32 %v5186_v8, %v1985_v3  ;;  %v2095_v16 = vmax.f32 %v2045_v26, 0.0  ;;  %v2046_v12 = vadd.f32 %v5183_v21, %v1984_v33  ;;  %v2094_v18 = vmax.f32 %v2044_v28, 0.0 }
 0x4bb   :  { %3566 = vrsqrt.f32 %v1861_v4  ;;  %v1850_v17 = vadd.f32 1e-05, %v1825_v30  ;;  %v1826_v56 = vmul.f32 0.00390625, %v1771_v24  ;;  %v1903_v35 = vmul.f32 %v3555_v61, %v4986_v46  ;;  %v3557_v49 = vpop.eup %3556 }
 0x4bc   :  { %v1804_v0 = vpop.xlane.xlu1 %1803  ;;  %v2097_v1 = vmax.f32 %v2047_v53, 0.0  ;;  %v2096_v55 = vmax.f32 %v2046_v12, 0.0  ;;  %v1963_v25 = vmul.f32 %v5173_v36, %v1901_v19  ;;  %v1900_v58 = vmul.f32 %v3553_v54, %v4973_v31 }
 0x4bd   :  { %3568 = vrsqrt.f32 %v1850_v17  ;;  %v1851_v13 = vadd.f32 1e-05, %v1826_v56  ;;  %v1837_v23 = vmul.f32 0.00390625, %v1804_v0  ;;  %v1965_v41 = vmul.f32 %v5173_v36, %v1903_v35  ;;  %v3559_v33 = vpop.eup %3558 }
 0x4be   :  { %v1807_v57 = vpop.xlane.xlu0 %1806  ;;  %v2131_v3 = vpack.c.bf16 %v2097_v1, %v2095_v16  ;;  %v2130_v26 = vpack.c.bf16 %v2096_v55, %v2094_v18  ;;  %v2025_v28 = vadd.f32 %v5186_v8, %v1963_v25  ;;  %v1902_v46 = vmul.f32 %v3555_v61, %v4983_v52 }
 0x4bf   :  { %v3561_v4 = vpop.eup %3560  ;;  %3570 = vrsqrt.f32 %v1851_v13  ;;  %v1862_v30 = vadd.f32 1e-05, %v1837_v23  ;;  %v1838_v19 = vmul.f32 0.00390625, %v1807_v57  ;;  %v2027_v31 = vadd.f32 %v5186_v8, %v1965_v41 }
 0x4c0   :  { %v1774_v54 = vpop.xlane.xlu1 %1773  ;;  %2448 = vmatprep.mubr.bf16.mxu1 %v2131_v3  ;;  %v2075_v24 = vmax.f32 %v2025_v28, 0.0  ;;  %v1962_v53 = vmul.f32 %v5170_v63, %v1900_v58  ;;  %v1964_v12 = vmul.f32 %v5170_v63, %v1902_v46  ;;  %v1925_v16 = vmul.f32 %v3557_v49, %v4996_v43 }
 0x4c1   :  { %v3563_v18 = vpop.eup %3562  ;;  %3572 = vrsqrt.f32 %v1862_v30  ;;  %v1863_v17 = vadd.f32 1e-05, %v1838_v19  ;;  %v1827_v56 = vmul.f32 0.00390625, %v1774_v54  ;;  %2449 = vmatmul.mubr.bf16.vlgmr.msra.gmra.mrb[52].mxu1 %v2130_v26  ;;  %v2077_v52 = vmax.f32 %v2027_v31, 0.0 }
 0x4c2   :  { %v1777_v61 = vpop.xlane.xlu0 %1776  ;;  %v2024_v35 = vadd.f32 %v5183_v21, %v1962_v53  ;;  %v2026_v0 = vadd.f32 %v5183_v21, %v1964_v12  ;;  %v1927_v1 = vmul.f32 %v3559_v33, %v5006_v40  ;;  %v1987_v55 = vmul.f32 %v5173_v36, %v1925_v16 }
 0x4c3   :  { %v3565_v25 = vpop.eup %3564  ;;  %3574 = vrsqrt.f32 %v1863_v17  ;;  %v1852_v58 = vadd.f32 1e-05, %v1827_v56  ;;  %v1828_v13 = vmul.f32 0.00390625, %v1777_v61  ;;  %v2121_v43 = vpack.c.bf16 %v2077_v52, %v2075_v24 }
 0x4c4   :  { %v2074_v23 = vmax.f32 %v2024_v35, 0.0  ;;  %v2076_v41 = vmax.f32 %v2026_v0, 0.0  ;;  %v1989_v57 = vmul.f32 %v5173_v36, %v1927_v1  ;;  %v2049_v3 = vadd.f32 %v5186_v8, %v1987_v55 }
 0x4c5   :  { %v3567_v26 = vpop.eup %3566  ;;  %3576 = vrsqrt.f32 %v1852_v58  ;;  %v1853_v28 = vadd.f32 1e-05, %v1828_v13  ;;  %2398 = vmatprep.mubr.bf16.mxu0 %v2121_v43  ;;  %v1924_v46 = vmul.f32 %v3557_v49, %v4993_v11  ;;  %v1926_v40 = vmul.f32 %v3559_v33, %v5003_v22 }
 0x4c6   :  { %v2120_v30 = vpack.c.bf16 %v2076_v41, %v2074_v23  ;;  %v2051_v19 = vadd.f32 %v5186_v8, %v1989_v57  ;;  %v2099_v31 = vmax.f32 %v2049_v3, 0.0  ;;  %v1905_v54 = vmul.f32 %v3561_v4, %v5016_v62 }
 0x4c7   :  { %v3569_v24 = vpop.eup %3568  ;;  %3578 = vrsqrt.f32 %v1853_v28  ;;  %v1986_v53 = vmul.f32 %v5170_v63, %v1924_v46  ;;  %v1988_v12 = vmul.f32 %v5170_v63, %v1926_v40  ;;  %v1907_v16 = vmul.f32 %v3563_v18, %v5026_v44 }
 0x4c8   :  { %2399 = vmatmul.mubr.bf16.gmra.mrb[60].mxu0 %v2120_v30  ;;  %v2101_v17 = vmax.f32 %v2051_v19, 0.0  ;;  %v1967_v11 = vmul.f32 %v5173_v36, %v1905_v54  ;;  %v1904_v22 = vmul.f32 %v3561_v4, %v5013_v60  ;;  %v1906_v49 = vmul.f32 %v3563_v18, %v5023_v29 }
 0x4c9   :  { %v3571_v33 = vpop.eup %3570  ;;  %v2048_v56 = vadd.f32 %v5183_v21, %v1986_v53  ;;  %v2050_v62 = vadd.f32 %v5183_v21, %v1988_v12  ;;  %v1969_v52 = vmul.f32 %v5173_v36, %v1907_v16  ;;  %v1929_v61 = vmul.f32 %v3565_v25, %v5036_v34 }
 0x4ca   :  { %v2133_v35 = vpack.c.bf16 %v2101_v17, %v2099_v31  ;;  %v2029_v44 = vadd.f32 %v5186_v8, %v1967_v11  ;;  %v1966_v0 = vmul.f32 %v5170_v63, %v1904_v22  ;;  %v1968_v1 = vmul.f32 %v5170_v63, %v1906_v49 }
 0x4cb   :  { %v3573_v55 = vpop.eup %3572  ;;  %v2098_v60 = vmax.f32 %v2048_v56, 0.0  ;;  %v2100_v4 = vmax.f32 %v2050_v62, 0.0  ;;  %v2031_v29 = vadd.f32 %v5186_v8, %v1969_v52  ;;  %v1931_v18 = vmul.f32 %v3567_v26, %v5046_v20 }
 0x4cc   :  { %2458 = vmatprep.mubr.bf16.mxu1 %v2133_v35  ;;  %v2079_v58 = vmax.f32 %v2029_v44, 0.0  ;;  %v2028_v13 = vadd.f32 %v5183_v21, %v1966_v0  ;;  %v2030_v34 = vadd.f32 %v5183_v21, %v1968_v1  ;;  %v1991_v43 = vmul.f32 %v5173_v36, %v1929_v61 }
 0x4cd   :  { %v3575_v23 = vpop.eup %3574  ;;  %v2132_v41 = vpack.c.bf16 %v2100_v4, %v2098_v60  ;;  %v2081_v57 = vmax.f32 %v2031_v29, 0.0  ;;  %v1993_v3 = vmul.f32 %v5173_v36, %v1931_v18  ;;  %v1928_v28 = vmul.f32 %v3565_v25, %v5033_v9 }
 0x4ce   :  { %v2078_v46 = vmax.f32 %v2028_v13, 0.0  ;;  %v2080_v40 = vmax.f32 %v2030_v34, 0.0  ;;  %v2053_v30 = vadd.f32 %v5186_v8, %v1991_v43  ;;  %v1930_v20 = vmul.f32 %v3567_v26, %v5043_v27 }
 0x4cf   :  { %v3577_v19 = vpop.eup %3576  ;;  %2459 = vmatmul.mubr.bf16.gmra.mrb[56].mxu1 %v2132_v41  ;;  %v2123_v31 = vpack.c.bf16 %v2081_v57, %v2079_v58  ;;  %v2055_v54 = vadd.f32 %v5186_v8, %v1993_v3  ;;  %v1990_v53 = vmul.f32 %v5170_v63, %v1928_v28  ;;  %v1909_v12 = vmul.f32 %v3569_v24, %v5056_v38 }
 0x4d0   :  { %v2122_v16 = vpack.c.bf16 %v2080_v40, %v2078_v46  ;;  %v2103_v17 = vmax.f32 %v2053_v30, 0.0  ;;  %v1992_v11 = vmul.f32 %v5170_v63, %v1930_v20  ;;  %v1911_v9 = vmul.f32 %v3571_v33, %v5066_v7 }
 0x4d1   :  { %v3579_v25 = vpop.eup %3578  ;;  %2408 = vmatprep.mubr.bf16.mxu0 %v2123_v31  ;;  %v2105_v22 = vmax.f32 %v2055_v54, 0.0  ;;  %v2052_v27 = vadd.f32 %v5183_v21, %v1990_v53  ;;  %v1971_v26 = vmul.f32 %v5173_v36, %v1909_v12  ;;  %v1908_v49 = vmul.f32 %v3569_v24, %v5053_v6 }
 0x4d2   :  { %2409 = vmatmul.mubr.bf16.gmra.mrb[64].mxu0 %v2122_v16  ;;  %v2054_v56 = vadd.f32 %v5183_v21, %v1992_v11  ;;  %v1973_v38 = vmul.f32 %v5173_v36, %v1911_v9  ;;  %v1910_v62 = vmul.f32 %v3571_v33, %v5063_v45  ;;  %v1933_v52 = vmul.f32 %v3573_v55, %v5076_v42 }
 0x4d3   :  { %v2135_v61 = vpack.c.bf16 %v2105_v22, %v2103_v17  ;;  %v2102_v7 = vmax.f32 %v2052_v27, 0.0  ;;  %v2033_v35 = vadd.f32 %v5186_v8, %v1971_v26  ;;  %v1970_v44 = vmul.f32 %v5170_v63, %v1908_v49 }
 0x4d4   :  { %v2104_v0 = vmax.f32 %v2054_v56, 0.0  ;;  %v2035_v1 = vadd.f32 %v5186_v8, %v1973_v38  ;;  %v1972_v6 = vmul.f32 %v5170_v63, %v1910_v62  ;;  %v1935_v24 = vmul.f32 %v3575_v23, %v5086_v47 }
 0x4d5   :  { %2468 = vmatprep.mubr.bf16.mxu1 %v2135_v61  ;;  %v2083_v60 = vmax.f32 %v2033_v35, 0.0  ;;  %v2032_v4 = vadd.f32 %v5183_v21, %v1970_v44  ;;  %v1995_v45 = vmul.f32 %v5173_v36, %v1933_v52  ;;  %v1932_v42 = vmul.f32 %v3573_v55, %v5073_v37 }
 0x4d6   :  { %v2134_v33 = vpack.c.bf16 %v2104_v0, %v2102_v7  ;;  %v2085_v29 = vmax.f32 %v2035_v1, 0.0  ;;  %v2034_v18 = vadd.f32 %v5183_v21, %v1972_v6  ;;  %v1997_v58 = vmul.f32 %v5173_v36, %v1935_v24 }
 0x4d7   :  { %v2082_v13 = vmax.f32 %v2032_v4, 0.0  ;;  %v2057_v34 = vadd.f32 %v5186_v8, %v1995_v45  ;;  %v1934_v43 = vmul.f32 %v3575_v23, %v5083_v51  ;;  %v1994_v47 = vmul.f32 %v5170_v63, %v1932_v42 }
 0x4d8   :  { %2469 = vmatmul.mubr.bf16.gmra.mrb[60].mxu1 %v2134_v33  ;;  %v2125_v41 = vpack.c.bf16 %v2085_v29, %v2083_v60  ;;  %v2084_v57 = vmax.f32 %v2034_v18, 0.0  ;;  %v2059_v3 = vadd.f32 %v5186_v8, %v1997_v58  ;;  %v1913_v37 = vmul.f32 %v3577_v19, %v5096_v2 }
 0x4d9   :  { %v2107_v55 = vmax.f32 %v2057_v34, 0.0  ;;  %v1996_v28 = vmul.f32 %v5170_v63, %v1934_v43  ;;  %v2056_v46 = vadd.f32 %v5183_v21, %v1994_v47  ;;  %v1915_v40 = vmul.f32 %v3579_v25, %v5106_v14 }
 0x4da   :  { %2418 = vmatprep.mubr.bf16.mxu0 %v2125_v41  ;;  %v2124_v30 = vpack.c.bf16 %v2084_v57, %v2082_v13  ;;  %v2109_v20 = vmax.f32 %v2059_v3, 0.0  ;;  %v1975_v51 = vmul.f32 %v5173_v36, %v1913_v37  ;;  %v1912_v23 = vmul.f32 %v3577_v19, %v5093_v48 }
 0x4db   :  { %v2058_v31 = vadd.f32 %v5183_v21, %v1996_v28  ;;  %v1977_v54 = vmul.f32 %v5173_v36, %v1915_v40  ;;  %v1914_v2 = vmul.f32 %v3579_v25, %v5103_v32  ;;  %v2106_v14 = vmax.f32 %v2056_v46, 0.0  ;;  %v6082_v28 = vld [vmem:[#allocation12_spill] sm:$0xff] }
 0x4dc   :  { %2419 = vmatmul.mubr.bf16.gmra.mrb[68].mxu0 %v2124_v30  ;;  %v2137_v53 = vpack.c.bf16 %v2109_v20, %v2107_v55  ;;  %v2037_v12 = vadd.f32 %v5186_v8, %v1975_v51  ;;  %v1974_v16 = vmul.f32 %v5170_v63, %v1912_v23  ;;  %v6083_v30 = vld [vmem:[#allocation14_spill] sm:$0xff] }
 0x4dd   :  { %v2108_v17 = vmax.f32 %v2058_v31, 0.0  ;;  %v2039_v11 = vadd.f32 %v5186_v8, %v1977_v54  ;;  %v1976_v9 = vmul.f32 %v5170_v63, %v1914_v2 }
 0x4de   :  { %2478 = vmatprep.mubr.bf16.mxu1 %v2137_v53  ;;  %v2036_v48 = vadd.f32 %v5183_v21, %v1974_v16  ;;  %v2087_v22 = vmax.f32 %v2037_v12, 0.0 }
 0x4df   :  { %v2136_v19 = vpack.c.bf16 %v2108_v17, %v2106_v14  ;;  %v2089_v27 = vmax.f32 %v2039_v11, 0.0  ;;  %v2038_v32 = vadd.f32 %v5183_v21, %v1976_v9 }
 0x4e0   :  { %v2086_v26 = vmax.f32 %v2036_v48, 0.0 }
 0x4e1   :  { %2479 = vmatmul.mubr.bf16.gmra.mrb[64].mxu1 %v2136_v19  ;;  %v2127_v25 = vpack.c.bf16 %v2089_v27, %v2087_v22  ;;  %v2088_v49 = vmax.f32 %v2038_v32, 0.0 }
 0x4e3   :  { %2428 = vmatprep.mubr.bf16.mxu0 %v2127_v25  ;;  %v2126_v56 = vpack.c.bf16 %v2088_v49, %v2086_v26  ;;  %v6084_v25 = vld [vmem:[#allocation16_spill] sm:$0xff]  ;;  %v6085_v49 = vld [vmem:[#allocation13_spill] sm:$0xff] }
 0x4e5   :  { %2429 = vmatmul.mubr.bf16.gmra.mrb[72].mxu0 %v2126_v56 }
 0x506   :  { %v1810_v38 = vpop.xlane.xlu1 %1809 }
 0x507   :  { %v1839_v62 = vmul.f32 0.00390625, %v1810_v38  ;;  %v1813_v52 = vpop.xlane.xlu0 %1812 }
 0x508   :  { %v1840_v61 = vmul.f32 0.00390625, %v1813_v52 }
 0x509   :  { %v1864_v7 = vadd.f32 1e-05, %v1839_v62 }
 0x50a   :  { %v1865_v35 = vadd.f32 1e-05, %v1840_v61  ;;  %v1780_v44 = vpop.xlane.xlu1 %1779 }
 0x50b   :  { %3580 = vrsqrt.f32 %v1864_v7  ;;  %v1829_v0 = vmul.f32 0.00390625, %v1780_v44  ;;  %v1783_v1 = vpop.xlane.xlu0 %1782 }
 0x50c   :  { %3582 = vrsqrt.f32 %v1865_v35  ;;  %v1830_v6 = vmul.f32 0.00390625, %v1783_v1 }
 0x50d   :  { %v1854_v24 = vadd.f32 1e-05, %v1829_v0 }
 0x50e   :  { %v1855_v60 = vadd.f32 1e-05, %v1830_v6 }
 0x50f   :  { %3584 = vrsqrt.f32 %v1854_v24  ;;  %v2174_v24 = vld [vmem:[%s6019_s10] sm:$0x3] }
 0x510   :  { %3586 = vrsqrt.f32 %v1855_v60  ;;  %v6086_v60 = vld [vmem:[#allocation8_spill] sm:$0xff] }
 0x511   :  { %v1816_v4 = vpop.xlane.xlu1 %1815 }
 0x512   :  { %v1841_v45 = vmul.f32 0.00390625, %v1816_v4 }
 0x514   :  { %v1866_v42 = vadd.f32 1e-05, %v1841_v45 }
 0x515   :  { %v3581_v33 = vpop.eup %3580 }
 0x516   :  { %v3583_v29 = vpop.eup %3582  ;;  %3588 = vrsqrt.f32 %v1866_v42  ;;  %v1937_v18 = vmul.f32 %v3581_v33, %v5120_v39  ;;  %v1936_v58 = vmul.f32 %v3581_v33, %v5117_v5 }
 0x517   :  { %v1939_v13 = vmul.f32 %v3583_v29, %v5126_v59  ;;  %v1938_v34 = vmul.f32 %v3583_v29, %v5123_v50 }
 0x518   :  { %v1999_v43 = vmul.f32 %v5173_v36, %v1937_v18  ;;  %v1998_v47 = vmul.f32 %v5170_v63, %v1936_v58 }
 0x519   :  { %v3585_v41 = vpop.eup %3584  ;;  %v2001_v57 = vmul.f32 %v5173_v36, %v1939_v13  ;;  %v2000_v3 = vmul.f32 %v5170_v63, %v1938_v34 }
 0x51a   :  { %v3587_v37 = vpop.eup %3586  ;;  %v2061_v55 = vadd.f32 %v5186_v8, %v1999_v43  ;;  %v2060_v39 = vadd.f32 %v5183_v21, %v1998_v47  ;;  %v1917_v5 = vmul.f32 %v3585_v41, %v5140_v15  ;;  %v1916_v59 = vmul.f32 %v3585_v41, %v6082_v28 }
 0x51b   :  { %v2063_v50 = vadd.f32 %v5186_v8, %v2001_v57  ;;  %v2062_v46 = vadd.f32 %v5183_v21, %v2000_v3  ;;  %v1919_v40 = vmul.f32 %v3587_v37, %v5146_v10  ;;  %v1918_v20 = vmul.f32 %v3587_v37, %v6083_v30 }
 0x51c   :  { %v2111_v51 = vmax.f32 %v2061_v55, 0.0  ;;  %v2110_v23 = vmax.f32 %v2060_v39, 0.0  ;;  %v1979_v31 = vmul.f32 %v5173_v36, %v1917_v5  ;;  %v1978_v54 = vmul.f32 %v5170_v63, %v1916_v59 }
 0x51d   :  { %v2113_v2 = vmax.f32 %v2063_v50, 0.0  ;;  %v2112_v53 = vmax.f32 %v2062_v46, 0.0  ;;  %v1981_v15 = vmul.f32 %v5173_v36, %v1919_v40  ;;  %v1980_v12 = vmul.f32 %v5170_v63, %v1918_v20 }
 0x51e   :  { %v2041_v16 = vadd.f32 %v5186_v8, %v1979_v31  ;;  %v2040_v14 = vadd.f32 %v5183_v21, %v1978_v54 }
 0x51f   :  { %v2139_v17 = vpack.c.bf16 %v2113_v2, %v2111_v51  ;;  %v2138_v10 = vpack.c.bf16 %v2112_v53, %v2110_v23  ;;  %v2043_v11 = vadd.f32 %v5186_v8, %v1981_v15  ;;  %v2042_v9 = vadd.f32 %v5183_v21, %v1980_v12 }
 0x520   :  { %v3589_v48 = vpop.eup %3588  ;;  %v2091_v19 = vmax.f32 %v2041_v16, 0.0  ;;  %v2090_v22 = vmax.f32 %v2040_v14, 0.0 }
 0x521   :  { %2488 = vmatprep.mubr.bf16.mxu1 %v2139_v17  ;;  %v2093_v27 = vmax.f32 %v2043_v11, 0.0  ;;  %v2092_v32 = vmax.f32 %v2042_v9, 0.0  ;;  %v1941_v26 = vmul.f32 %v3589_v48, %v6084_v25  ;;  %v1940_v56 = vmul.f32 %v3589_v48, %v6085_v49 }
 0x522   :  { %2489 = vmatmul.mubr.bf16.gmra.mrb[68].mxu1 %v2138_v10 }
 0x523   :  { %v2129_v38 = vpack.c.bf16 %v2093_v27, %v2091_v19  ;;  %v2128_v62 = vpack.c.bf16 %v2092_v32, %v2090_v22  ;;  %v2003_v52 = vmul.f32 %v5173_v36, %v1941_v26  ;;  %v2002_v61 = vmul.f32 %v5170_v63, %v1940_v56  ;;  %v6087_v63 = vld [vmem:[#allocation9_spill] sm:$0xff] }
 0x524   :  { %v5338_v36 = vrot.slane %v2174_v24, %v6086_v60  ;;  %v5341_v4 = vrot.slane %v2174_v24, %v6087_v63 }
 0x525   :  { %2438 = vmatprep.mubr.bf16.mxu0 %v2129_v38  ;;  %v2065_v7 = vadd.f32 %v5186_v8, %v2003_v52  ;;  %v2064_v35 = vadd.f32 %v5183_v21, %v2002_v61 }
 0x526   :  { %2439 = vmatmul.mubr.bf16.gmra.mrb[76].mxu0 %v2128_v62 }
 0x527   :  { %v2115_v44 = vmax.f32 %v2065_v7, 0.0  ;;  %v2114_v0 = vmax.f32 %v2064_v35, 0.0 }
 0x529   :  { %v2141_v1 = vpack.c.bf16 %v2115_v44, %v2115_v44  ;;  %v2140_v6 = vpack.c.bf16 %v2114_v0, %v2114_v0 }
 0x52b   :  { %2498 = vmatprep.mubr.bf16.mxu1 %v2141_v1 }
 0x52c   :  { %2499 = vmatmul.mubr.bf16.gmra.mrb[72].mxu1 %v2140_v6 }
 0x56d   :  { %v2380_v8 = vpop.f32.mrb[52].mxu0 }
 0x56e   :  { %v5344_v21 = vadd.f32 %v2380_v8, %v5338_v36  ;;  %v2382_v45 = vpop.f32.mrb[53].mxu0 }
 0x56f   :  { %v5347_v42 = vadd.f32 %v2382_v45, %v5341_v4  ;;  %v2384_v33 = vpop.f32.mrb[54].mxu0 }
 0x570   :  { %v5350_v29 = vadd.f32 %v2384_v33, %v5338_v36  ;;  %v2386_v18 = vpop.f32.mrb[55].mxu0 }
 0x571   :  { %v2507_v58 = vadd.f32 %v5347_v42, %v5344_v21  ;;  %v5355_v13 = vadd.f32 %v2386_v18, %v5341_v4 }
 0x573   :  { %v2510_v34 = vadd.f32 %v5355_v13, %v5350_v29  ;;  %2508 = vadd.xlane.f32.xlu0 %v2507_v58 }
 0x575   :  { %2511 = vadd.xlane.f32.xlu1 %v2510_v34  ;;  %v2390_v43 = vpop.f32.mrb[56].mxu0 }
 0x576   :  { %v5360_v47 = vadd.f32 %v2390_v43, %v5338_v36  ;;  %v2392_v41 = vpop.f32.mrb[57].mxu0 }
 0x577   :  { %v5363_v57 = vadd.f32 %v2392_v41, %v5341_v4  ;;  %v2394_v3 = vpop.f32.mrb[58].mxu0 }
 0x578   :  { %v5366_v37 = vadd.f32 %v2394_v3, %v5338_v36  ;;  %v2396_v55 = vpop.f32.mrb[59].mxu0 }
 0x579   :  { %v2513_v39 = vadd.f32 %v5363_v57, %v5360_v47  ;;  %v5371_v5 = vadd.f32 %v2396_v55, %v5341_v4 }
 0x57b   :  { %v2516_v28 = vadd.f32 %v5371_v5, %v5366_v37  ;;  %2514 = vadd.xlane.f32.xlu0 %v2513_v39 }
 0x57d   :  { %2517 = vadd.xlane.f32.xlu1 %v2516_v28 }
 0x594   :  { %v5375_v59 = vpop.f32.mrb[52].mxu1 }
 0x595   :  { %v5377_v50 = vpop.f32.mrb[53].mxu1 }
 0x596   :  { %v5379_v46 = vpop.f32.mrb[54].mxu1 }
 0x597   :  { %v5381_v40 = vpop.f32.mrb[55].mxu1 }
 0x59b   :  { %v2400_v30 = vpop.f32.mrb[60].mxu0 }
 0x59c   :  { %v5384_v20 = vadd.f32 %v2400_v30, %v5338_v36  ;;  %v2402_v51 = vpop.f32.mrb[61].mxu0 }
 0x59d   :  { %v5387_v23 = vadd.f32 %v2402_v51, %v5341_v4  ;;  %v2404_v31 = vpop.f32.mrb[62].mxu0 }
 0x59e   :  { %v5390_v54 = vadd.f32 %v2404_v31, %v5338_v36  ;;  %v2406_v2 = vpop.f32.mrb[63].mxu0 }
 0x59f   :  { %v2519_v53 = vadd.f32 %v5387_v23, %v5384_v20  ;;  %v5395_v15 = vadd.f32 %v2406_v2, %v5341_v4 }
 0x5a1   :  { %v2522_v12 = vadd.f32 %v5395_v15, %v5390_v54  ;;  %2520 = vadd.xlane.f32.xlu0 %v2519_v53 }
 0x5a2   :  { %v5399_v16 = vpop.f32.mrb[56].mxu1 }
 0x5a3   :  { %v5401_v14 = vpop.f32.mrb[57].mxu1  ;;  %2523 = vadd.xlane.f32.xlu1 %v2522_v12 }
 0x5a4   :  { %v5403_v17 = vpop.f32.mrb[58].mxu1 }
 0x5a5   :  { %v5405_v10 = vpop.f32.mrb[59].mxu1  ;;  %v2410_v11 = vpop.f32.mrb[64].mxu0 }
 0x5a6   :  { %v5408_v9 = vadd.f32 %v2410_v11, %v5338_v36  ;;  %v2412_v48 = vpop.f32.mrb[65].mxu0 }
 0x5a7   :  { %v5411_v19 = vadd.f32 %v2412_v48, %v5341_v4  ;;  %v2414_v22 = vpop.f32.mrb[66].mxu0 }
 0x5a8   :  { %v5414_v27 = vadd.f32 %v2414_v22, %v5338_v36  ;;  %v2416_v32 = vpop.f32.mrb[67].mxu0 }
 0x5a9   :  { %v2525_v25 = vadd.f32 %v5411_v19, %v5408_v9  ;;  %v5419_v26 = vadd.f32 %v2416_v32, %v5341_v4 }
 0x5ab   :  { %v2528_v49 = vadd.f32 %v5419_v26, %v5414_v27  ;;  %v5423_v56 = vpop.f32.mrb[60].mxu1  ;;  %2526 = vadd.xlane.f32.xlu0 %v2525_v25 }
 0x5ac   :  { %v5425_v38 = vpop.f32.mrb[61].mxu1 }
 0x5ad   :  { %v5427_v62 = vpop.f32.mrb[62].mxu1  ;;  %2529 = vadd.xlane.f32.xlu1 %v2528_v49 }
 0x5ae   :  { %v5429_v52 = vpop.f32.mrb[63].mxu1 }
 0x5af   :  { %v2420_v61 = vpop.f32.mrb[68].mxu0 }
 0x5b0   :  { %v5432_v7 = vadd.f32 %v2420_v61, %v5338_v36  ;;  %v2422_v35 = vpop.f32.mrb[69].mxu0 }
 0x5b1   :  { %v5435_v44 = vadd.f32 %v2422_v35, %v5341_v4  ;;  %v2424_v0 = vpop.f32.mrb[70].mxu0 }
 0x5b2   :  { %v5438_v1 = vadd.f32 %v2424_v0, %v5338_v36  ;;  %v2426_v6 = vpop.f32.mrb[71].mxu0 }
 0x5b3   :  { %v2531_v24 = vadd.f32 %v5435_v44, %v5432_v7  ;;  %v5443_v8 = vadd.f32 %v2426_v6, %v5341_v4  ;;  %v5474_v6 = vadd.f32 %v5375_v59, %v5338_v36 }
 0x5b4   :  { %v2480_v45 = vpop.f32.mrb[64].mxu1 }
 0x5b5   :  { %v2534_v33 = vadd.f32 %v5443_v8, %v5438_v1  ;;  %v2482_v18 = vpop.f32.mrb[65].mxu1  ;;  %2532 = vadd.xlane.f32.xlu0 %v2531_v24  ;;  %v5478_v24 = vadd.f32 %v5377_v50, %v5341_v4 }
 0x5b6   :  { %v2484_v58 = vpop.f32.mrb[66].mxu1 }
 0x5b7   :  { %v2486_v34 = vpop.f32.mrb[67].mxu1  ;;  %2535 = vadd.xlane.f32.xlu1 %v2534_v33 }
 0x5b8   :  { %v2430_v43 = vpop.f32.mrb[72].mxu0 }
 0x5b9   :  { %v5448_v41 = vadd.f32 %v2430_v43, %v5338_v36  ;;  %v2432_v3 = vpop.f32.mrb[73].mxu0 }
 0x5ba   :  { %v5451_v55 = vadd.f32 %v2432_v3, %v5341_v4  ;;  %v2434_v39 = vpop.f32.mrb[74].mxu0  ;;  %v5487_v3 = vadd.f32 %v5379_v46, %v5338_v36  ;;  %v5503_v46 = vadd.f32 %v5401_v14, %v5341_v4  ;;  %v5519_v14 = vadd.f32 %v5423_v56, %v5338_v36 }
 0x5bb   :  { %v5454_v28 = vadd.f32 %v2434_v39, %v5338_v36  ;;  %v2436_v30 = vpop.f32.mrb[75].mxu0  ;;  %v5491_v39 = vadd.f32 %v5381_v40, %v5341_v4 }
 0x5bc   :  { %v2537_v51 = vadd.f32 %v5451_v55, %v5448_v41  ;;  %v5459_v31 = vadd.f32 %v2436_v30, %v5341_v4 }
 0x5be   :  { %v2540_v2 = vadd.f32 %v5459_v31, %v5454_v28  ;;  %2538 = vadd.xlane.f32.xlu0 %v2537_v51  ;;  %v2549_v51 = vadd.f32 %v5478_v24, %v5474_v6 }
 0x5c0   :  { %2541 = vadd.xlane.f32.xlu1 %v2540_v2  ;;  %v5499_v2 = vadd.f32 %v5399_v16, %v5338_v36 }
 0x5c2   :  { %v2555_v16 = vadd.f32 %v5503_v46, %v5499_v2 }
 0x5f5   :  { %v2490_v53 = vpop.f32.mrb[68].mxu1 }
 0x5f6   :  { %v2492_v12 = vpop.f32.mrb[69].mxu1 }
 0x5f7   :  { %v2494_v11 = vpop.f32.mrb[70].mxu1 }
 0x5f8   :  { %v2496_v48 = vpop.f32.mrb[71].mxu1 }
 0x5f9   :  { %v2440_v22 = vpop.f32.mrb[76].mxu0 }
 0x5fa   :  { %v5464_v32 = vadd.f32 %v2440_v22, %v5338_v36  ;;  %v2442_v25 = vpop.f32.mrb[77].mxu0 }
 0x5fb   :  { %v5467_v49 = vadd.f32 %v2442_v25, %v5341_v4  ;;  %v2444_v61 = vpop.f32.mrb[78].mxu0  ;;  %v2552_v25 = vadd.f32 %v5491_v39, %v5487_v3 }
 0x5fc   :  { %v5470_v35 = vadd.f32 %v2444_v61, %v5338_v36  ;;  %v2446_v0 = vpop.f32.mrb[79].mxu0  ;;  %v5509_v61 = vadd.f32 %v5403_v17, %v5338_v36 }
 0x5fd   :  { %v2543_v33 = vadd.f32 %v5467_v49, %v5464_v32  ;;  %v5483_v43 = vadd.f32 %v2446_v0, %v5341_v4  ;;  %v5513_v0 = vadd.f32 %v5405_v10, %v5341_v4  ;;  %v5529_v10 = vadd.f32 %v5427_v62, %v5338_v36 }
 0x5ff   :  { %v2546_v59 = vadd.f32 %v5483_v43, %v5470_v35  ;;  %v2500_v30 = vpop.f32.mrb[72].mxu1  ;;  %2544 = vadd.xlane.f32.xlu0 %v2543_v33  ;;  %v5523_v33 = vadd.f32 %v5425_v38, %v5341_v4  ;;  %v2558_v17 = vadd.f32 %v5513_v0, %v5509_v61  ;;  %v5538_v38 = vadd.f32 %v2480_v45, %v5338_v36 }
 0x600   :  { %v2502_v50 = vpop.f32.mrb[73].mxu1 }
 0x601   :  { %v2504_v22 = vpop.f32.mrb[74].mxu1  ;;  %2547 = vadd.xlane.f32.xlu1 %v2546_v59  ;;  %v5533_v59 = vadd.f32 %v5429_v52, %v5341_v4  ;;  %v2561_v56 = vadd.f32 %v5523_v33, %v5519_v14  ;;  %v5549_v52 = vadd.f32 %v2486_v34, %v5341_v4  ;;  %v5563_v34 = vadd.f32 %v2496_v48, %v5341_v4 }
 0x602   :  { %v2505_v40 = vpop.f32.mrb[75].mxu1  ;;  %v5541_v22 = vadd.f32 %v2482_v18, %v5341_v4  ;;  %v5554_v18 = vadd.f32 %v2490_v53, %v5338_v36 }
 0x603   :  { %2550 = vadd.xlane.f32.xlu0 %v2549_v51  ;;  %v2509_v51 = vpop.xlane.xlu0 %2508  ;;  %v2512_v40 = vpop.xlane.xlu1 %2511  ;;  %v2564_v62 = vadd.f32 %v5533_v59, %v5529_v10  ;;  %6089 = vst [vmem:[#allocation18_spill] sm:$0xff] %v5549_v52 }
 0x604   :  { %6088 = vst [vmem:[#allocation15_spill] sm:$0xff] %v5541_v22  ;;  %v2567_v45 = vadd.f32 %v5541_v22, %v5538_v38  ;;  %v2583_v60 = vmul.f32 0.00390625, %v2512_v40  ;;  %v5574_v40 = vadd.f32 %v2500_v30, %v5338_v36 }
 0x605   :  { %2553 = vadd.xlane.f32.xlu1 %v2552_v25  ;;  %v5546_v25 = vadd.f32 %v2484_v58, %v5338_v36  ;;  %v5560_v58 = vadd.f32 %v2494_v11, %v5338_v36  ;;  %v5577_v11 = vadd.f32 %v2502_v50, %v5341_v4 }
 0x607   :  { %2556 = vadd.xlane.f32.xlu0 %v2555_v16  ;;  %v2582_v16 = vmul.f32 0.00390625, %v2509_v51 }
 0x608   :  { %v2515_v63 = vpop.xlane.xlu0 %2514 }
 0x609   :  { %2559 = vadd.xlane.f32.xlu1 %v2558_v17  ;;  %v5557_v17 = vadd.f32 %v2492_v12, %v5341_v4  ;;  %v5568_v22 = vsub.f32 %v5344_v21, %v2582_v16  ;;  %v5571_v53 = vsub.f32 %v5347_v42, %v2582_v16  ;;  %v2584_v12 = vmul.f32 0.00390625, %v2515_v63 }
 0x60a   :  { %v2518_v51 = vpop.xlane.xlu1 %2517  ;;  %v5585_v21 = vsub.f32 %v5355_v13, %v2583_v60  ;;  %v2576_v63 = vadd.f32 %v5563_v34, %v5560_v58 }
 0x60b   :  { %2562 = vadd.xlane.f32.xlu0 %v2561_v56  ;;  %v2570_v56 = vadd.f32 %v5549_v52, %v5546_v25  ;;  %v2573_v48 = vadd.f32 %v5557_v17, %v5554_v18  ;;  %v2585_v52 = vmul.f32 0.00390625, %v2518_v51  ;;  %v2657_v36 = vmul.f32 %v5568_v22, %v5568_v22 }
 0x60c   :  { %v2658_v4 = vmul.f32 %v5571_v53, %v5571_v53  ;;  %v5594_v42 = vsub.f32 %v5360_v47, %v2584_v12  ;;  %v2660_v30 = vmul.f32 %v5585_v21, %v5585_v21 }
 0x60d   :  { %2565 = vadd.xlane.f32.xlu1 %v2564_v62  ;;  %v5582_v62 = vsub.f32 %v5350_v29, %v2583_v60  ;;  %v5597_v29 = vsub.f32 %v5363_v57, %v2584_v12  ;;  %v2579_v60 = vadd.f32 %v5577_v11, %v5574_v40  ;;  %v5606_v50 = vsub.f32 %v5366_v37, %v2585_v52 }
 0x60e   :  { %v5609_v16 = vsub.f32 %v5371_v5, %v2585_v52  ;;  %v2661_v47 = vmul.f32 %v5594_v42, %v5594_v42 }
 0x60f   :  { %2568 = vadd.xlane.f32.xlu0 %v2567_v45  ;;  %6090 = vst [vmem:[#allocation17_spill] sm:$0xff] %v5597_v29  ;;  %v2659_v13 = vmul.f32 %v5582_v62, %v5582_v62  ;;  %v2662_v57 = vmul.f32 %v5597_v29, %v5597_v29  ;;  %v2707_v45 = vadd.f32 %v2658_v4, %v2657_v36 }
 0x610   :  { %v2663_v51 = vmul.f32 %v5606_v50, %v5606_v50 }
 0x611   :  { %2571 = vadd.xlane.f32.xlu1 %v2570_v56  ;;  %v2664_v56 = vmul.f32 %v5609_v16, %v5609_v16  ;;  %v2710_v37 = vadd.f32 %v2660_v30, %v2659_v13  ;;  %v2713_v5 = vadd.f32 %v2662_v57, %v2661_v47 }
 0x613   :  { %2574 = vadd.xlane.f32.xlu0 %v2573_v48  ;;  %v2716_v52 = vadd.f32 %v2664_v56, %v2663_v51 }
 0x615   :  { %2577 = vadd.xlane.f32.xlu1 %v2576_v63 }
 0x617   :  { %2580 = vadd.xlane.f32.xlu0 %v2579_v60 }
 0x619   :  { %2708 = vadd.xlane.f32.xlu1 %v2707_v45 }
 0x61b   :  { %2711 = vadd.xlane.f32.xlu0 %v2710_v37 }
 0x61d   :  { %2714 = vadd.xlane.f32.xlu1 %v2713_v5 }
 0x61f   :  { %2717 = vadd.xlane.f32.xlu0 %v2716_v52 }
 0x62e   :  { %v2521_v12 = vpop.xlane.xlu0 %2520 }
 0x62f   :  { %v2586_v48 = vmul.f32 0.00390625, %v2521_v12 }
 0x630   :  { %v2524_v63 = vpop.xlane.xlu1 %2523 }
 0x631   :  { %v5620_v29 = vsub.f32 %v5384_v20, %v2586_v48  ;;  %v5623_v36 = vsub.f32 %v5387_v23, %v2586_v48  ;;  %v2587_v4 = vmul.f32 0.00390625, %v2524_v63 }
 0x633   :  { %v2665_v60 = vmul.f32 %v5620_v29, %v5620_v29  ;;  %v2666_v13 = vmul.f32 %v5623_v36, %v5623_v36  ;;  %v5630_v30 = vsub.f32 %v5390_v54, %v2587_v4  ;;  %v5633_v47 = vsub.f32 %v5395_v15, %v2587_v4 }
 0x635   :  { %v2667_v20 = vmul.f32 %v5630_v30, %v5630_v30  ;;  %v2668_v23 = vmul.f32 %v5633_v47, %v5633_v47  ;;  %v2719_v57 = vadd.f32 %v2666_v13, %v2665_v60 }
 0x637   :  { %2720 = vadd.xlane.f32.xlu1 %v2719_v57  ;;  %v2722_v45 = vadd.f32 %v2668_v23, %v2667_v20 }
 0x638   :  { %v2527_v51 = vpop.xlane.xlu0 %2526 }
 0x639   :  { %v2588_v56 = vmul.f32 0.00390625, %v2527_v51  ;;  %2723 = vadd.xlane.f32.xlu0 %v2722_v45 }
 0x63a   :  { %v2530_v37 = vpop.xlane.xlu1 %2529 }
 0x63b   :  { %v5640_v5 = vsub.f32 %v5408_v9, %v2588_v56  ;;  %v5643_v54 = vsub.f32 %v5411_v19, %v2588_v56  ;;  %v2589_v15 = vmul.f32 0.00390625, %v2530_v37 }
 0x63d   :  { %v2669_v52 = vmul.f32 %v5640_v5, %v5640_v5  ;;  %v2670_v12 = vmul.f32 %v5643_v54, %v5643_v54  ;;  %v5650_v48 = vsub.f32 %v5414_v27, %v2589_v15  ;;  %v5653_v63 = vsub.f32 %v5419_v26, %v2589_v15 }
 0x63f   :  { %v2671_v9 = vmul.f32 %v5650_v48, %v5650_v48  ;;  %v2672_v19 = vmul.f32 %v5653_v63, %v5653_v63  ;;  %v2725_v4 = vadd.f32 %v2670_v12, %v2669_v52 }
 0x641   :  { %2726 = vadd.xlane.f32.xlu1 %v2725_v4  ;;  %v2728_v60 = vadd.f32 %v2672_v19, %v2671_v9 }
 0x642   :  { %v2533_v13 = vpop.xlane.xlu0 %2532 }
 0x643   :  { %v2590_v20 = vmul.f32 0.00390625, %v2533_v13  ;;  %2729 = vadd.xlane.f32.xlu0 %v2728_v60 }
 0x644   :  { %v2536_v23 = vpop.xlane.xlu1 %2535 }
 0x645   :  { %v5660_v57 = vsub.f32 %v5432_v7, %v2590_v20  ;;  %v5663_v27 = vsub.f32 %v5435_v44, %v2590_v20  ;;  %v2591_v26 = vmul.f32 0.00390625, %v2536_v23 }
 0x647   :  { %v2673_v45 = vmul.f32 %v5660_v57, %v5660_v57  ;;  %v2674_v51 = vmul.f32 %v5663_v27, %v5663_v27  ;;  %v5670_v56 = vsub.f32 %v5438_v1, %v2591_v26  ;;  %v5673_v37 = vsub.f32 %v5443_v8, %v2591_v26 }
 0x649   :  { %v2675_v7 = vmul.f32 %v5670_v56, %v5670_v56  ;;  %v2676_v44 = vmul.f32 %v5673_v37, %v5673_v37  ;;  %v2731_v15 = vadd.f32 %v2674_v51, %v2673_v45 }
 0x64b   :  { %v2539_v52 = vpop.xlane.xlu0 %2538  ;;  %2732 = vadd.xlane.f32.xlu1 %v2731_v15  ;;  %v2734_v12 = vadd.f32 %v2676_v44, %v2675_v7 }
 0x64c   :  { %v2592_v9 = vmul.f32 0.00390625, %v2539_v52 }
 0x64d   :  { %v2542_v19 = vpop.xlane.xlu1 %2541  ;;  %2735 = vadd.xlane.f32.xlu0 %v2734_v12 }
 0x64e   :  { %v5680_v4 = vsub.f32 %v5448_v41, %v2592_v9  ;;  %v5683_v1 = vsub.f32 %v5451_v55, %v2592_v9  ;;  %v2593_v8 = vmul.f32 0.00390625, %v2542_v19 }
 0x650   :  { %v2677_v60 = vmul.f32 %v5680_v4, %v5680_v4  ;;  %v2678_v13 = vmul.f32 %v5683_v1, %v5683_v1  ;;  %v5690_v20 = vsub.f32 %v5454_v28, %v2593_v8  ;;  %v5693_v23 = vsub.f32 %v5459_v31, %v2593_v8 }
 0x652   :  { %v2679_v41 = vmul.f32 %v5690_v20, %v5690_v20  ;;  %v2680_v55 = vmul.f32 %v5693_v23, %v5693_v23  ;;  %v2737_v26 = vadd.f32 %v2678_v13, %v2677_v60 }
 0x654   :  { %2738 = vadd.xlane.f32.xlu1 %v2737_v26  ;;  %v2740_v45 = vadd.f32 %v2680_v55, %v2679_v41 }
 0x656   :  { %2741 = vadd.xlane.f32.xlu0 %v2740_v45 }
 0x68c   :  { %v2545_v51 = vpop.xlane.xlu0 %2544 }
 0x68d   :  { %v2594_v7 = vmul.f32 0.00390625, %v2545_v51 }
 0x68e   :  { %v2548_v44 = vpop.xlane.xlu1 %2547 }
 0x68f   :  { %v5700_v15 = vsub.f32 %v5464_v32, %v2594_v7  ;;  %v5703_v28 = vsub.f32 %v5467_v49, %v2594_v7  ;;  %v2595_v31 = vmul.f32 0.00390625, %v2548_v44 }
 0x690   :  { %v2551_v52 = vpop.xlane.xlu0 %2550 }
 0x691   :  { %v2681_v12 = vmul.f32 %v5700_v15, %v5700_v15  ;;  %v2682_v9 = vmul.f32 %v5703_v28, %v5703_v28  ;;  %v5710_v19 = vsub.f32 %v5470_v35, %v2595_v31  ;;  %v5713_v8 = vsub.f32 %v5483_v43, %v2595_v31 }
 0x692   :  { %v2596_v60 = vmul.f32 0.00390625, %v2551_v52  ;;  %v2554_v32 = vpop.xlane.xlu1 %2553 }
 0x693   :  { %v2683_v49 = vmul.f32 %v5710_v19, %v5710_v19  ;;  %v2684_v13 = vmul.f32 %v5713_v8, %v5713_v8  ;;  %v2597_v41 = vmul.f32 0.00390625, %v2554_v32  ;;  %v2743_v55 = vadd.f32 %v2682_v9, %v2681_v12 }
 0x694   :  { %v5720_v26 = vsub.f32 %v5474_v6, %v2596_v60  ;;  %v5723_v45 = vsub.f32 %v5478_v24, %v2596_v60  ;;  %v2557_v35 = vpop.xlane.xlu0 %2556 }
 0x695   :  { %v5726_v43 = vsub.f32 %v5487_v3, %v2597_v41  ;;  %v5729_v51 = vsub.f32 %v5491_v39, %v2597_v41  ;;  %v2598_v7 = vmul.f32 0.00390625, %v2557_v35  ;;  %2744 = vadd.xlane.f32.xlu1 %v2743_v55  ;;  %v2746_v44 = vadd.f32 %v2684_v13, %v2683_v49 }
 0x696   :  { %v2685_v31 = vmul.f32 %v5720_v26, %v5720_v26  ;;  %v2686_v6 = vmul.f32 %v5723_v45, %v5723_v45  ;;  %v2560_v52 = vpop.xlane.xlu1 %2559 }
 0x697   :  { %v2687_v24 = vmul.f32 %v5726_v43, %v5726_v43  ;;  %v2688_v3 = vmul.f32 %v5729_v51, %v5729_v51  ;;  %v5740_v12 = vsub.f32 %v5499_v2, %v2598_v7  ;;  %v5743_v39 = vsub.f32 %v5503_v46, %v2598_v7  ;;  %2747 = vadd.xlane.f32.xlu0 %v2746_v44 }
 0x698   :  { %v2599_v9 = vmul.f32 0.00390625, %v2560_v52  ;;  %v2563_v60 = vpop.xlane.xlu0 %2562  ;;  %v2749_v32 = vadd.f32 %v2686_v6, %v2685_v31 }
 0x699   :  { %v2689_v49 = vmul.f32 %v5740_v12, %v5740_v12  ;;  %v2690_v13 = vmul.f32 %v5743_v39, %v5743_v39  ;;  %v2600_v41 = vmul.f32 0.00390625, %v2563_v60  ;;  %v2752_v55 = vadd.f32 %v2688_v3, %v2687_v24 }
 0x69a   :  { %v5750_v35 = vsub.f32 %v5509_v61, %v2599_v9  ;;  %v5753_v2 = vsub.f32 %v5513_v0, %v2599_v9  ;;  %2750 = vadd.xlane.f32.xlu1 %v2749_v32  ;;  %v2566_v46 = vpop.xlane.xlu1 %2565 }
 0x69b   :  { %v5756_v7 = vsub.f32 %v5519_v14, %v2600_v41  ;;  %v5759_v44 = vsub.f32 %v5523_v33, %v2600_v41  ;;  %v2601_v31 = vmul.f32 0.00390625, %v2566_v46  ;;  %2753 = vadd.xlane.f32.xlu0 %v2752_v55  ;;  %v2755_v6 = vadd.f32 %v2690_v13, %v2689_v49 }
 0x69c   :  { %v2691_v52 = vmul.f32 %v5750_v35, %v5750_v35  ;;  %v2692_v61 = vmul.f32 %v5753_v2, %v5753_v2  ;;  %v2569_v24 = vpop.xlane.xlu0 %2568 }
 0x69d   :  { %6091 = vst [vmem:[#allocation11_spill] sm:$0xff] %v5759_v44  ;;  %v2693_v0 = vmul.f32 %v5756_v7, %v5756_v7  ;;  %v2694_v14 = vmul.f32 %v5759_v44, %v5759_v44  ;;  %v5770_v3 = vsub.f32 %v5529_v10, %v2601_v31  ;;  %v5773_v33 = vsub.f32 %v5533_v59, %v2601_v31  ;;  %v6092_v10 = vld [vmem:[#allocation15_spill] sm:$0xff] }
 0x69e   :  { %v2602_v9 = vmul.f32 0.00390625, %v2569_v24  ;;  %2756 = vadd.xlane.f32.xlu1 %v2755_v6  ;;  %v2572_v60 = vpop.xlane.xlu1 %2571  ;;  %v2758_v32 = vadd.f32 %v2692_v61, %v2691_v52  ;;  %v6093_v6 = vld [vmem:[#allocation18_spill] sm:$0xff] }
 0x69f   :  { %v2695_v49 = vmul.f32 %v5770_v3, %v5770_v3  ;;  %v2696_v13 = vmul.f32 %v5773_v33, %v5773_v33  ;;  %v2603_v41 = vmul.f32 0.00390625, %v2572_v60  ;;  %v2761_v55 = vadd.f32 %v2694_v14, %v2693_v0 }
 0x6a0   :  { %v5780_v46 = vsub.f32 %v5538_v38, %v2602_v9  ;;  %v5783_v44 = vsub.f32 %v6092_v10, %v2602_v9  ;;  %2759 = vadd.xlane.f32.xlu0 %v2758_v32  ;;  %v2575_v59 = vpop.xlane.xlu0 %2574 }
 0x6a1   :  { %v5786_v31 = vsub.f32 %v5546_v25, %v2603_v41  ;;  %v5789_v52 = vsub.f32 %v6093_v6, %v2603_v41  ;;  %v2604_v61 = vmul.f32 0.00390625, %v2575_v59  ;;  %v2764_v24 = vadd.f32 %v2696_v13, %v2695_v49 }
 0x6a2   :  { %v2697_v60 = vmul.f32 %v5780_v46, %v5780_v46  ;;  %v2698_v38 = vmul.f32 %v5783_v44, %v5783_v44  ;;  %2762 = vadd.xlane.f32.xlu1 %v2761_v55  ;;  %v2578_v0 = vpop.xlane.xlu1 %2577 }
 0x6a3   :  { %6094 = vst [vmem:[#allocation10_spill] sm:$0xff] %v5789_v52  ;;  %v2699_v14 = vmul.f32 %v5786_v31, %v5786_v31  ;;  %v2700_v25 = vmul.f32 %v5789_v52, %v5789_v52  ;;  %v5800_v9 = vsub.f32 %v5554_v18, %v2604_v61  ;;  %v5803_v32 = vsub.f32 %v5557_v17, %v2604_v61 }
 0x6a4   :  { %v2605_v49 = vmul.f32 0.00390625, %v2578_v0  ;;  %2765 = vadd.xlane.f32.xlu0 %v2764_v24  ;;  %v2581_v13 = vpop.xlane.xlu0 %2580  ;;  %v2767_v41 = vadd.f32 %v2698_v38, %v2697_v60 }
 0x6a5   :  { %v2701_v55 = vmul.f32 %v5800_v9, %v5800_v9  ;;  %v2702_v10 = vmul.f32 %v5803_v32, %v5803_v32  ;;  %v2606_v59 = vmul.f32 0.00390625, %v2581_v13  ;;  %v2770_v6 = vadd.f32 %v2700_v25, %v2699_v14 }
 0x6a6   :  { %v5810_v52 = vsub.f32 %v5560_v58, %v2605_v49  ;;  %v5813_v18 = vsub.f32 %v5563_v34, %v2605_v49  ;;  %2768 = vadd.xlane.f32.xlu1 %v2767_v41  ;;  %v2709_v17 = vpop.xlane.xlu1 %2708 }
 0x6a7   :  { %v5816_v61 = vsub.f32 %v5574_v40, %v2606_v59  ;;  %v5819_v24 = vsub.f32 %v5577_v11, %v2606_v59  ;;  %v2782_v60 = vmul.f32 0.00390625, %v2709_v17  ;;  %v2773_v38 = vadd.f32 %v2702_v10, %v2701_v55 }
 0x6a8   :  { %v2703_v0 = vmul.f32 %v5810_v52, %v5810_v52  ;;  %v2704_v58 = vmul.f32 %v5813_v18, %v5813_v18  ;;  %2771 = vadd.xlane.f32.xlu0 %v2770_v6  ;;  %v2712_v14 = vpop.xlane.xlu0 %2711 }
 0x6a9   :  { %6095 = vst [vmem:[#allocation12_spill] sm:$0xff] %v5816_v61  ;;  %v2705_v34 = vmul.f32 %v5816_v61, %v5816_v61  ;;  %v2706_v40 = vmul.f32 %v5819_v24, %v5819_v24  ;;  %v2807_v25 = vadd.f32 1e-05, %v2782_v60  ;;  %v2783_v49 = vmul.f32 0.00390625, %v2712_v14  ;;  %v2907_v60 = vld [vmem:[%s6020_s11] sm:$0x3] }
 0x6aa   :  { %2774 = vadd.xlane.f32.xlu1 %v2773_v38  ;;  %v2715_v11 = vpop.xlane.xlu1 %2714  ;;  %v2776_v13 = vadd.f32 %v2704_v58, %v2703_v0  ;;  %v2969_v38 = vld [vmem:[%s6021_s12] sm:$0x3]  ;;  %v6096_v0 = vld [vmem:[#allocation8_spill] sm:$0xff]  ;;  %v6097_v14 = vld [vmem:[#allocation9_spill] sm:$0xff]  ;;  %s3691_s11 = smov [#allocation5]  }
 0x6ab   :  { %3590 = vrsqrt.f32 %v2807_v25  ;;  %v2808_v41 = vadd.f32 1e-05, %v2783_v49  ;;  %v2784_v55 = vmul.f32 0.00390625, %v2715_v11  ;;  %v2779_v10 = vadd.f32 %v2706_v40, %v2705_v34  ;;  %s3136_s12 = sshll.u32 %s3691_s11, 4  ;;  %s3137_s12 = int_to_ptr.vmem [resolvable:$true] %s3136_s12 }
 0x6ac   :  { %2777 = vadd.xlane.f32.xlu0 %v2776_v13  ;;  %v2718_v59 = vpop.xlane.xlu0 %2717  ;;  %v5836_v58 = vrot.slane %v2907_v60, %v6096_v0  ;;  %v5839_v34 = vrot.slane %v2907_v60, %v6097_v14  ;;  %v5842_v25 = vrot.slane %v2969_v38, %v6096_v0  ;;  %v5845_v49 = vrot.slane %v2969_v38, %v6097_v14  ;;  %v6098_v14 = vld [vmem:[#allocation17_spill] sm:$0xff]  ;;  %s3662_s17 = scalar_lea.vmem %s3137_s12, 6400  ;;  %p3667_p9 = scmp.lt.s32.totalorder %s3137_s12, %s3137_s12 }
 0x6ad   :  { %3592 = vrsqrt.f32 %v2808_v41  ;;  %v2809_v6 = vadd.f32 1e-05, %v2784_v55  ;;  %v2785_v17 = vmul.f32 0.00390625, %v2718_v59  ;;  %p3663_p8 = scmp.ne.s32.totalorder %s3137_s12, %s3662_s17  ;;  %p3668_p10 = scmp.lt.s32.totalorder %s3662_s17, %s3662_s17 }
 0x6ae   :  { %2780 = vadd.xlane.f32.xlu1 %v2779_v10 }
 0x6af   :  { %3594 = vrsqrt.f32 %v2809_v6  ;;  %v2810_v61 = vadd.f32 1e-05, %v2785_v17  ;;  %p3669_p11 = por %p3668_p10, %p3667_p9 }
 0x6b1   :  { %3596 = vrsqrt.f32 %v2810_v61  ;;  %p3670_p12 = pnand %p3669_p11, %p3663_p8 }
 0x6b5   :  { %v3591_v40 = vpop.eup %3590 }
 0x6b6   :  { %v2857_v11 = vmul.f32 %v3591_v40, %v5568_v22  ;;  %v2858_v61 = vmul.f32 %v3591_v40, %v5571_v53 }
 0x6b7   :  { %v3593_v13 = vpop.eup %3592 }
 0x6b8   :  { %v2919_v41 = vmul.f32 %v5836_v58, %v2857_v11  ;;  %v2920_v55 = vmul.f32 %v5839_v34, %v2858_v61  ;;  %v2859_v10 = vmul.f32 %v3593_v13, %v5582_v62  ;;  %v2860_v59 = vmul.f32 %v3593_v13, %v5585_v21 }
 0x6b9   :  { %v3595_v6 = vpop.eup %3594 }
 0x6ba   :  { %v2981_v17 = vadd.f32 %v5842_v25, %v2919_v41  ;;  %v2982_v60 = vadd.f32 %v5845_v49, %v2920_v55  ;;  %v2921_v38 = vmul.f32 %v5836_v58, %v2859_v10  ;;  %v2922_v22 = vmul.f32 %v5839_v34, %v2860_v59 }
 0x6bb   :  { %v3597_v0 = vpop.eup %3596  ;;  %v2861_v53 = vmul.f32 %v3595_v6, %v5594_v42  ;;  %v2862_v40 = vmul.f32 %v3595_v6, %v6098_v14 }
 0x6bc   :  { %v3031_v11 = vmax.f32 %v2981_v17, 0.0  ;;  %v3032_v61 = vmax.f32 %v2982_v60, 0.0  ;;  %v2983_v62 = vadd.f32 %v5842_v25, %v2921_v38  ;;  %v2984_v21 = vadd.f32 %v5845_v49, %v2922_v22 }
 0x6bd   :  { %v2923_v13 = vmul.f32 %v5836_v58, %v2861_v53  ;;  %v2924_v41 = vmul.f32 %v5839_v34, %v2862_v40  ;;  %v2863_v55 = vmul.f32 %v3597_v0, %v5606_v50  ;;  %v2864_v10 = vmul.f32 %v3597_v0, %v5609_v16 }
 0x6be   :  { %3081 = vst [vmem:[#allocation5] sm:$0xff] %v3031_v11  ;;  %3082 = vst [vmem:[#allocation5 + $0x8] sm:$0xff] %v3032_v61  ;;  %v3033_v59 = vmax.f32 %v2983_v62, 0.0  ;;  %v3034_v42 = vmax.f32 %v2984_v21, 0.0 }
 0x6bf   :  { %v2985_v6 = vadd.f32 %v5842_v25, %v2923_v13  ;;  %v2986_v17 = vadd.f32 %v5845_v49, %v2924_v41  ;;  %v2925_v60 = vmul.f32 %v5836_v58, %v2863_v55  ;;  %v2926_v38 = vmul.f32 %v5839_v34, %v2864_v10 }
 0x6c0   :  { %3083 = vst [vmem:[#allocation5 + $0x10] sm:$0xff] %v3033_v59  ;;  %3084 = vst [vmem:[#allocation5 + $0x18] sm:$0xff] %v3034_v42 }
 0x6c1   :  { %v3035_v22 = vmax.f32 %v2985_v6, 0.0  ;;  %v3036_v53 = vmax.f32 %v2986_v17, 0.0  ;;  %v2987_v50 = vadd.f32 %v5842_v25, %v2925_v60  ;;  %v2988_v16 = vadd.f32 %v5845_v49, %v2926_v38 }
 0x6c3   :  { %3085 = vst [vmem:[#allocation5 + $0x20] sm:$0xff] %v3035_v22  ;;  %3086 = vst [vmem:[#allocation5 + $0x28] sm:$0xff] %v3036_v53  ;;  %v3037_v0 = vmax.f32 %v2987_v50, 0.0  ;;  %v3038_v14 = vmax.f32 %v2988_v16, 0.0 }
 0x6c4   :  { %v2721_v40 = vpop.xlane.xlu1 %2720 }
 0x6c5   :  { %3087 = vst [vmem:[#allocation5 + $0x30] sm:$0xff] %v3037_v0  ;;  %3088 = vst [vmem:[#allocation5 + $0x38] sm:$0xff] %v3038_v14  ;;  %v2786_v11 = vmul.f32 0.00390625, %v2721_v40 }
 0x6c6   :  { %v2724_v61 = vpop.xlane.xlu0 %2723 }
 0x6c7   :  { %v2811_v62 = vadd.f32 1e-05, %v2786_v11  ;;  %v2787_v21 = vmul.f32 0.00390625, %v2724_v61 }
 0x6c9   :  { %3598 = vrsqrt.f32 %v2811_v62  ;;  %v2812_v13 = vadd.f32 1e-05, %v2787_v21 }
 0x6cb   :  { %3600 = vrsqrt.f32 %v2812_v13 }
 0x6ce   :  { %v2727_v41 = vpop.xlane.xlu1 %2726 }
 0x6cf   :  { %v2788_v55 = vmul.f32 0.00390625, %v2727_v41 }
 0x6d0   :  { %v2730_v10 = vpop.xlane.xlu0 %2729 }
 0x6d1   :  { %v2813_v59 = vadd.f32 1e-05, %v2788_v55  ;;  %v2789_v42 = vmul.f32 0.00390625, %v2730_v10 }
 0x6d3   :  { %v3599_v6 = vpop.eup %3598  ;;  %3602 = vrsqrt.f32 %v2813_v59  ;;  %v2814_v17 = vadd.f32 1e-05, %v2789_v42 }
 0x6d4   :  { %v2865_v60 = vmul.f32 %v3599_v6, %v5620_v29  ;;  %v2866_v38 = vmul.f32 %v3599_v6, %v5623_v36 }
 0x6d5   :  { %v3601_v22 = vpop.eup %3600  ;;  %3604 = vrsqrt.f32 %v2814_v17 }
 0x6d6   :  { %v2927_v53 = vmul.f32 %v5836_v58, %v2865_v60  ;;  %v2928_v50 = vmul.f32 %v5839_v34, %v2866_v38  ;;  %v2867_v16 = vmul.f32 %v3601_v22, %v5630_v30  ;;  %v2868_v0 = vmul.f32 %v3601_v22, %v5633_v47 }
 0x6d8   :  { %v2989_v14 = vadd.f32 %v5842_v25, %v2927_v53  ;;  %v2990_v40 = vadd.f32 %v5845_v49, %v2928_v50  ;;  %v2929_v11 = vmul.f32 %v5836_v58, %v2867_v16  ;;  %v2930_v29 = vmul.f32 %v5839_v34, %v2868_v0  ;;  %v2733_v61 = vpop.xlane.xlu1 %2732 }
 0x6d9   :  { %v2790_v36 = vmul.f32 0.00390625, %v2733_v61 }
 0x6da   :  { %v3039_v62 = vmax.f32 %v2989_v14, 0.0  ;;  %v3040_v21 = vmax.f32 %v2990_v40, 0.0  ;;  %v2991_v13 = vadd.f32 %v5842_v25, %v2929_v11  ;;  %v2992_v41 = vadd.f32 %v5845_v49, %v2930_v29  ;;  %v2736_v55 = vpop.xlane.xlu0 %2735 }
 0x6db   :  { %v2815_v30 = vadd.f32 1e-05, %v2790_v36  ;;  %v2791_v10 = vmul.f32 0.00390625, %v2736_v55 }
 0x6dc   :  { %3089 = vst [vmem:[#allocation5 + $0x40] sm:$0xff] %v3039_v62  ;;  %3090 = vst [vmem:[#allocation5 + $0x48] sm:$0xff] %v3040_v21  ;;  %v3041_v47 = vmax.f32 %v2991_v13, 0.0  ;;  %v3042_v59 = vmax.f32 %v2992_v41, 0.0 }
 0x6dd   :  { %v3603_v42 = vpop.eup %3602  ;;  %3606 = vrsqrt.f32 %v2815_v30  ;;  %v2816_v6 = vadd.f32 1e-05, %v2791_v10 }
 0x6de   :  { %3091 = vst [vmem:[#allocation5 + $0x50] sm:$0xff] %v3041_v47  ;;  %3092 = vst [vmem:[#allocation5 + $0x58] sm:$0xff] %v3042_v59  ;;  %v2869_v17 = vmul.f32 %v3603_v42, %v5640_v5  ;;  %v2870_v60 = vmul.f32 %v3603_v42, %v5643_v54 }
 0x6df   :  { %v3605_v38 = vpop.eup %3604  ;;  %3608 = vrsqrt.f32 %v2816_v6 }
 0x6e0   :  { %v2931_v22 = vmul.f32 %v5836_v58, %v2869_v17  ;;  %v2932_v53 = vmul.f32 %v5839_v34, %v2870_v60  ;;  %v2871_v50 = vmul.f32 %v3605_v38, %v5650_v48  ;;  %v2872_v16 = vmul.f32 %v3605_v38, %v5653_v63 }
 0x6e1   :  { %v2739_v0 = vpop.xlane.xlu1 %2738 }
 0x6e2   :  { %v2993_v14 = vadd.f32 %v5842_v25, %v2931_v22  ;;  %v2994_v40 = vadd.f32 %v5845_v49, %v2932_v53  ;;  %v2933_v11 = vmul.f32 %v5836_v58, %v2871_v50  ;;  %v2934_v5 = vmul.f32 %v5839_v34, %v2872_v16 }
 0x6e3   :  { %v2792_v54 = vmul.f32 0.00390625, %v2739_v0  ;;  %v2742_v29 = vpop.xlane.xlu0 %2741 }
 0x6e4   :  { %v3043_v61 = vmax.f32 %v2993_v14, 0.0  ;;  %v3044_v36 = vmax.f32 %v2994_v40, 0.0  ;;  %v2995_v62 = vadd.f32 %v5842_v25, %v2933_v11  ;;  %v2996_v21 = vadd.f32 %v5845_v49, %v2934_v5 }
 0x6e5   :  { %v2817_v48 = vadd.f32 1e-05, %v2792_v54  ;;  %v2793_v13 = vmul.f32 0.00390625, %v2742_v29 }
 0x6e6   :  { %3093 = vst [vmem:[#allocation5 + $0x60] sm:$0xff] %v3043_v61  ;;  %3094 = vst [vmem:[#allocation5 + $0x68] sm:$0xff] %v3044_v36  ;;  %v3045_v63 = vmax.f32 %v2995_v62, 0.0  ;;  %v3046_v41 = vmax.f32 %v2996_v21, 0.0 }
 0x6e7   :  { %v3607_v55 = vpop.eup %3606  ;;  %3610 = vrsqrt.f32 %v2817_v48  ;;  %v2818_v30 = vadd.f32 1e-05, %v2793_v13 }
 0x6e8   :  { %3095 = vst [vmem:[#allocation5 + $0x70] sm:$0xff] %v3045_v63  ;;  %3096 = vst [vmem:[#allocation5 + $0x78] sm:$0xff] %v3046_v41  ;;  %v2873_v10 = vmul.f32 %v3607_v55, %v5660_v57  ;;  %v2874_v47 = vmul.f32 %v3607_v55, %v5663_v27 }
 0x6e9   :  { %v3609_v59 = vpop.eup %3608  ;;  %3612 = vrsqrt.f32 %v2818_v30 }
 0x6ea   :  { %v2935_v42 = vmul.f32 %v5836_v58, %v2873_v10  ;;  %v2936_v6 = vmul.f32 %v5839_v34, %v2874_v47  ;;  %v2875_v17 = vmul.f32 %v3609_v59, %v5670_v56  ;;  %v2876_v60 = vmul.f32 %v3609_v59, %v5673_v37 }
 0x6ec   :  { %v2997_v38 = vadd.f32 %v5842_v25, %v2935_v42  ;;  %v2998_v22 = vadd.f32 %v5845_v49, %v2936_v6  ;;  %v2937_v53 = vmul.f32 %v5836_v58, %v2875_v17  ;;  %v2938_v57 = vmul.f32 %v5839_v34, %v2876_v60 }
 0x6ee   :  { %v3047_v50 = vmax.f32 %v2997_v38, 0.0  ;;  %v3048_v27 = vmax.f32 %v2998_v22, 0.0  ;;  %v2999_v16 = vadd.f32 %v5842_v25, %v2937_v53  ;;  %v3000_v0 = vadd.f32 %v5845_v49, %v2938_v57 }
 0x6f0   :  { %3097 = vst [vmem:[#allocation5 + $0x80] sm:$0xff] %v3047_v50  ;;  %3098 = vst [vmem:[#allocation5 + $0x88] sm:$0xff] %v3048_v27  ;;  %v3049_v14 = vmax.f32 %v2999_v16, 0.0  ;;  %v3050_v56 = vmax.f32 %v3000_v0, 0.0 }
 0x6f1   :  { %v3611_v40 = vpop.eup %3610 }
 0x6f2   :  { %3099 = vst [vmem:[#allocation5 + $0x90] sm:$0xff] %v3049_v14  ;;  %3100 = vst [vmem:[#allocation5 + $0x98] sm:$0xff] %v3050_v56  ;;  %v2877_v37 = vmul.f32 %v3611_v40, %v5680_v4  ;;  %v2878_v11 = vmul.f32 %v3611_v40, %v5683_v1 }
 0x6f3   :  { %v3613_v5 = vpop.eup %3612 }
 0x6f4   :  { %v2939_v54 = vmul.f32 %v5836_v58, %v2877_v37  ;;  %v2940_v29 = vmul.f32 %v5839_v34, %v2878_v11  ;;  %v2879_v61 = vmul.f32 %v3613_v5, %v5690_v20  ;;  %v2880_v36 = vmul.f32 %v3613_v5, %v5693_v23 }
 0x6f6   :  { %v3001_v62 = vadd.f32 %v5842_v25, %v2939_v54  ;;  %v3002_v21 = vadd.f32 %v5845_v49, %v2940_v29  ;;  %v2941_v48 = vmul.f32 %v5836_v58, %v2879_v61  ;;  %v2942_v13 = vmul.f32 %v5839_v34, %v2880_v36 }
 0x6f8   :  { %v3051_v4 = vmax.f32 %v3001_v62, 0.0  ;;  %v3052_v63 = vmax.f32 %v3002_v21, 0.0  ;;  %v3003_v1 = vadd.f32 %v5842_v25, %v2941_v48  ;;  %v3004_v41 = vadd.f32 %v5845_v49, %v2942_v13 }
 0x6fa   :  { %3101 = vst [vmem:[#allocation5 + $0xa0] sm:$0xff] %v3051_v4  ;;  %3102 = vst [vmem:[#allocation5 + $0xa8] sm:$0xff] %v3052_v63  ;;  %v3053_v55 = vmax.f32 %v3003_v1, 0.0  ;;  %v3054_v20 = vmax.f32 %v3004_v41, 0.0 }
 0x6fc   :  { %3103 = vst [vmem:[#allocation5 + $0xb0] sm:$0xff] %v3053_v55  ;;  %3104 = vst [vmem:[#allocation5 + $0xb8] sm:$0xff] %v3054_v20 }
 0x722   :  { %v2745_v23 = vpop.xlane.xlu1 %2744 }
 0x723   :  { %v2794_v30 = vmul.f32 0.00390625, %v2745_v23 }
 0x724   :  { %v2748_v10 = vpop.xlane.xlu0 %2747 }
 0x725   :  { %v2819_v47 = vadd.f32 1e-05, %v2794_v30  ;;  %v2795_v59 = vmul.f32 0.00390625, %v2748_v10 }
 0x727   :  { %3614 = vrsqrt.f32 %v2819_v47  ;;  %v2820_v42 = vadd.f32 1e-05, %v2795_v59  ;;  %v2751_v6 = vpop.xlane.xlu1 %2750 }
 0x728   :  { %v2796_v17 = vmul.f32 0.00390625, %v2751_v6  ;;  %v2754_v60 = vpop.xlane.xlu0 %2753 }
 0x729   :  { %3616 = vrsqrt.f32 %v2820_v42  ;;  %v2797_v38 = vmul.f32 0.00390625, %v2754_v60 }
 0x72a   :  { %v2821_v22 = vadd.f32 1e-05, %v2796_v17 }
 0x72b   :  { %v2822_v53 = vadd.f32 1e-05, %v2797_v38  ;;  %v2757_v57 = vpop.xlane.xlu1 %2756 }
 0x72c   :  { %3618 = vrsqrt.f32 %v2821_v22  ;;  %v2798_v50 = vmul.f32 0.00390625, %v2757_v57 }
 0x72d   :  { %3620 = vrsqrt.f32 %v2822_v53  ;;  %v2760_v27 = vpop.xlane.xlu0 %2759 }
 0x72e   :  { %v2823_v16 = vadd.f32 1e-05, %v2798_v50  ;;  %v2799_v0 = vmul.f32 0.00390625, %v2760_v27 }
 0x72f   :  { %v2763_v14 = vpop.xlane.xlu1 %2762 }
 0x730   :  { %3622 = vrsqrt.f32 %v2823_v16  ;;  %v2824_v56 = vadd.f32 1e-05, %v2799_v0  ;;  %v2800_v40 = vmul.f32 0.00390625, %v2763_v14 }
 0x731   :  { %v3615_v37 = vpop.eup %3614  ;;  %v2766_v11 = vpop.xlane.xlu0 %2765 }
 0x732   :  { %v2881_v5 = vmul.f32 %v3615_v37, %v5700_v15  ;;  %v2882_v54 = vmul.f32 %v3615_v37, %v5703_v28  ;;  %3624 = vrsqrt.f32 %v2824_v56  ;;  %v2825_v29 = vadd.f32 1e-05, %v2800_v40 }
 0x733   :  { %v3617_v61 = vpop.eup %3616  ;;  %v2801_v36 = vmul.f32 0.00390625, %v2766_v11  ;;  %v2769_v62 = vpop.xlane.xlu1 %2768 }
 0x734   :  { %v2943_v21 = vmul.f32 %v5836_v58, %v2881_v5  ;;  %v2944_v48 = vmul.f32 %v5839_v34, %v2882_v54  ;;  %v2883_v13 = vmul.f32 %v3617_v61, %v5710_v19  ;;  %v2884_v4 = vmul.f32 %v3617_v61, %v5713_v8 }
 0x735   :  { %3626 = vrsqrt.f32 %v2825_v29  ;;  %v2826_v63 = vadd.f32 1e-05, %v2801_v36  ;;  %v2802_v1 = vmul.f32 0.00390625, %v2769_v62  ;;  %v2772_v8 = vpop.xlane.xlu0 %2771 }
 0x736   :  { %v3619_v41 = vpop.eup %3618  ;;  %v3005_v15 = vadd.f32 %v5842_v25, %v2943_v21  ;;  %v3006_v28 = vadd.f32 %v5845_v49, %v2944_v48  ;;  %v2945_v55 = vmul.f32 %v5836_v58, %v2883_v13  ;;  %v2946_v20 = vmul.f32 %v5839_v34, %v2884_v4 }
 0x737   :  { %v3621_v23 = vpop.eup %3620  ;;  %v2885_v30 = vmul.f32 %v3619_v41, %v5720_v26  ;;  %v2886_v10 = vmul.f32 %v3619_v41, %v5723_v45  ;;  %3628 = vrsqrt.f32 %v2826_v63  ;;  %v2827_v19 = vadd.f32 1e-05, %v2802_v1  ;;  %v2775_v26 = vpop.xlane.xlu1 %2774 }
 0x738   :  { %v3055_v47 = vmax.f32 %v3005_v15, 0.0  ;;  %v3056_v59 = vmax.f32 %v3006_v28, 0.0  ;;  %v3007_v42 = vadd.f32 %v5842_v25, %v2945_v55  ;;  %v3008_v6 = vadd.f32 %v5845_v49, %v2946_v20 }
 0x739   :  { %v2947_v17 = vmul.f32 %v5836_v58, %v2885_v30  ;;  %v2948_v60 = vmul.f32 %v5839_v34, %v2886_v10  ;;  %v2887_v38 = vmul.f32 %v3621_v23, %v5726_v43  ;;  %v2888_v22 = vmul.f32 %v3621_v23, %v5729_v51  ;;  %v2778_v48 = vpop.xlane.xlu0 %2777 }
 0x73a   :  { %v3623_v53 = vpop.eup %3622  ;;  %3105 = vst [vmem:[#allocation5 + $0xc0] sm:$0xff] %v3055_v47  ;;  %3106 = vst [vmem:[#allocation5 + $0xc8] sm:$0xff] %v3056_v59  ;;  %v3057_v45 = vmax.f32 %v3007_v42, 0.0  ;;  %v3058_v57 = vmax.f32 %v3008_v6, 0.0  ;;  %3630 = vrsqrt.f32 %v2827_v19  ;;  %v2803_v50 = vmul.f32 0.00390625, %v2772_v8 }
 0x73b   :  { %v3009_v27 = vadd.f32 %v5842_v25, %v2947_v17  ;;  %v3010_v16 = vadd.f32 %v5845_v49, %v2948_v60  ;;  %v2949_v0 = vmul.f32 %v5836_v58, %v2887_v38  ;;  %v2950_v14 = vmul.f32 %v5839_v34, %v2888_v22  ;;  %v2781_v23 = vpop.xlane.xlu1 %2780 }
 0x73c   :  { %v3625_v56 = vpop.eup %3624  ;;  %3107 = vst [vmem:[#allocation5 + $0xd0] sm:$0xff] %v3057_v45  ;;  %3108 = vst [vmem:[#allocation5 + $0xd8] sm:$0xff] %v3058_v57  ;;  %v2889_v43 = vmul.f32 %v3623_v53, %v5740_v12  ;;  %v2890_v51 = vmul.f32 %v3623_v53, %v5743_v39  ;;  %v2828_v40 = vadd.f32 1e-05, %v2803_v50  ;;  %v2804_v37 = vmul.f32 0.00390625, %v2775_v26 }
 0x73d   :  { %v3059_v11 = vmax.f32 %v3009_v27, 0.0  ;;  %v3060_v5 = vmax.f32 %v3010_v16, 0.0  ;;  %v3011_v54 = vadd.f32 %v5842_v25, %v2949_v0  ;;  %v3012_v29 = vadd.f32 %v5845_v49, %v2950_v14 }
 0x73e   :  { %v2951_v61 = vmul.f32 %v5836_v58, %v2889_v43  ;;  %v2952_v36 = vmul.f32 %v5839_v34, %v2890_v51  ;;  %v2891_v62 = vmul.f32 %v3625_v56, %v5750_v35  ;;  %v2892_v21 = vmul.f32 %v3625_v56, %v5753_v2  ;;  %v6099_v2 = vld [vmem:[#allocation11_spill] sm:$0xff] }
 0x73f   :  { %v3627_v12 = vpop.eup %3626  ;;  %3109 = vst [vmem:[#allocation5 + $0xe0] sm:$0xff] %v3059_v11  ;;  %3110 = vst [vmem:[#allocation5 + $0xe8] sm:$0xff] %v3060_v5  ;;  %v3061_v39 = vmax.f32 %v3011_v54, 0.0  ;;  %v3062_v13 = vmax.f32 %v3012_v29, 0.0  ;;  %3632 = vrsqrt.f32 %v2828_v40  ;;  %v2829_v4 = vadd.f32 1e-05, %v2804_v37 }
 0x740   :  { %v3013_v63 = vadd.f32 %v5842_v25, %v2951_v61  ;;  %v3014_v1 = vadd.f32 %v5845_v49, %v2952_v36  ;;  %v2953_v41 = vmul.f32 %v5836_v58, %v2891_v62  ;;  %v2954_v15 = vmul.f32 %v5839_v34, %v2892_v21  ;;  %v6100_v5 = vld [vmem:[#allocation10_spill] sm:$0xff] }
 0x741   :  { %v3629_v28 = vpop.eup %3628  ;;  %3111 = vst [vmem:[#allocation5 + $0xf0] sm:$0xff] %v3061_v39  ;;  %3112 = vst [vmem:[#allocation5 + $0xf8] sm:$0xff] %v3062_v13  ;;  %v2893_v35 = vmul.f32 %v3627_v12, %v5756_v7  ;;  %v2894_v55 = vmul.f32 %v3627_v12, %v6099_v2  ;;  %3634 = vrsqrt.f32 %v2829_v4  ;;  %v2805_v20 = vmul.f32 0.00390625, %v2778_v48 }
 0x742   :  { %v3063_v30 = vmax.f32 %v3013_v63, 0.0  ;;  %v3064_v10 = vmax.f32 %v3014_v1, 0.0  ;;  %v3015_v19 = vadd.f32 %v5842_v25, %v2953_v41  ;;  %v3016_v8 = vadd.f32 %v5845_v49, %v2954_v15 }
 0x743   :  { %v2955_v47 = vmul.f32 %v5836_v58, %v2893_v35  ;;  %v2956_v59 = vmul.f32 %v5839_v34, %v2894_v55  ;;  %v2895_v42 = vmul.f32 %v3629_v28, %v5770_v3  ;;  %v2896_v6 = vmul.f32 %v3629_v28, %v5773_v33 }
 0x744   :  { %v3631_v7 = vpop.eup %3630  ;;  %3113 = vst [vmem:[#allocation5 + $0x100] sm:$0xff] %v3063_v30  ;;  %3114 = vst [vmem:[#allocation5 + $0x108] sm:$0xff] %v3064_v10  ;;  %v3065_v17 = vmax.f32 %v3015_v19, 0.0  ;;  %v3066_v60 = vmax.f32 %v3016_v8, 0.0  ;;  %v2830_v38 = vadd.f32 1e-05, %v2805_v20 }
 0x745   :  { %v2806_v22 = vmul.f32 0.00390625, %v2781_v23  ;;  %v3017_v26 = vadd.f32 %v5842_v25, %v2955_v47  ;;  %v3018_v53 = vadd.f32 %v5845_v49, %v2956_v59  ;;  %v2957_v45 = vmul.f32 %v5836_v58, %v2895_v42  ;;  %v6101_v30 = vld [vmem:[#allocation12_spill] sm:$0xff] }
 0x746   :  { %v2958_v57 = vmul.f32 %v5839_v34, %v2896_v6  ;;  %3115 = vst [vmem:[#allocation5 + $0x110] sm:$0xff] %v3065_v17  ;;  %3116 = vst [vmem:[#allocation5 + $0x118] sm:$0xff] %v3066_v60  ;;  %v2897_v3 = vmul.f32 %v3631_v7, %v5780_v46  ;;  %v2898_v33 = vmul.f32 %v3631_v7, %v5783_v44  ;;  %3636 = vrsqrt.f32 %v2830_v38 }
 0x747   :  { %v2831_v50 = vadd.f32 1e-05, %v2806_v22  ;;  %v3067_v27 = vmax.f32 %v3017_v26, 0.0  ;;  %v3068_v16 = vmax.f32 %v3018_v53, 0.0  ;;  %v3019_v0 = vadd.f32 %v5842_v25, %v2957_v45 }
 0x748   :  { %v3020_v14 = vadd.f32 %v5845_v49, %v2958_v57  ;;  %v2959_v56 = vmul.f32 %v5836_v58, %v2897_v3  ;;  %v2960_v43 = vmul.f32 %v5839_v34, %v2898_v33 }
 0x749   :  { %3638 = vrsqrt.f32 %v2831_v50  ;;  %v3633_v51 = vpop.eup %3632  ;;  %3117 = vst [vmem:[#allocation5 + $0x120] sm:$0xff] %v3067_v27  ;;  %3118 = vst [vmem:[#allocation5 + $0x128] sm:$0xff] %v3068_v16  ;;  %v3069_v40 = vmax.f32 %v3019_v0, 0.0 }
 0x74a   :  { %v3070_v46 = vmax.f32 %v3020_v14, 0.0  ;;  %v3021_v44 = vadd.f32 %v5842_v25, %v2959_v56  ;;  %v3022_v37 = vadd.f32 %v5845_v49, %v2960_v43  ;;  %v2899_v11 = vmul.f32 %v3633_v51, %v5786_v31 }
 0x74b   :  { %v2900_v54 = vmul.f32 %v3633_v51, %v6100_v5  ;;  %v3635_v29 = vpop.eup %3634  ;;  %3119 = vst [vmem:[#allocation5 + $0x130] sm:$0xff] %v3069_v40 }
 0x74c   :  { %3120 = vst [vmem:[#allocation5 + $0x138] sm:$0xff] %v3070_v46  ;;  %v3071_v61 = vmax.f32 %v3021_v44, 0.0  ;;  %v3072_v36 = vmax.f32 %v3022_v37, 0.0  ;;  %v2961_v62 = vmul.f32 %v5836_v58, %v2899_v11  ;;  %v2901_v48 = vmul.f32 %v3635_v29, %v5800_v9 }
 0x74d   :  { %v2962_v21 = vmul.f32 %v5839_v34, %v2900_v54  ;;  %v2902_v12 = vmul.f32 %v3635_v29, %v5803_v32 }
 0x74e   :  { %3121 = vst [vmem:[#allocation5 + $0x140] sm:$0xff] %v3071_v61  ;;  %3122 = vst [vmem:[#allocation5 + $0x148] sm:$0xff] %v3072_v36  ;;  %v3023_v39 = vadd.f32 %v5842_v25, %v2961_v62  ;;  %v2963_v13 = vmul.f32 %v5836_v58, %v2901_v48 }
 0x74f   :  { %v3024_v31 = vadd.f32 %v5845_v49, %v2962_v21  ;;  %v2964_v4 = vmul.f32 %v5839_v34, %v2902_v12 }
 0x750   :  { %v3637_v63 = vpop.eup %3636  ;;  %v3073_v1 = vmax.f32 %v3023_v39, 0.0  ;;  %v3025_v15 = vadd.f32 %v5842_v25, %v2963_v13 }
 0x751   :  { %v3074_v41 = vmax.f32 %v3024_v31, 0.0  ;;  %v3026_v28 = vadd.f32 %v5845_v49, %v2964_v4  ;;  %v2903_v9 = vmul.f32 %v3637_v63, %v5810_v52  ;;  %v2904_v32 = vmul.f32 %v3637_v63, %v5813_v18 }
 0x752   :  { %3123 = vst [vmem:[#allocation5 + $0x150] sm:$0xff] %v3073_v1  ;;  %v3075_v2 = vmax.f32 %v3025_v15, 0.0 }
 0x753   :  { %v3639_v35 = vpop.eup %3638  ;;  %3124 = vst [vmem:[#allocation5 + $0x158] sm:$0xff] %v3074_v41  ;;  %v3076_v55 = vmax.f32 %v3026_v28, 0.0  ;;  %v2965_v20 = vmul.f32 %v5836_v58, %v2903_v9  ;;  %v2966_v23 = vmul.f32 %v5839_v34, %v2904_v32 }
 0x754   :  { %v2905_v10 = vmul.f32 %v3639_v35, %v6101_v30  ;;  %v2906_v19 = vmul.f32 %v3639_v35, %v5819_v24  ;;  %3125 = vst [vmem:[#allocation5 + $0x160] sm:$0xff] %v3075_v2 }
 0x755   :  { %3126 = vst [vmem:[#allocation5 + $0x168] sm:$0xff] %v3076_v55  ;;  %v3027_v8 = vadd.f32 %v5842_v25, %v2965_v20  ;;  %v3028_v52 = vadd.f32 %v5845_v49, %v2966_v23 }
 0x756   :  { %v2967_v18 = vmul.f32 %v5836_v58, %v2905_v10  ;;  %v2968_v47 = vmul.f32 %v5839_v34, %v2906_v19 }
 0x757   :  { %v3077_v59 = vmax.f32 %v3027_v8, 0.0  ;;  %v3078_v42 = vmax.f32 %v3028_v52, 0.0 }
 0x758   :  { %v3029_v6 = vadd.f32 %v5842_v25, %v2967_v18  ;;  %v3030_v7 = vadd.f32 %v5845_v49, %v2968_v47 }
 0x759   :  { %3127 = vst [vmem:[#allocation5 + $0x170] sm:$0xff] %v3077_v59  ;;  %3128 = vst [vmem:[#allocation5 + $0x178] sm:$0xff] %v3078_v42 }
 0x75a   :  { %v3079_v24 = vmax.f32 %v3029_v6, 0.0  ;;  %v3080_v17 = vmax.f32 %v3030_v7, 0.0 }
 0x75c   :  { %3129 = vst [vmem:[#allocation5 + $0x180] sm:$0xff] %v3079_v24  ;;  %3130 = vst [vmem:[#allocation5 + $0x188] sm:$0xff] %v3080_v17 }
 0x75d   :  { %3673 = shalt.err (!%p3670_p12)
}
 0x75e   :  { %s3674_s20 = scalar_lea.hbm %s6022_s13, 6400 }
 0x75f   :  { %p3675_p13 = scmp.ne.s32.totalorder %s6022_s13, %s3674_s20  ;;  %p3678_p0 = scmp.lt.u32.totalorder %s3674_s20, %s6022_s13 }
 0x761   :  { %p3680_p1 = pnand %p3678_p0, %p3675_p13 }
 0x763   :  { %3683 = shalt.err (!%p3680_p1)
}
 0x764   :  { %s3692_s24 = smov 256   ;;  %s3693_s25 = smov 16  }
 0x765   :  { %3142 = dma.vmem_to_hbm [thread:$0]  %s3137_s12, 6400, %s6022_s13, [#allocation4], %s3692_s24, %s3692_s24, %s3693_s25  }
 0x766   :  { %3686 = dma.done.wait [#allocation4], 6400  }
 0x767   :  { %3687 = vsyncadd [#allocation4], 4294960896 }
 0x768   :  { %3146 = vsyncpa [#allocation3], 1 }
 0x769   :  { %3147 = vsyncpa [#allocation4], 1 }

</bundles_post_ra>
